<compile_context>
chip_gen: v5e
topology: v5e:2x2
jax: 0.10.0
libtpu: 0.0.40
codegen_flags: <defaults>
</compile_context>

<pallas_src>
import jax
import jax.numpy as jnp
from jax.experimental import pallas as pl
from jax.experimental.pallas import tpu as pltpu

# ----------------------------- model dims (small test sizes) -----------------
N         = 16     # nodes per graph
INPUT_DIM = 8
HIDDEN    = 32     # hidden_dim (per-head dim for GAT, GCN output dim)
HEADS     = 4      # num_heads  (H * HIDDEN = 128)
OUT_DIM   = 1      # output_dim
NEG_SLOPE = 0.2    # GATConv default leaky_relu slope
NEG_BIG   = 1e30   # additive mask for non-edges / cross-graph pairs

GRAPHS_PER_BLOCK = 8          # G: graphs packed per grid step (G*N = 128 rows)


def gnn_kernel(x_ref, adj_ref,
               w_gat_ref, a_both_ref, b_gat_ref,
               w_gcn_ref, b_gcn_ref,
               w_fc1t_ref, b_fc1_ref, w_fc2t_ref, b_fc2_ref,
               out_ref):
    x   = x_ref[...]                      # [GN, Fin] f32, GN = G*N = 128
    adj = adj_ref[...]                    # [GN, GN] f32, block-diag over graphs, self loops

    # ----------------------------- GATConv (concat heads) --------------------
    # projection for all heads in one bf16 MXU matmul, f32 accumulate
    h = jnp.dot(x.astype(jnp.bfloat16), w_gat_ref[...],
                preferred_element_type=jnp.float32)                       # [GN, H*D]
    h_bf = h.astype(jnp.bfloat16)

    # per-node attention terms for ALL heads via one matmul:
    #   e_all[:, hd]       = a_src[hd] . h_head[hd]
    #   e_all[:, H + hd]   = a_dst[hd] . h_head[hd]
    e_all   = jnp.dot(h_bf, a_both_ref[...],
                      preferred_element_type=jnp.float32)                 # [GN, 2H]
    e_src_T = e_all[:, :HEADS].T                                          # [H, GN] (one XLU transpose)

    # arithmetic edge mask (0 on edges, -1e30 off-edge / cross-graph)
    neg_bias = (adj - 1.0) * NEG_BIG                                      # [GN, GN]

    head_outs = []
    for hd in range(HEADS):
        logits = e_all[:, HEADS + hd:HEADS + hd + 1] + e_src_T[hd:hd + 1, :]   # [GN, GN]
        logits = jnp.where(logits > 0, logits, NEG_SLOPE * logits)             # leaky_relu(0.2)
        masked = logits + neg_bias
        m = jnp.max(masked, axis=-1, keepdims=True)                            # finite (self loop)
        p = jnp.exp(masked - m)                                                # non-edges underflow to 0
        denom = jnp.sum(p, axis=-1, keepdims=True)                             # >= 1
        alpha = p * pl.reciprocal(denom, approx=True)                          # softmax over neighbors
        h_hd = h_bf[:, hd * HIDDEN:(hd + 1) * HIDDEN]                          # [GN, D]
        head_outs.append(jnp.dot(alpha.astype(jnp.bfloat16), h_hd,
                                 preferred_element_type=jnp.float32))          # [GN, D]
    gat = jnp.concatenate(head_outs, axis=-1)                                  # [GN, H*D]
    gat = jnp.maximum(gat + b_gat_ref[...], 0.0)                               # relu
    # dropout (p=0.3) -> identity in eval mode

    # ----------------------------- GCNConv -----------------------------------
    # D^-1/2 (A+I) D^-1/2 folded into two [GN, HIDDEN] row scalings (no NxN norm matrix);
    # block-diag adjacency keeps graphs independent.
    deg   = jnp.sum(adj, axis=-1, keepdims=True)                               # [GN, 1], >= 1
    d_inv = jax.lax.rsqrt(deg)
    hg  = jnp.dot(gat.astype(jnp.bfloat16), w_gcn_ref[...],
                  preferred_element_type=jnp.float32)                          # [GN, HIDDEN]
    agg = jnp.dot(adj.astype(jnp.bfloat16), (d_inv * hg).astype(jnp.bfloat16),
                  preferred_element_type=jnp.float32)                          # [GN, HIDDEN]
    gcn = jnp.maximum(d_inv * agg + b_gcn_ref[...], 0.0)                       # relu
    # dropout -> identity

    # ----------------------------- MLP head (transposed, nodes on lanes) -----
    gcn_T = gcn.T                                                              # [HIDDEN, GN] = [32, 128]
    z1 = jnp.dot(w_fc1t_ref[...], gcn_T.astype(jnp.bfloat16),
                 preferred_element_type=jnp.float32) + b_fc1_ref[...]          # [H/2, GN]
    z1 = jnp.maximum(z1, 0.0)                                                  # relu
    # dropout -> identity
    z2 = jnp.dot(w_fc2t_ref[...], z1.astype(jnp.bfloat16),
                 preferred_element_type=jnp.float32) + b_fc2_ref[...]          # [OUT_DIM, GN]
    out_ref[...] = jax.nn.sigmoid(z2)                                          # packed lane-dense [1, GN]


def gnn_forward(x, adj, params, *, graphs_per_block=GRAPHS_PER_BLOCK):
    """x: [B, N, Fin], adj: [B, N, N] (with self loops)  ->  [B, N, OUT_DIM]."""
    B, n, fin = x.shape
    assert n == N and fin == INPUT_DIM, "kernel compiled for N=%d, Fin=%d" % (N, INPUT_DIM)
    G = graphs_per_block
    assert B % G == 0, "batch must be divisible by graphs_per_block"
    NB = B // G                  # grid steps (keep >= 2 so both v7x TensorCores get work)
    GN = G * n                   # packed rows per step (128)

    # pack G graphs per block: activations are stacked rows, adjacency is block-diagonal
    x_packed = x.reshape(NB, GN, fin)
    adj_g = adj.reshape(NB, G, n, n)
    adj_packed = jnp.einsum('bgij,gh->bgihj', adj_g,
                            jnp.eye(G, dtype=adj.dtype)).reshape(NB, GN, GN)

    in_specs = [
        pl.BlockSpec((None, GN, fin), lambda b: (b, 0, 0)),   # packed node features
        pl.BlockSpec((None, GN, GN),  lambda b: (b, 0, 0)),   # packed block-diag adjacency
    ] + [pl.BlockSpec(p.shape, lambda b: (0, 0)) for p in params]   # weights: resident, shared

    out = pl.pallas_call(
        gnn_kernel,
        out_shape=jax.ShapeDtypeStruct((NB, OUT_DIM, GN), jnp.float32),
        grid=(NB,),
        in_specs=in_specs,
        out_specs=pl.BlockSpec((None, OUT_DIM, GN), lambda b: (b, 0, 0)),
        compiler_params=pltpu.CompilerParams(
            dimension_semantics=("parallel",),     # shard packed blocks across TCs
        ),
    )(x_packed, adj_packed, *params)

    # [NB, OUT_DIM, GN] -> [B, N, OUT_DIM]  (pure layout reshape, no padded-slice traffic)
    return out.transpose(0, 2, 1).reshape(B, n, OUT_DIM)


def init_params(key):
    """Deterministic parameter init; returns the fused / bf16 tensors the kernel consumes."""
    ks = jax.random.split(key, 6)
    scale = 0.1
    w_gat = scale * jax.random.normal(ks[0], (INPUT_DIM, HEADS * HIDDEN), jnp.float32)
    a_src = scale * jax.random.normal(ks[1], (HEADS, HIDDEN), jnp.float32)
    a_dst = scale * jax.random.normal(ks[2], (HEADS, HIDDEN), jnp.float32)
    b_gat = jnp.zeros((1, HEADS * HIDDEN), jnp.float32)
    w_gcn = scale * jax.random.normal(ks[3], (HEADS * HIDDEN, HIDDEN), jnp.float32)
    b_gcn = jnp.zeros((1, HIDDEN), jnp.float32)
    w_fc1 = scale * jax.random.normal(ks[4], (HIDDEN, HIDDEN // 2), jnp.float32)
    b_fc1 = jnp.zeros((HIDDEN // 2,), jnp.float32)
    w_fc2 = scale * jax.random.normal(ks[5], (HIDDEN // 2, OUT_DIM), jnp.float32)
    b_fc2 = jnp.zeros((OUT_DIM,), jnp.float32)

    # block-diagonal attention matrix: e_all = h @ a_both gives [e_src_0..H-1 | e_dst_0..H-1]
    a_both = jnp.zeros((HEADS * HIDDEN, 2 * HEADS), jnp.float32)
    for hd in range(HEADS):
        a_both = a_both.at[hd * HIDDEN:(hd + 1) * HIDDEN, hd].set(a_src[hd])
        a_both = a_both.at[hd * HIDDEN:(hd + 1) * HIDDEN, HEADS + hd].set(a_dst[hd])

    # MLP weights stored transposed so the head runs with nodes on lanes (packed [1,GN] output)
    return (w_gat.astype(jnp.bfloat16),
            a_both.astype(jnp.bfloat16),
            b_gat,
            w_gcn.astype(jnp.bfloat16),
            b_gcn,
            w_fc1.T.astype(jnp.bfloat16),          # [HIDDEN//2, HIDDEN]
            b_fc1.reshape(HIDDEN // 2, 1),          # column bias, broadcast over lanes
            w_fc2.T.astype(jnp.bfloat16),          # [OUT_DIM, HIDDEN//2]
            b_fc2.reshape(OUT_DIM, 1))


def edges_to_dense_adj(src, dst, num_nodes):
    """adj[dst, src] = 1 for each edge (PyG flow source_to_target) + self loops."""
    adj = jnp.zeros((num_nodes, num_nodes), jnp.float32).at[dst, src].set(1.0)
    return jnp.maximum(adj, jnp.eye(num_nodes, dtype=jnp.float32))


if __name__ == "__main__":
    key = jax.random.PRNGKey(0)
    k_x, k_src, k_dst, k_p = jax.random.split(key, 4)

    B = 16                                           # graphs; 2 packed blocks of 8
    E = 40                                           # edges per graph
    x = jax.random.normal(k_x, (B, N, INPUT_DIM), jnp.float32)
    src = jax.random.randint(k_src, (B, E), 0, N)
    dst = jax.random.randint(k_dst, (B, E), 0, N)
    adj = jax.vmap(lambda s, d: edges_to_dense_adj(s, d, N))(src, dst)   # [B, N, N]

    params = init_params(k_p)

    out = gnn_forward(x, adj, params)
    out = jax.block_until_ready(out)

    assert out.shape == (B, N, OUT_DIM)
    assert bool(jnp.all(jnp.isfinite(out)))
    assert bool(jnp.all((out >= 0.0) & (out <= 1.0)))   # sigmoid range
    print("KERNEL_OK")
</pallas_src>

<mosaic_0001>
module attributes {stable_mosaic.version = 11 : i64} {
  func.func @gnn_kernel(%arg0: i32, %arg1: memref<1x128x8xf32, #tpu.memory_space<vmem>>, %arg2: memref<1x128x128xf32, #tpu.memory_space<vmem>>, %arg3: memref<8x128xbf16, #tpu.memory_space<vmem>>, %arg4: memref<128x8xbf16, #tpu.memory_space<vmem>>, %arg5: memref<1x128xf32, #tpu.memory_space<vmem>>, %arg6: memref<128x32xbf16, #tpu.memory_space<vmem>>, %arg7: memref<1x32xf32, #tpu.memory_space<vmem>>, %arg8: memref<16x32xbf16, #tpu.memory_space<vmem>>, %arg9: memref<16x1xf32, #tpu.memory_space<vmem>>, %arg10: memref<1x16xbf16, #tpu.memory_space<vmem>>, %arg11: memref<1x1xf32, #tpu.memory_space<vmem>>, %arg12: memref<1x1x128xf32, #tpu.memory_space<vmem>>) attributes {dimension_semantics = [#tpu.dimension_semantics<parallel>], iteration_bounds = array<i64: 2>, scalar_prefetch = 0 : i64, scratch_operands = 0 : i64, tpu.core_type = #tpu.core_type<tc>, window_params = [{transform_indices = @transform_0, window_bounds = array<i64: 1, 128, 8>}, {transform_indices = @transform_1, window_bounds = array<i64: 1, 128, 128>}, {pipeline_mode = #tpu.pipeline_mode<synchronous>, transform_indices = @transform_2, window_bounds = array<i64: 8, 128>}, {pipeline_mode = #tpu.pipeline_mode<synchronous>, transform_indices = @transform_3, window_bounds = array<i64: 128, 8>}, {pipeline_mode = #tpu.pipeline_mode<synchronous>, transform_indices = @transform_4, window_bounds = array<i64: 1, 128>}, {pipeline_mode = #tpu.pipeline_mode<synchronous>, transform_indices = @transform_5, window_bounds = array<i64: 128, 32>}, {pipeline_mode = #tpu.pipeline_mode<synchronous>, transform_indices = @transform_6, window_bounds = array<i64: 1, 32>}, {pipeline_mode = #tpu.pipeline_mode<synchronous>, transform_indices = @transform_7, window_bounds = array<i64: 16, 32>}, {pipeline_mode = #tpu.pipeline_mode<synchronous>, transform_indices = @transform_8, window_bounds = array<i64: 16, 1>}, {pipeline_mode = #tpu.pipeline_mode<synchronous>, transform_indices = @transform_9, window_bounds = array<i64: 1, 16>}, {pipeline_mode = #tpu.pipeline_mode<synchronous>, transform_indices = @transform_10, window_bounds = array<i64: 1, 1>}, {transform_indices = @transform_11, window_bounds = array<i64: 1, 1, 128>}]} {
    %c0 = arith.constant 0 : index
    %c0_0 = arith.constant 0 : index
    %c0_1 = arith.constant 0 : index
    %0 = vector.load %arg1[%c0, %c0_0, %c0_1] : memref<1x128x8xf32, #tpu.memory_space<vmem>>, vector<1x128x8xf32>
    %1 = vector.shape_cast %0 : vector<1x128x8xf32> to vector<128x8xf32>
    %c0_2 = arith.constant 0 : index
    %c0_3 = arith.constant 0 : index
    %c0_4 = arith.constant 0 : index
    %2 = vector.load %arg2[%c0_2, %c0_3, %c0_4] : memref<1x128x128xf32, #tpu.memory_space<vmem>>, vector<1x128x128xf32>
    %3 = vector.shape_cast %2 : vector<1x128x128xf32> to vector<128x128xf32>
    %4 = arith.truncf %1 : vector<128x8xf32> to vector<128x8xbf16>
    %c0_5 = arith.constant 0 : index
    %c0_6 = arith.constant 0 : index
    %5 = vector.load %arg3[%c0_5, %c0_6] : memref<8x128xbf16, #tpu.memory_space<vmem>>, vector<8x128xbf16>
    %cst = arith.constant dense<0.000000e+00> : vector<128x128xf32>
    %6 = tpu.matmul %4, %5, %cst {dimension_numbers = #tpu.dot_dimension_numbers<[1], [0], [0], [1], [0, 0, 1, 1], [], []>} : vector<128x8xbf16>, vector<8x128xbf16>, vector<128x128xf32> -> vector<128x128xf32>
    %7 = arith.truncf %6 : vector<128x128xf32> to vector<128x128xbf16>
    %c0_7 = arith.constant 0 : index
    %c0_8 = arith.constant 0 : index
    %8 = vector.load %arg4[%c0_7, %c0_8] : memref<128x8xbf16, #tpu.memory_space<vmem>>, vector<128x8xbf16>
    %cst_9 = arith.constant dense<0.000000e+00> : vector<128x8xf32>
    %9 = tpu.matmul %7, %8, %cst_9 {dimension_numbers = #tpu.dot_dimension_numbers<[1], [0], [0], [1], [0, 0, 1, 1], [], []>} : vector<128x128xbf16>, vector<128x8xbf16>, vector<128x8xf32> -> vector<128x8xf32>
    %10 = vector.extract_strided_slice %9 {offsets = [0, 0], sizes = [128, 4], strides = [1, 1]} : vector<128x8xf32> to vector<128x4xf32>
    %11 = tpu.transpose %10, [1, 0] : vector<128x4xf32> -> vector<4x128xf32>
    %cst_10 = arith.constant 1.000000e+00 : f32
    %12 = vector.broadcast %cst_10 : f32 to vector<128x128xf32>
    %13 = arith.subf %3, %12 : vector<128x128xf32>
    %cst_11 = arith.constant 1.000000e+30 : f32
    %14 = vector.broadcast %cst_11 : f32 to vector<128x128xf32>
    %15 = arith.mulf %13, %14 : vector<128x128xf32>
    %16 = vector.extract_strided_slice %9 {offsets = [0, 4], sizes = [128, 1], strides = [1, 1]} : vector<128x8xf32> to vector<128x1xf32>
    %17 = vector.extract_strided_slice %11 {offsets = [0, 0], sizes = [1, 128], strides = [1, 1]} : vector<4x128xf32> to vector<1x128xf32>
    %18 = vector.broadcast %16 : vector<128x1xf32> to vector<128x128xf32>
    %19 = vector.broadcast %17 : vector<1x128xf32> to vector<128x128xf32>
    %20 = arith.addf %18, %19 : vector<128x128xf32>
    %cst_12 = arith.constant 0.000000e+00 : f32
    %21 = vector.broadcast %cst_12 : f32 to vector<128x128xf32>
    %22 = arith.cmpf ogt, %20, %21 : vector<128x128xf32>
    %cst_13 = arith.constant 2.000000e-01 : f32
    %23 = vector.broadcast %cst_13 : f32 to vector<128x128xf32>
    %24 = arith.mulf %23, %20 : vector<128x128xf32>
    %25 = arith.select %22, %20, %24 : vector<128x128xi1>, vector<128x128xf32>
    %26 = arith.addf %25, %15 : vector<128x128xf32>
    %cst_14 = arith.constant dense<0xFF800000> : vector<128xf32>
    %27 = vector.multi_reduction <maximumf>, %26, %cst_14 [1] : vector<128x128xf32> to vector<128xf32>
    %28 = vector.shape_cast %27 : vector<128xf32> to vector<128x1xf32>
    %29 = vector.broadcast %28 : vector<128x1xf32> to vector<128x128xf32>
    %30 = arith.subf %26, %29 : vector<128x128xf32>
    %31 = math.exp %30 : vector<128x128xf32>
    %cst_15 = arith.constant dense<0.000000e+00> : vector<128xf32>
    %32 = vector.multi_reduction <add>, %31, %cst_15 [1] : vector<128x128xf32> to vector<128xf32>
    %33 = vector.shape_cast %32 : vector<128xf32> to vector<128x1xf32>
    %34 = tpu.reciprocal %33 {approx = true} : vector<128x1xf32> -> vector<128x1xf32>
    %35 = vector.broadcast %34 : vector<128x1xf32> to vector<128x128xf32>
    %36 = arith.mulf %31, %35 : vector<128x128xf32>
    %37 = vector.extract_strided_slice %7 {offsets = [0, 0], sizes = [128, 32], strides = [1, 1]} : vector<128x128xbf16> to vector<128x32xbf16>
    %38 = arith.truncf %36 : vector<128x128xf32> to vector<128x128xbf16>
    %cst_16 = arith.constant dense<0.000000e+00> : vector<128x32xf32>
    %39 = tpu.matmul %38, %37, %cst_16 {dimension_numbers = #tpu.dot_dimension_numbers<[1], [0], [0], [1], [0, 0, 1, 1], [], []>} : vector<128x128xbf16>, vector<128x32xbf16>, vector<128x32xf32> -> vector<128x32xf32>
    %40 = vector.extract_strided_slice %9 {offsets = [0, 5], sizes = [128, 1], strides = [1, 1]} : vector<128x8xf32> to vector<128x1xf32>
    %41 = vector.extract_strided_slice %11 {offsets = [1, 0], sizes = [1, 128], strides = [1, 1]} : vector<4x128xf32> to vector<1x128xf32>
    %42 = vector.broadcast %40 : vector<128x1xf32> to vector<128x128xf32>
    %43 = vector.broadcast %41 : vector<1x128xf32> to vector<128x128xf32>
    %44 = arith.addf %42, %43 : vector<128x128xf32>
    %cst_17 = arith.constant 0.000000e+00 : f32
    %45 = vector.broadcast %cst_17 : f32 to vector<128x128xf32>
    %46 = arith.cmpf ogt, %44, %45 : vector<128x128xf32>
    %cst_18 = arith.constant 2.000000e-01 : f32
    %47 = vector.broadcast %cst_18 : f32 to vector<128x128xf32>
    %48 = arith.mulf %47, %44 : vector<128x128xf32>
    %49 = arith.select %46, %44, %48 : vector<128x128xi1>, vector<128x128xf32>
    %50 = arith.addf %49, %15 : vector<128x128xf32>
    %cst_19 = arith.constant dense<0xFF800000> : vector<128xf32>
    %51 = vector.multi_reduction <maximumf>, %50, %cst_19 [1] : vector<128x128xf32> to vector<128xf32>
    %52 = vector.shape_cast %51 : vector<128xf32> to vector<128x1xf32>
    %53 = vector.broadcast %52 : vector<128x1xf32> to vector<128x128xf32>
    %54 = arith.subf %50, %53 : vector<128x128xf32>
    %55 = math.exp %54 : vector<128x128xf32>
    %cst_20 = arith.constant dense<0.000000e+00> : vector<128xf32>
    %56 = vector.multi_reduction <add>, %55, %cst_20 [1] : vector<128x128xf32> to vector<128xf32>
    %57 = vector.shape_cast %56 : vector<128xf32> to vector<128x1xf32>
    %58 = tpu.reciprocal %57 {approx = true} : vector<128x1xf32> -> vector<128x1xf32>
    %59 = vector.broadcast %58 : vector<128x1xf32> to vector<128x128xf32>
    %60 = arith.mulf %55, %59 : vector<128x128xf32>
    %61 = vector.extract_strided_slice %7 {offsets = [0, 32], sizes = [128, 32], strides = [1, 1]} : vector<128x128xbf16> to vector<128x32xbf16>
    %62 = arith.truncf %60 : vector<128x128xf32> to vector<128x128xbf16>
    %cst_21 = arith.constant dense<0.000000e+00> : vector<128x32xf32>
    %63 = tpu.matmul %62, %61, %cst_21 {dimension_numbers = #tpu.dot_dimension_numbers<[1], [0], [0], [1], [0, 0, 1, 1], [], []>} : vector<128x128xbf16>, vector<128x32xbf16>, vector<128x32xf32> -> vector<128x32xf32>
    %64 = vector.extract_strided_slice %9 {offsets = [0, 6], sizes = [128, 1], strides = [1, 1]} : vector<128x8xf32> to vector<128x1xf32>
    %65 = vector.extract_strided_slice %11 {offsets = [2, 0], sizes = [1, 128], strides = [1, 1]} : vector<4x128xf32> to vector<1x128xf32>
    %66 = vector.broadcast %64 : vector<128x1xf32> to vector<128x128xf32>
    %67 = vector.broadcast %65 : vector<1x128xf32> to vector<128x128xf32>
    %68 = arith.addf %66, %67 : vector<128x128xf32>
    %cst_22 = arith.constant 0.000000e+00 : f32
    %69 = vector.broadcast %cst_22 : f32 to vector<128x128xf32>
    %70 = arith.cmpf ogt, %68, %69 : vector<128x128xf32>
    %cst_23 = arith.constant 2.000000e-01 : f32
    %71 = vector.broadcast %cst_23 : f32 to vector<128x128xf32>
    %72 = arith.mulf %71, %68 : vector<128x128xf32>
    %73 = arith.select %70, %68, %72 : vector<128x128xi1>, vector<128x128xf32>
    %74 = arith.addf %73, %15 : vector<128x128xf32>
    %cst_24 = arith.constant dense<0xFF800000> : vector<128xf32>
    %75 = vector.multi_reduction <maximumf>, %74, %cst_24 [1] : vector<128x128xf32> to vector<128xf32>
    %76 = vector.shape_cast %75 : vector<128xf32> to vector<128x1xf32>
    %77 = vector.broadcast %76 : vector<128x1xf32> to vector<128x128xf32>
    %78 = arith.subf %74, %77 : vector<128x128xf32>
    %79 = math.exp %78 : vector<128x128xf32>
    %cst_25 = arith.constant dense<0.000000e+00> : vector<128xf32>
    %80 = vector.multi_reduction <add>, %79, %cst_25 [1] : vector<128x128xf32> to vector<128xf32>
    %81 = vector.shape_cast %80 : vector<128xf32> to vector<128x1xf32>
    %82 = tpu.reciprocal %81 {approx = true} : vector<128x1xf32> -> vector<128x1xf32>
    %83 = vector.broadcast %82 : vector<128x1xf32> to vector<128x128xf32>
    %84 = arith.mulf %79, %83 : vector<128x128xf32>
    %85 = vector.extract_strided_slice %7 {offsets = [0, 64], sizes = [128, 32], strides = [1, 1]} : vector<128x128xbf16> to vector<128x32xbf16>
    %86 = arith.truncf %84 : vector<128x128xf32> to vector<128x128xbf16>
    %cst_26 = arith.constant dense<0.000000e+00> : vector<128x32xf32>
    %87 = tpu.matmul %86, %85, %cst_26 {dimension_numbers = #tpu.dot_dimension_numbers<[1], [0], [0], [1], [0, 0, 1, 1], [], []>} : vector<128x128xbf16>, vector<128x32xbf16>, vector<128x32xf32> -> vector<128x32xf32>
    %88 = vector.extract_strided_slice %9 {offsets = [0, 7], sizes = [128, 1], strides = [1, 1]} : vector<128x8xf32> to vector<128x1xf32>
    %89 = vector.extract_strided_slice %11 {offsets = [3, 0], sizes = [1, 128], strides = [1, 1]} : vector<4x128xf32> to vector<1x128xf32>
    %90 = vector.broadcast %88 : vector<128x1xf32> to vector<128x128xf32>
    %91 = vector.broadcast %89 : vector<1x128xf32> to vector<128x128xf32>
    %92 = arith.addf %90, %91 : vector<128x128xf32>
    %cst_27 = arith.constant 0.000000e+00 : f32
    %93 = vector.broadcast %cst_27 : f32 to vector<128x128xf32>
    %94 = arith.cmpf ogt, %92, %93 : vector<128x128xf32>
    %cst_28 = arith.constant 2.000000e-01 : f32
    %95 = vector.broadcast %cst_28 : f32 to vector<128x128xf32>
    %96 = arith.mulf %95, %92 : vector<128x128xf32>
    %97 = arith.select %94, %92, %96 : vector<128x128xi1>, vector<128x128xf32>
    %98 = arith.addf %97, %15 : vector<128x128xf32>
    %cst_29 = arith.constant dense<0xFF800000> : vector<128xf32>
    %99 = vector.multi_reduction <maximumf>, %98, %cst_29 [1] : vector<128x128xf32> to vector<128xf32>
    %100 = vector.shape_cast %99 : vector<128xf32> to vector<128x1xf32>
    %101 = vector.broadcast %100 : vector<128x1xf32> to vector<128x128xf32>
    %102 = arith.subf %98, %101 : vector<128x128xf32>
    %103 = math.exp %102 : vector<128x128xf32>
    %cst_30 = arith.constant dense<0.000000e+00> : vector<128xf32>
    %104 = vector.multi_reduction <add>, %103, %cst_30 [1] : vector<128x128xf32> to vector<128xf32>
    %105 = vector.shape_cast %104 : vector<128xf32> to vector<128x1xf32>
    %106 = tpu.reciprocal %105 {approx = true} : vector<128x1xf32> -> vector<128x1xf32>
    %107 = vector.broadcast %106 : vector<128x1xf32> to vector<128x128xf32>
    %108 = arith.mulf %103, %107 : vector<128x128xf32>
    %109 = vector.extract_strided_slice %7 {offsets = [0, 96], sizes = [128, 32], strides = [1, 1]} : vector<128x128xbf16> to vector<128x32xbf16>
    %110 = arith.truncf %108 : vector<128x128xf32> to vector<128x128xbf16>
    %cst_31 = arith.constant dense<0.000000e+00> : vector<128x32xf32>
    %111 = tpu.matmul %110, %109, %cst_31 {dimension_numbers = #tpu.dot_dimension_numbers<[1], [0], [0], [1], [0, 0, 1, 1], [], []>} : vector<128x128xbf16>, vector<128x32xbf16>, vector<128x32xf32> -> vector<128x32xf32>
    %112 = tpu.concatenate %39, %63, %87, %111 in 1 : vector<128x32xf32>, vector<128x32xf32>, vector<128x32xf32>, vector<128x32xf32> -> vector<128x128xf32>
    %c0_32 = arith.constant 0 : index
    %c0_33 = arith.constant 0 : index
    %113 = vector.load %arg5[%c0_32, %c0_33] : memref<1x128xf32, #tpu.memory_space<vmem>>, vector<1x128xf32>
    %114 = vector.broadcast %113 : vector<1x128xf32> to vector<128x128xf32>
    %115 = arith.addf %112, %114 : vector<128x128xf32>
    %cst_34 = arith.constant 0.000000e+00 : f32
    %116 = vector.broadcast %cst_34 : f32 to vector<128x128xf32>
    %117 = arith.maximumf %115, %116 : vector<128x128xf32>
    %cst_35 = arith.constant dense<0.000000e+00> : vector<128xf32>
    %118 = vector.multi_reduction <add>, %3, %cst_35 [1] : vector<128x128xf32> to vector<128xf32>
    %119 = vector.shape_cast %118 : vector<128xf32> to vector<128x1xf32>
    %120 = math.rsqrt %119 : vector<128x1xf32>
    %121 = arith.truncf %117 : vector<128x128xf32> to vector<128x128xbf16>
    %c0_36 = arith.constant 0 : index
    %c0_37 = arith.constant 0 : index
    %122 = vector.load %arg6[%c0_36, %c0_37] : memref<128x32xbf16, #tpu.memory_space<vmem>>, vector<128x32xbf16>
    %cst_38 = arith.constant dense<0.000000e+00> : vector<128x32xf32>
    %123 = tpu.matmul %121, %122, %cst_38 {dimension_numbers = #tpu.dot_dimension_numbers<[1], [0], [0], [1], [0, 0, 1, 1], [], []>} : vector<128x128xbf16>, vector<128x32xbf16>, vector<128x32xf32> -> vector<128x32xf32>
    %124 = arith.truncf %3 : vector<128x128xf32> to vector<128x128xbf16>
    %125 = vector.broadcast %120 : vector<128x1xf32> to vector<128x32xf32>
    %126 = arith.mulf %125, %123 : vector<128x32xf32>
    %127 = arith.truncf %126 : vector<128x32xf32> to vector<128x32xbf16>
    %cst_39 = arith.constant dense<0.000000e+00> : vector<128x32xf32>
    %128 = tpu.matmul %124, %127, %cst_39 {dimension_numbers = #tpu.dot_dimension_numbers<[1], [0], [0], [1], [0, 0, 1, 1], [], []>} : vector<128x128xbf16>, vector<128x32xbf16>, vector<128x32xf32> -> vector<128x32xf32>
    %129 = vector.broadcast %120 : vector<128x1xf32> to vector<128x32xf32>
    %130 = arith.mulf %129, %128 : vector<128x32xf32>
    %c0_40 = arith.constant 0 : index
    %c0_41 = arith.constant 0 : index
    %131 = vector.load %arg7[%c0_40, %c0_41] : memref<1x32xf32, #tpu.memory_space<vmem>>, vector<1x32xf32>
    %132 = vector.broadcast %131 : vector<1x32xf32> to vector<128x32xf32>
    %133 = arith.addf %130, %132 : vector<128x32xf32>
    %cst_42 = arith.constant 0.000000e+00 : f32
    %134 = vector.broadcast %cst_42 : f32 to vector<128x32xf32>
    %135 = arith.maximumf %133, %134 : vector<128x32xf32>
    %136 = tpu.transpose %135, [1, 0] : vector<128x32xf32> -> vector<32x128xf32>
    %c0_43 = arith.constant 0 : index
    %c0_44 = arith.constant 0 : index
    %137 = vector.load %arg8[%c0_43, %c0_44] : memref<16x32xbf16, #tpu.memory_space<vmem>>, vector<16x32xbf16>
    %138 = arith.truncf %136 : vector<32x128xf32> to vector<32x128xbf16>
    %cst_45 = arith.constant dense<0.000000e+00> : vector<16x128xf32>
    %139 = tpu.matmul %137, %138, %cst_45 {dimension_numbers = #tpu.dot_dimension_numbers<[1], [0], [0], [1], [0, 0, 1, 1], [], []>} : vector<16x32xbf16>, vector<32x128xbf16>, vector<16x128xf32> -> vector<16x128xf32>
    %c0_46 = arith.constant 0 : index
    %c0_47 = arith.constant 0 : index
    %140 = vector.load %arg9[%c0_46, %c0_47] : memref<16x1xf32, #tpu.memory_space<vmem>>, vector<16x1xf32>
    %141 = vector.broadcast %140 : vector<16x1xf32> to vector<16x128xf32>
    %142 = arith.addf %139, %141 : vector<16x128xf32>
    %cst_48 = arith.constant 0.000000e+00 : f32
    %143 = vector.broadcast %cst_48 : f32 to vector<16x128xf32>
    %144 = arith.maximumf %142, %143 : vector<16x128xf32>
    %c0_49 = arith.constant 0 : index
    %c0_50 = arith.constant 0 : index
    %145 = vector.load %arg10[%c0_49, %c0_50] : memref<1x16xbf16, #tpu.memory_space<vmem>>, vector<1x16xbf16>
    %146 = arith.truncf %144 : vector<16x128xf32> to vector<16x128xbf16>
    %cst_51 = arith.constant dense<0.000000e+00> : vector<1x128xf32>
    %147 = tpu.matmul %145, %146, %cst_51 {dimension_numbers = #tpu.dot_dimension_numbers<[1], [0], [0], [1], [0, 0, 1, 1], [], []>} : vector<1x16xbf16>, vector<16x128xbf16>, vector<1x128xf32> -> vector<1x128xf32>
    %c0_52 = arith.constant 0 : index
    %c0_53 = arith.constant 0 : index
    %148 = vector.load %arg11[%c0_52, %c0_53] : memref<1x1xf32, #tpu.memory_space<vmem>>, vector<1x1xf32>
    %149 = vector.broadcast %148 : vector<1x1xf32> to vector<1x128xf32>
    %150 = arith.addf %147, %149 : vector<1x128xf32>
    %151 = arith.negf %150 : vector<1x128xf32>
    %152 = math.exp %151 : vector<1x128xf32>
    %cst_54 = arith.constant 1.000000e+00 : f32
    %153 = vector.broadcast %cst_54 : f32 to vector<1x128xf32>
    %154 = arith.addf %153, %152 : vector<1x128xf32>
    %155 = arith.divf %153, %154 : vector<1x128xf32>
    %c0_55 = arith.constant 0 : index
    %c0_56 = arith.constant 0 : index
    %c0_57 = arith.constant 0 : index
    %156 = vector.load %arg12[%c0_55, %c0_56, %c0_57] : memref<1x1x128xf32, #tpu.memory_space<vmem>>, vector<1x1x128xf32>
    %157 = vector.shape_cast %156 : vector<1x1x128xf32> to vector<1x128xf32>
    %158 = vector.shape_cast %155 : vector<1x128xf32> to vector<1x1x128xf32>
    tpu.vector_store %arg12[%c0_55, %c0_56, %c0_57], %158 {strides = array<i32>} : memref<1x1x128xf32, #tpu.memory_space<vmem>>, vector<1x1x128xf32>,
    return
  }
  func.func @transform_0(%arg0: i32) -> (i32, i32, i32) {
    %c0_i32 = arith.constant 0 : i32
    %c0_i32_0 = arith.constant 0 : i32
    %c0_i32_1 = arith.constant 0 : i32
    return %arg0, %c0_i32, %c0_i32_0 : i32, i32, i32
  }
  func.func @transform_1(%arg0: i32) -> (i32, i32, i32) {
    %c0_i32 = arith.constant 0 : i32
    %c0_i32_0 = arith.constant 0 : i32
    %c0_i32_1 = arith.constant 0 : i32
    return %arg0, %c0_i32, %c0_i32_0 : i32, i32, i32
  }
  func.func @transform_2(%arg0: i32) -> (i32, i32) {
    %c0_i32 = arith.constant 0 : i32
    %c0_i32_0 = arith.constant 0 : i32
    %c0_i32_1 = arith.constant 0 : i32
    return %c0_i32, %c0_i32_0 : i32, i32
  }
  func.func @transform_3(%arg0: i32) -> (i32, i32) {
    %c0_i32 = arith.constant 0 : i32
    %c0_i32_0 = arith.constant 0 : i32
    %c0_i32_1 = arith.constant 0 : i32
    return %c0_i32, %c0_i32_0 : i32, i32
  }
  func.func @transform_4(%arg0: i32) -> (i32, i32) {
    %c0_i32 = arith.constant 0 : i32
    %c0_i32_0 = arith.constant 0 : i32
    %c0_i32_1 = arith.constant 0 : i32
    return %c0_i32, %c0_i32_0 : i32, i32
  }
  func.func @transform_5(%arg0: i32) -> (i32, i32) {
    %c0_i32 = arith.constant 0 : i32
    %c0_i32_0 = arith.constant 0 : i32
    %c0_i32_1 = arith.constant 0 : i32
    return %c0_i32, %c0_i32_0 : i32, i32
  }
  func.func @transform_6(%arg0: i32) -> (i32, i32) {
    %c0_i32 = arith.constant 0 : i32
    %c0_i32_0 = arith.constant 0 : i32
    %c0_i32_1 = arith.constant 0 : i32
    return %c0_i32, %c0_i32_0 : i32, i32
  }
  func.func @transform_7(%arg0: i32) -> (i32, i32) {
    %c0_i32 = arith.constant 0 : i32
    %c0_i32_0 = arith.constant 0 : i32
    %c0_i32_1 = arith.constant 0 : i32
    return %c0_i32, %c0_i32_0 : i32, i32
  }
  func.func @transform_8(%arg0: i32) -> (i32, i32) {
    %c0_i32 = arith.constant 0 : i32
    %c0_i32_0 = arith.constant 0 : i32
    %c0_i32_1 = arith.constant 0 : i32
    return %c0_i32, %c0_i32_0 : i32, i32
  }
  func.func @transform_9(%arg0: i32) -> (i32, i32) {
    %c0_i32 = arith.constant 0 : i32
    %c0_i32_0 = arith.constant 0 : i32
    %c0_i32_1 = arith.constant 0 : i32
    return %c0_i32, %c0_i32_0 : i32, i32
  }
  func.func @transform_10(%arg0: i32) -> (i32, i32) {
    %c0_i32 = arith.constant 0 : i32
    %c0_i32_0 = arith.constant 0 : i32
    %c0_i32_1 = arith.constant 0 : i32
    return %c0_i32, %c0_i32_0 : i32, i32
  }
  func.func @transform_11(%arg0: i32) -> (i32, i32, i32) {
    %c0_i32 = arith.constant 0 : i32
    %c0_i32_0 = arith.constant 0 : i32
    %c0_i32_1 = arith.constant 0 : i32
    return %arg0, %c0_i32, %c0_i32_0 : i32, i32, i32
  }
}

</mosaic_0001>

<bundles_post_ra>
// kernel: tpu_custom_call.1
= control target key start
LH: loop header
LB: loop body
LE: loop exit
PB: predicated region body
PF: predicated region fallthrough
CT: control target
= control target key end

     0   :  { %s5777_s0 = inlined_call_operand.vmem [shape: f32[2,128,8], index: 0, kind: input, shape index: {}]   ;;  %s5778_s1 = inlined_call_operand.vmem [shape: f32[2,128,128], index: 1, kind: input, shape index: {}]   ;;  %s5779_s2 = inlined_call_operand.vmem [shape: bf16[8,128], index: 2, kind: input, shape index: {}]   ;;  %s5780_s3 = inlined_call_operand.vmem [shape: bf16[128,8], index: 3, kind: input, shape index: {}]   ;;  %s5781_s4 = inlined_call_operand.vmem [shape: f32[1,128], index: 4, kind: input, shape index: {}]   ;;  %s5782_s5 = inlined_call_operand.vmem [shape: bf16[128,32], index: 5, kind: input, shape index: {}]   ;;  %s5783_s6 = inlined_call_operand.vmem [shape: f32[1,32], index: 6, kind: input, shape index: {}]   ;;  %s5784_s7 = inlined_call_operand.vmem [shape: bf16[16,32], index: 7, kind: input, shape index: {}]   ;;  %s5785_s8 = inlined_call_operand.vmem [shape: f32[16,1], index: 8, kind: input, shape index: {}]   ;;  %s5786_s9 = inlined_call_operand.vmem [shape: bf16[1,16], index: 9, kind: input, shape index: {}]   ;;  %s5787_s10 = inlined_call_operand.<no memory space> [shape: f32[1,1], index: 10, kind: input, shape index: {}]   ;;  %s5788_s11 = inlined_call_operand.hbm [shape: f32[2,1,128], index: 11, kind: output, shape index: {}]  }
   0x1   :  { %v16_v0 = vstv %s5787_s10 }
   0x2   :  { %17 = vst [vmem:[#allocation2] sm:$0x1] %v16_v0 }
   0x3   :  { %18 = vsyncpa [#allocation4], 0 }
   0x4   :  { %20 = vsyncpa [#allocation4 + $0x1], 0  ;;  %s3821_s19 = smov 0   ;;  %s3823_s20 = smov 0  }
   0x5   :  { %s3825_s21 = smov 0   ;;  %s3827_s22 = smov 0  }
   0x6 LB: > { %s3842_s10 = sadd.s32 4294967295, %s3748_s22   ;;  %s3162_s23 = sadd.s32 4294967294, %s3748_s22   ;;  %s3748_s22 = sphi %s3827_s22, %s5986_s22   ;;  %s3744_s21 = sphi %s3825_s21, %s5985_s21   ;;  %s3740_s20 = sphi %s3823_s20, %s5984_s20   ;;  %s3736_s19 = sphi %s3821_s19, %s5983_s19  }
   0x7   : > { %s3846_s24 = sadd.s32 1, %s3748_s22   ;;  %s274_s25 = sadd.s32 1, %s3744_s21 }
   0x8   : > { %s271_s26 = ssub.s32 %s3748_s22, %s3846_s24  ;;  %p284_p0 = scmp.ne.s32.totalorder %s3744_s21, %s3740_s20 }
   0x9   : > { %p272_p1 = scmp.eq.s32.totalorder %s271_s26, 0  ;;  %p285_p2 = scmp.eq.s32.totalorder %s3842_s10, 1 }
   0xa   : > { %p290_p3 = scmp.ne.s32.totalorder %s3740_s20, %s3736_s19  ;;  %p291_p4 = scmp.eq.s32.totalorder %s3162_s23, 1 }
   0xb   : > { %s3857_s27 = scalar_select %p272_p1, %s3744_s21, %s274_s25  }
   0xc   : > { %p3859_p5 = por %p285_p2, %p284_p0  ;;  %p3863_p6 = por %p291_p4, %p290_p3 }
   0xd   : > { %p3165_p7 = scmp.ge.s32.totalorder %s3748_s22, 1  ;;  %p352_p8 = scmp.lt.s32.totalorder %s3748_s22, 3 }
   0xf   : > { %p353_p9 = pnand %p3165_p7, %p352_p8 }
  0x11   : > { %356 = sbr.rel (%p353_p9) target bundleno = 2722 (0xaa2), region = 64 }
  0x16   : > { %v447_v1 = vld [vmem:[%s5779_s2] sm:$0xf]  ;;  %vm473_vm0 = vcmask 1043456   ;;  %p396_p10 = scmp.lt.s32.totalorder %s3842_s10, 1  ;;  %vm448_vm1 = vcmask 64512   ;;  %v3276_v18 = vld [vmem:[%s5780_s3 + $0x38] sm:$0xff] }
  0x17   : > { %v475_v2 = vsel %vm473_vm0, %v447_v1, 0  ;;  %654 = vmatpush.bf16.msra.mxu1 %v3276_v18  ;;  %v3275_v22 = vld [vmem:[%s5780_s3 + $0x30] sm:$0xff]  ;;  %v3274_v23 = vld [vmem:[%s5780_s3 + $0x28] sm:$0xff]  ;;  %v3273_v24 = vld [vmem:[%s5780_s3 + $0x20] sm:$0xff]  ;;  %s3751_s18 = smov 64   ;;  %s5824_s23 = smov 32  }
  0x18   : > { %484 = vmatpush.bf16.msra.mxu0 %v475_v2  ;;  %s3874_s13 = scalar_select %p396_p10, %s3842_s10, 1  ;;  %v3272_v27 = vld [vmem:[%s5780_s3 + $0x18] sm:$0xff]  ;;  %v3271_v29 = vld [vmem:[%s5780_s3 + $0x10] sm:$0xff]  ;;  %v3270_v30 = vld [vmem:[%s5780_s3 + $0x8] sm:$0xff] }
  0x19   : > { %v3269_v31 = vld [vmem:[%s5780_s3] sm:$0xff]  ;;  %s394_s12 = sand.u32 1, %s3740_s20  }
  0x1a   : > { %s3267_s14 = sshll.u32 %s3874_s13, 7  ;;  %s5934_s13 = smov 32  }
  0x1b   : > { %s3882_s17 = scalar_lea.vmem %s5777_s0, %s3267_s14  ;;  %655 = vmatpush.bf16.msra.mxu1 %v3275_v22  ;;  %s4070_s30 = scalar_lea.vmem %s5778_s1, %s3267_s14 }
  0x1c   : > { %v407_v3 = vld [vmem:[%s3882_s17] sm:$0xff]  ;;  %v408_v4 = vld [vmem:[%s3882_s17 + $0x8] sm:$0xff]  ;;  %v409_v6 = vld [vmem:[%s3882_s17 + $0x10] sm:$0xff]  ;;  %s395_s15 = scalar_lea.vmem [#allocation3], %s394_s12  ;;  %s3083_s25 = scalar_lea.sflag [#allocation4], %s394_s12 }
  0x1d   : > { %v439_v5 = vpack.c.bf16 %v408_v4, %v407_v3  ;;  %v410_v7 = vld [vmem:[%s3882_s17 + $0x18] sm:$0xff]  ;;  %v411_v9 = vld [vmem:[%s3882_s17 + $0x20] sm:$0xff]  ;;  %v412_v10 = vld [vmem:[%s3882_s17 + $0x28] sm:$0xff] }
  0x1e   : > { %v440_v8 = vpack.c.bf16 %v410_v7, %v409_v6  ;;  %v441_v11 = vpack.c.bf16 %v412_v10, %v411_v9  ;;  %v413_v12 = vld [vmem:[%s3882_s17 + $0x30] sm:$0xff]  ;;  %v414_v13 = vld [vmem:[%s3882_s17 + $0x38] sm:$0xff]  ;;  %v415_v15 = vld [vmem:[%s3882_s17 + $0x40] sm:$0xff] }
  0x1f   : > { %3170 = vmatmul.msk.bf16.vlgmr.msra.gmra.mxu0 %vm448_vm1, %v439_v5  ;;  %v442_v14 = vpack.c.bf16 %v414_v13, %v413_v12  ;;  %v416_v16 = vld [vmem:[%s3882_s17 + $0x48] sm:$0xff]  ;;  %v417_v19 = vld [vmem:[%s3882_s17 + $0x50] sm:$0xff]  ;;  %v418_v20 = vld [vmem:[%s3882_s17 + $0x58] sm:$0xff]  ;;  %656 = vmatpush.bf16.msra.mxu1 %v3274_v23 }
  0x20   : > { %v443_v17 = vpack.c.bf16 %v416_v16, %v415_v15  ;;  %v444_v21 = vpack.c.bf16 %v418_v20, %v417_v19  ;;  %v419_v25 = vld [vmem:[%s3882_s17 + $0x60] sm:$0xff]  ;;  %v420_v26 = vld [vmem:[%s3882_s17 + $0x68] sm:$0xff]  ;;  %v421_v32 = vld [vmem:[%s3882_s17 + $0x70] sm:$0xff]  ;;  %v5789_v20 = vmov 4  }
  0x21   : > { %v445_v28 = vpack.c.bf16 %v420_v26, %v419_v25  ;;  %v422_v33 = vld [vmem:[%s3882_s17 + $0x78] sm:$0xff]  ;;  %s3750_s17 = smov 96   ;;  %3333 = vset.pattern.permute.xlu1 %v5789_v20 }
  0x22   : > { %v446_v34 = vpack.c.bf16 %v422_v33, %v421_v32  ;;  %v5791_v32 = vmov 7  }
  0x23   : > { %657 = vmatpush.bf16.msra.mxu1 %v3273_v24 }
  0x27   : > { %658 = vmatpush.bf16.msra.mxu1 %v3272_v27 }
  0x2b   : > { %659 = vmatpush.bf16.msra.mxu1 %v3271_v29 }
  0x2f   : > { %3171 = vmatmul.msk.bf16.gmra.mxu0 %vm448_vm1, %v440_v8  ;;  %660 = vmatpush.bf16.msra.mxu1 %v3270_v30 }
  0x33   : > { %661 = vmatpush.bf16.msra.mxu1 %v3269_v31  ;;  %v5794_v31 = vmov 5  }
  0x3f   : > { %3172 = vmatmul.msk.bf16.gmra.mxu0 %vm448_vm1, %v441_v11 }
  0x4f   : > { %3173 = vmatmul.msk.bf16.gmra.mxu0 %vm448_vm1, %v442_v14 }
  0x5f   : > { %3174 = vmatmul.msk.bf16.gmra.mxu0 %vm448_vm1, %v443_v17 }
  0x6f   : > { %3175 = vmatmul.msk.bf16.gmra.mxu0 %vm448_vm1, %v444_v21  ;;  %v5792_v21 = vmov 6  }
  0x70   : > { %3335 = vset.pattern.permute.xlu2 %v5792_v21 }
  0x7f   : > { %3176 = vmatmul.msk.bf16.gmra.mxu0 %vm448_vm1, %v445_v28 }
  0x8f   : > { %3177 = vmatmul.msk.bf16.gmra.mxu0 %vm448_vm1, %v446_v34 }
  0x9c   : > { %v486_v35 = vpop.f32.mrf.mxu0 }
  0x9d   : > { %v526_v36 = vpack.c.bf16 %v486_v35, %v486_v35 }
  0x9f   : > { %v574_v39 = vunpack.c.l.b16 %v526_v36 }
  0xa4   : > { %v488_v37 = vpop.f32.mrf.mxu0 }
  0xa5   : > { %v527_v38 = vpack.c.bf16 %v488_v37, %v488_v37 }
  0xa7   : > { %v575_v40 = vunpack.c.l.b16 %v527_v38 }
  0xa9   : > { %v3932_v41 = vpack.c.b16 %v575_v40, %v574_v39 }
  0xab   : > { %662 = vmatmul.bf16.vlgmr.msra.gmra.mxu1 %v3932_v41 }
  0xac   : > { %v491_v42 = vpop.f32.mrf.mxu0 }
  0xad   : > { %v528_v43 = vpack.c.bf16 %v491_v42, %v491_v42 }
  0xaf   : > { %v576_v46 = vunpack.c.l.b16 %v528_v43 }
  0xb4   : > { %v493_v44 = vpop.f32.mrf.mxu0 }
  0xb5   : > { %v529_v45 = vpack.c.bf16 %v493_v44, %v493_v44 }
  0xb7   : > { %v577_v47 = vunpack.c.l.b16 %v529_v45 }
  0xb9   : > { %v3935_v48 = vpack.c.b16 %v577_v47, %v576_v46 }
  0xbb   : > { %667 = vmatmul.bf16.gmra.mxu1 %v3935_v48 }
  0xbc   : > { %v496_v49 = vpop.f32.mrf.mxu0 }
  0xbd   : > { %v530_v50 = vpack.c.bf16 %v496_v49, %v496_v49 }
  0xbf   : > { %v578_v53 = vunpack.c.l.b16 %v530_v50 }
  0xc4   : > { %v498_v51 = vpop.f32.mrf.mxu0 }
  0xc5   : > { %v531_v52 = vpack.c.bf16 %v498_v51, %v498_v51 }
  0xc7   : > { %v579_v54 = vunpack.c.l.b16 %v531_v52 }
  0xc9   : > { %v3938_v55 = vpack.c.b16 %v579_v54, %v578_v53 }
  0xcb   : > { %672 = vmatmul.bf16.gmra.mxu1 %v3938_v55 }
  0xcc   : > { %v501_v56 = vpop.f32.mrf.mxu0 }
  0xcd   : > { %v532_v57 = vpack.c.bf16 %v501_v56, %v501_v56 }
  0xcf   : > { %v580_v60 = vunpack.c.l.b16 %v532_v57 }
  0xd4   : > { %v503_v58 = vpop.f32.mrf.mxu0 }
  0xd5   : > { %v533_v59 = vpack.c.bf16 %v503_v58, %v503_v58 }
  0xd7   : > { %v581_v61 = vunpack.c.l.b16 %v533_v59 }
  0xd9   : > { %v3941_v62 = vpack.c.b16 %v581_v61, %v580_v60 }
  0xdb   : > { %677 = vmatmul.bf16.gmra.mxu1 %v3941_v62 }
  0xdc   : > { %v506_v63 = vpop.f32.mrf.mxu0 }
  0xdd   : > { %v534_v0 = vpack.c.bf16 %v506_v63, %v506_v63 }
  0xdf   : > { %v582_v3 = vunpack.c.l.b16 %v534_v0 }
  0xe4   : > { %v508_v1 = vpop.f32.mrf.mxu0 }
  0xe5   : > { %v535_v2 = vpack.c.bf16 %v508_v1, %v508_v1 }
  0xe7   : > { %v583_v4 = vunpack.c.l.b16 %v535_v2 }
  0xe9   : > { %v3944_v5 = vpack.c.b16 %v583_v4, %v582_v3 }
  0xeb   : > { %1434 = vrot.lane.b32.xlu2 %v3944_v5, %s3750_s17  ;;  %682 = vmatmul.bf16.gmra.mxu1 %v3944_v5 }
  0xec   : > { %v511_v6 = vpop.f32.mrf.mxu0 }
  0xed   : > { %v536_v7 = vpack.c.bf16 %v511_v6, %v511_v6 }
  0xef   : > { %v584_v10 = vunpack.c.l.b16 %v536_v7 }
  0xf4   : > { %v513_v8 = vpop.f32.mrf.mxu0 }
  0xf5   : > { %v537_v9 = vpack.c.bf16 %v513_v8, %v513_v8 }
  0xf7   : > { %v585_v11 = vunpack.c.l.b16 %v537_v9 }
  0xf9   : > { %v3949_v12 = vpack.c.b16 %v585_v11, %v584_v10  ;;  %v424_v10 = vld [vmem:[%s4070_s30 + $0x8] sm:$0xff]  ;;  %v423_v11 = vld [vmem:[%s4070_s30] sm:$0xff] }
  0xfb   : > { %1436 = vrot.lane.b32.xlu0 %v3949_v12, %s3750_s17  ;;  %687 = vmatmul.bf16.gmra.mxu1 %v3949_v12 }
  0xfc   : > { %v516_v13 = vpop.f32.mrf.mxu0 }
  0xfd   : > { %v538_v14 = vpack.c.bf16 %v516_v13, %v516_v13 }
  0xff   : > { %v586_v17 = vunpack.c.l.b16 %v538_v14  ;;  %v3211_v14 = vadd.f32 -1.0, %v424_v10 }
 0x103   : > { %1806 = vrot.lane.b32.xlu0 %v3949_v12, %s3751_s18 }
 0x104   : > { %v518_v15 = vpop.f32.mrf.mxu0 }
 0x105   : > { %v539_v16 = vpack.c.bf16 %v518_v15, %v518_v15  ;;  %v3210_v15 = vadd.f32 -1.0, %v423_v11 }
 0x107   : > { %v587_v18 = vunpack.c.l.b16 %v539_v16 }
 0x109   : > { %v596_v19 = vpack.c.b16 %v587_v18, %v586_v17 }
 0x10b   : > { %1438 = vrot.lane.b32.xlu1 %v596_v19, %s3750_s17  ;;  %692 = vmatmul.bf16.gmra.mxu1 %v596_v19 }
 0x10c   : > { %v521_v22 = vpop.f32.mrf.mxu0 }
 0x10d   : > { %v540_v23 = vpack.c.bf16 %v521_v22, %v521_v22 }
 0x10f   : > { %v588_v26 = vunpack.c.l.b16 %v540_v23 }
 0x113   : > { %1808 = vrot.lane.b32.xlu1 %v596_v19, %s3751_s18 }
 0x114   : > { %v523_v24 = vpop.f32.mrf.mxu0 }
 0x115   : > { %v541_v25 = vpack.c.bf16 %v523_v24, %v523_v24  ;;  %v4087_v24 = vmul.f32 1e+30, %v3211_v14 }
 0x117   : > { %v589_v27 = vunpack.c.l.b16 %v541_v25  ;;  %v4089_v25 = vmul.f32 1e+30, %v3210_v15 }
 0x119   : > { %v597_v28 = vpack.c.b16 %v589_v27, %v588_v26 }
 0x11b   : > { %2178 = vrot.lane.b32.xlu1 %v596_v19, %s5824_s23  ;;  %1810 = vrot.lane.b32.xlu2 %v597_v28, %s3751_s18 }
 0x11c   : > { %1440 = vrot.lane.b32.xlu0 %v597_v28, %s3750_s17  ;;  %697 = vmatmul.bf16.gmra.mxu1 %v597_v28 }
 0x11d   : > { %1080 = vmatpush.bf16.msra.mxu2 %v597_v28 }
 0x121   : > { %1081 = vmatpush.bf16.msra.mxu2 %v596_v19 }
 0x123   : > { %2180 = vrot.lane.b32.xlu2 %v597_v28, %s5824_s23 }
 0x125   : > { %1082 = vmatpush.bf16.msra.mxu2 %v3949_v12 }
 0x128   : > { %v663_v29 = vpop.f32.mrf.mxu1 }
 0x129   : > { %1083 = vmatpush.bf16.msra.mxu2 %v3944_v5  ;;  %769 = vperm.xlu1 %3333, %v663_v29  }
 0x12b   : > { %1500 = vperm.xlu2 %3335, %v663_v29  }
 0x12d   : > { %1084 = vmatpush.bf16.msra.mxu2 %v3941_v62 }
 0x130   : > { %v665_v30 = vpop.f32.mrf.mxu1 }
 0x131   : > { %1085 = vmatpush.bf16.msra.mxu2 %v3938_v55  ;;  %3334 = vset.pattern.permute.xlu1 %v5794_v31 }
 0x132   : > { %1130 = vperm.xlu1 %3334, %v663_v29  }
 0x133   : > { %3336 = vset.pattern.permute.xlu2 %v5791_v32 }
 0x134   : > { %1870 = vperm.xlu2 %3336, %v663_v29  }
 0x135   : > { %1086 = vmatpush.bf16.msra.mxu2 %v3935_v48 }
 0x138   : > { %v668_v33 = vpop.f32.mrf.mxu1 }
 0x139   : > { %1087 = vmatpush.bf16.msra.mxu2 %v3932_v41 }
 0x13a   : > { %3338 = vset.pattern.permute.xlu1 %v5792_v21 }
 0x13b   : > { %1504 = vperm.xlu1 %3338, %v665_v30  }
 0x13c   : > { %3337 = vset.pattern.permute.xlu2 %v5794_v31 }
 0x13d   : > { %1134 = vperm.xlu2 %3337, %v665_v30  }
 0x13e   : > { %703 = vxpose.xlu0.b32.start [1/16] (narrow) %v663_v29, 8 }
 0x140   : > { %v3974_v34 = vpop.f32.mrf.mxu1 }
 0x143   : > { %3339 = vset.pattern.permute.xlu1 %v5791_v32 }
 0x144   : > { %1874 = vperm.xlu1 %3339, %v665_v30  }
 0x145   : > { %3340 = vset.pattern.permute.xlu2 %v5789_v20  ;;  %v1435_v39 = vpop.permute.xlu2 %1434 }
 0x146   : > { %704 = vxpose.xlu0.b32.cont [2/16] (narrow) %v665_v30, 8  ;;  %774 = vperm.xlu2 %3340, %v665_v30  }
 0x148   : > { %v673_v35 = vpop.f32.mrf.mxu1 }
 0x14c   : > { %3344 = vset.pattern.permute.xlu1 %v5789_v20 }
 0x14d   : > { %779 = vperm.xlu1 %3344, %v668_v33  }
 0x14e   : > { %705 = vxpose.xlu0.b32.cont [3/16] (narrow) %v668_v33, 8  ;;  %3341 = vset.pattern.permute.xlu2 %v5794_v31 }
 0x14f   : > { %1138 = vperm.xlu2 %3341, %v668_v33  }
 0x150   : > { %v3980_v36 = vpop.f32.mrf.mxu1 }
 0x155   : > { %3345 = vset.pattern.permute.xlu1 %v5794_v31 }
 0x156   : > { %706 = vxpose.xlu0.b32.cont [4/16] (narrow) %v3974_v34, 8  ;;  %1142 = vperm.xlu1 %3345, %v3974_v34  }
 0x157   : > { %3342 = vset.pattern.permute.xlu2 %v5792_v21 }
 0x158   : > { %1508 = vperm.xlu2 %3342, %v668_v33   ;;  %v3986_v37 = vpop.f32.mrf.mxu1 }
 0x15e   : > { %707 = vxpose.xlu0.b32.cont [5/16] (narrow) %v673_v35, 8  ;;  %3346 = vset.pattern.permute.xlu1 %v5792_v21 }
 0x15f   : > { %1512 = vperm.xlu1 %3346, %v3974_v34  }
 0x160   : > { %3343 = vset.pattern.permute.xlu2 %v5791_v32  ;;  %v3991_v38 = vpop.f32.mrf.mxu1 }
 0x161   : > { %1878 = vperm.xlu2 %3343, %v668_v33  }
 0x166   : > { %708 = vxpose.xlu0.b32.cont [6/16] (narrow) %v3980_v36, 8 }
 0x167   : > { %3347 = vset.pattern.permute.xlu1 %v5791_v32 }
 0x168   : > { %1882 = vperm.xlu1 %3347, %v3974_v34   ;;  %v3998_v40 = vpop.f32.mrf.mxu1 }
 0x169   : > { %3348 = vset.pattern.permute.xlu2 %v5794_v31 }
 0x16a   : > { %1146 = vperm.xlu2 %3348, %v673_v35  }
 0x16d   : > { %v1437_v44 = vpop.permute.xlu0 %1436 }
 0x16e   : > { %709 = vxpose.xlu0.b32.cont [7/16] (narrow) %v3986_v37, 8 }
 0x170   : > { %3349 = vset.pattern.permute.xlu1 %v5792_v21  ;;  %v4004_v43 = vpop.f32.mrf.mxu1 }
 0x171   : > { %1516 = vperm.xlu1 %3349, %v673_v35  }
 0x172   : > { %3353 = vset.pattern.permute.xlu2 %v5792_v21 }
 0x173   : > { %1520 = vperm.xlu2 %3353, %v3980_v36  }
 0x175   : > { %v1811_v42 = vpop.permute.xlu2 %1810  ;;  %v1807_v50 = vpop.permute.xlu0 %1806 }
 0x176   : > { %710 = vxpose.xlu0.b32.cont [8/16] (narrow) %v3991_v38, 8  ;;  %1820 = vmatpush.bf16.msrb.mxu0 %v1811_v42 }
 0x178   : > { %v4011_v47 = vpop.f32.mrf.mxu1 }
 0x179   : > { %3350 = vset.pattern.permute.xlu1 %v5791_v32 }
 0x17a   : > { %1886 = vperm.xlu1 %3350, %v673_v35  }
 0x17b   : > { %3354 = vset.pattern.permute.xlu2 %v5791_v32 }
 0x17c   : > { %1890 = vperm.xlu2 %3354, %v3980_v36  }
 0x17d   : > { %v1439_v45 = vpop.permute.xlu1 %1438  ;;  %v2181_v46 = vpop.permute.xlu2 %2180 }
 0x17e   : > { %711 = vxpose.xlu0.b32.cont [9/16] (narrow) %v3998_v40, 8  ;;  %2190 = vmatpush.bf16.msrb.mxu1 %v2181_v46 }
 0x180   : > { %v4018_v51 = vpop.f32.mrf.mxu1 }
 0x182   : > { %3351 = vset.pattern.permute.xlu1 %v5789_v20 }
 0x183   : > { %789 = vperm.xlu1 %3351, %v673_v35  }
 0x184   : > { %3355 = vset.pattern.permute.xlu2 %v5794_v31 }
 0x185   : > { %v1809_v49 = vpop.permute.xlu1 %1808  ;;  %1154 = vperm.xlu2 %3355, %v3986_v37   ;;  %v4052_v63 = vpop.permute.xlu2 %1500 }
 0x186   : > { %712 = vxpose.xlu0.b32.cont [10/16] (narrow) %v4004_v43, 8  ;;  %1821 = vmatpush.bf16.msrb.mxu0 %v1809_v49 }
 0x188   : > { %v4027_v54 = vpop.f32.mrf.mxu1 }
 0x18a   : > { %1822 = vmatpush.bf16.msrb.mxu0 %v1807_v50 }
 0x18b   : > { %3352 = vset.pattern.permute.xlu1 %v5794_v31 }
 0x18c   : > { %1150 = vperm.xlu1 %3352, %v3980_v36  }
 0x18d   : > { %v2179_v52 = vpop.permute.xlu1 %2178  ;;  %3359 = vset.pattern.permute.xlu2 %v5792_v21 }
 0x18e   : > { %713 = vxpose.xlu0.b32.cont [11/16] (narrow) %v4011_v47, 8  ;;  %v1441_v53 = vpop.permute.xlu0 %1440  ;;  %1528 = vperm.xlu2 %3359, %v3991_v38   ;;  %v1871_v2 = vpop.permute.xlu2 %1870 }
 0x18f   : > { %2191 = vmatpush.bf16.msrb.mxu1 %v2179_v52  ;;  %1450 = vmatpush.bf16.msra.mxu3 %v1441_v53  ;;  %v425_v53 = vld [vmem:[%s4070_s30 + $0x10] sm:$0xff] }
 0x190   : > { %v4037_v57 = vpop.f32.mrf.mxu1  ;;  %v3212_v11 = vadd.f32 -1.0, %v425_v53 }
 0x192   : > { %v4114_v15 = vmul.f32 1e+30, %v3212_v11  ;;  %v427_v11 = vld [vmem:[%s4070_s30 + $0x20] sm:$0xff] }
 0x193   : > { %1451 = vmatpush.bf16.msra.mxu3 %v1439_v45 }
 0x194   : > { %3356 = vset.pattern.permute.xlu1 %v5792_v21 }
 0x195   : > { %1524 = vperm.xlu1 %3356, %v3986_v37  }
 0x196   : > { %714 = vxpose.xlu0.b32.cont [12/16] (narrow) %v4018_v51, 8  ;;  %3360 = vset.pattern.permute.xlu2 %v5791_v32 }
 0x197   : > { %1452 = vmatpush.bf16.msra.mxu3 %v1437_v44  ;;  %1898 = vperm.xlu2 %3360, %v3991_v38   ;;  %v1135_v4 = vpop.permute.xlu2 %1134 }
 0x199   : > { %v4044_v59 = vpop.f32.mrf.mxu1 }
 0x19b   : > { %1453 = vmatpush.bf16.msra.mxu3 %v1435_v39  ;;  %v4030_v56 = vpop.permute.xlu1 %769 }
 0x19d   : > { %3357 = vset.pattern.permute.xlu1 %v5789_v20 }
 0x19e   : > { %715 = vxpose.xlu0.b32.cont [13/16] (narrow) %v4027_v54, 8  ;;  %799 = vperm.xlu1 %3357, %v3986_v37  }
 0x19f   : > { %3362 = vset.pattern.permute.xlu2 %v5794_v31 }
 0x1a0   : > { %1170 = vperm.xlu2 %3362, %v4011_v47   ;;  %v4061_v7 = vpop.permute.xlu2 %774 }
 0x1a1   : > { %v4050_v61 = vpop.f32.mrf.mxu1 }
 0x1a4   : > { %v1131_v58 = vpop.permute.xlu1 %1130 }
 0x1a6   : > { %716 = vxpose.xlu0.b32.cont [14/16] (narrow) %v4037_v57, 8  ;;  %3358 = vset.pattern.permute.xlu1 %v5794_v31  ;;  %v430_v31 = vld [vmem:[%s4070_s30 + $0x38] sm:$0xff] }
 0x1a7   : > { %1158 = vperm.xlu1 %3358, %v3991_v38  }
 0x1a8   : > { %3363 = vset.pattern.permute.xlu2 %v5791_v32 }
 0x1a9   : > { %1914 = vperm.xlu2 %3363, %v4018_v51   ;;  %v1139_v9 = vpop.permute.xlu2 %1138 }
 0x1ad   : > { %v1505_v60 = vpop.permute.xlu1 %1504 }
 0x1ae   : > { %717 = vxpose.xlu0.b32.cont [15/16] (narrow) %v4044_v59, 8 }
 0x1af   : > { %3361 = vset.pattern.permute.xlu1 %v5792_v21 }
 0x1b0   : > { %1532 = vperm.xlu1 %3361, %v3998_v40  }
 0x1b1   : > { %3364 = vset.pattern.permute.xlu2 %v5789_v20 }
 0x1b2   : > { %v1509_v28 = vpop.permute.xlu2 %1508 }
 0x1b6   : > { %718 = vxpose.xlu0.b32.end [16/16] (narrow) %v4050_v61, 8  ;;  %v1875_v0 = vpop.permute.xlu1 %1874 }
 0x1b8   : > { %1536 = vperm.xlu1 %3361, %v4004_v43  }
 0x1bf   : > { %v4056_v1 = vpop.permute.xlu1 %779 }
 0x1c0   : > { %3365 = vset.pattern.permute.xlu1 %v5791_v32 }
 0x1c8   : > { %v1143_v3 = vpop.permute.xlu1 %1142 }
 0x1d1   : > { %v4059_v6 = vpop.permute.xlu1 %1512 }
 0x1da   : > { %v4063_v8 = vpop.permute.xlu1 %1882 }
 0x1e2   : > { %v4074_v13 = vpop.trf.xlu0 }
 0x1e3   : > { %v4077_v16 = vperm.slane %v4074_v13, 1  ;;  %v4080_v17 = vperm.slane %v4074_v13, 2  ;;  %v1517_v18 = vpop.permute.xlu1 %1516  ;;  %v4083_v19 = vperm.slane %v4074_v13, 3 }
 0x1e5   : > { %v1195_v22 = vadd.f32 %v4077_v16, %v1135_v4  ;;  %v1194_v23 = vadd.f32 %v4077_v16, %v1131_v58  ;;  %v1565_v27 = vadd.f32 %v4080_v17, %v1505_v60  ;;  %v1934_v30 = vadd.f32 %v4083_v19, %v1871_v2  ;;  %v1879_v60 = vpop.permute.xlu2 %1878 }
 0x1e6   : > { %v1935_v50 = vadd.f32 %v4083_v19, %v1875_v0  ;;  %v1196_v58 = vadd.f32 %v4077_v16, %v1139_v9  ;;  %v1566_v53 = vadd.f32 %v4080_v17, %v1509_v28  ;;  %v1564_v32 = vadd.f32 %v4080_v17, %v4052_v63 }
 0x1e7   : > { %vm1211_vm2 = vcmp.gt.f32.partialorder %v1195_v22, 0.0  ;;  %v1227_v26 = vmul.f32 0.2, %v1195_v22  ;;  %vm1210_vm3 = vcmp.gt.f32.partialorder %v1194_v23, 0.0  ;;  %v1226_v29 = vmul.f32 0.2, %v1194_v23 }
 0x1e8   : > { %v1597_v44 = vmul.f32 0.2, %v1565_v27  ;;  %vm1581_vm4 = vcmp.gt.f32.partialorder %v1565_v27, 0.0  ;;  %v1966_v46 = vmul.f32 0.2, %v1934_v30  ;;  %vm1950_vm5 = vcmp.gt.f32.partialorder %v1934_v30, 0.0 }
 0x1e9   : > { %v1243_v33 = vsel %vm1211_vm2, %v1195_v22, %v1227_v26  ;;  %v1242_v39 = vsel %vm1210_vm3, %v1194_v23, %v1226_v29  ;;  %v1967_v10 = vmul.f32 0.2, %v1935_v50  ;;  %vm1951_vm6 = vcmp.gt.f32.partialorder %v1935_v50, 0.0  ;;  %v426_v22 = vld [vmem:[%s4070_s30 + $0x18] sm:$0xff] }
 0x1ea   : > { %v4094_v35 = vadd.f32 %v1243_v33, %v4087_v24  ;;  %v4097_v42 = vadd.f32 %v1242_v39, %v4089_v25  ;;  %v1613_v49 = vsel %vm1581_vm4, %v1565_v27, %v1597_v44  ;;  %v1982_v52 = vsel %vm1950_vm5, %v1934_v30, %v1966_v46  ;;  %v428_v39 = vld [vmem:[%s4070_s30 + $0x28] sm:$0xff] }
 0x1eb   : > { %v4105_v2 = vadd.f32 %v1613_v49, %v4087_v24  ;;  %v4108_v4 = vadd.f32 %v1982_v52, %v4089_v25  ;;  %v1228_v14 = vmul.f32 0.2, %v1196_v58  ;;  %vm1212_vm7 = vcmp.gt.f32.partialorder %v1196_v58, 0.0 }
 0x1ec   : > { %1276 = vmax.xlane.f32.xlu2 %v4094_v35  ;;  %v1887_v45 = vpop.permute.xlu1 %1886  ;;  %1274 = vmax.xlane.f32.xlu1 %v4097_v42  ;;  %v1983_v9 = vsel %vm1951_vm6, %v1935_v50, %v1967_v10  ;;  %v1197_v23 = vadd.f32 %v4077_v16, %v1143_v3  ;;  %v3213_v29 = vadd.f32 -1.0, %v426_v22  ;;  %v3215_v3 = vadd.f32 -1.0, %v428_v39 }
 0x1ed   : > { %v1244_v26 = vsel %vm1212_vm7, %v1196_v58, %v1228_v14  ;;  %v4119_v27 = vadd.f32 %v1983_v9, %v4087_v24  ;;  %v1147_v44 = vpop.permute.xlu2 %1146  ;;  %v1568_v58 = vadd.f32 %v4080_v17, %v1517_v18  ;;  %vm1582_vm10 = vcmp.gt.f32.partialorder %v1566_v53, 0.0 }
 0x1ee   : > { %v4122_v30 = vadd.f32 %v1244_v26, %v4114_v15  ;;  %v1229_v33 = vmul.f32 0.2, %v1197_v23  ;;  %vm1213_vm8 = vcmp.gt.f32.partialorder %v1197_v23, 0.0  ;;  %v4127_v49 = vmul.f32 1e+30, %v3213_v29 }
 0x1ef   : > { %v4136_v9 = vmul.f32 1e+30, %v3215_v3  ;;  %v1598_v26 = vmul.f32 0.2, %v1566_v53  ;;  %v1600_v28 = vmul.f32 0.2, %v1568_v58 }
 0x1f0   : > { %v1245_v52 = vsel %vm1213_vm8, %v1197_v23, %v1229_v33  ;;  %v3214_v23 = vadd.f32 -1.0, %v427_v11  ;;  %vm1584_vm11 = vcmp.gt.f32.partialorder %v1568_v58, 0.0  ;;  %vm1580_vm2 = vcmp.gt.f32.partialorder %v1564_v32, 0.0 }
 0x1f1   : > { %v4134_v14 = vadd.f32 %v1245_v52, %v4127_v49  ;;  %v1614_v39 = vsel %vm1582_vm10, %v1566_v53, %v1598_v26  ;;  %v1616_v52 = vsel %vm1584_vm11, %v1568_v58, %v1600_v28  ;;  %v1937_v53 = vadd.f32 %v4083_v19, %v4063_v8 }
 0x1f2   : > { %v4148_v3 = vmul.f32 1e+30, %v3214_v23 }
 0x1f3   : > { %vm1953_vm14 = vcmp.gt.f32.partialorder %v1937_v53, 0.0 }
 0x1f4   : > { %1646 = vmax.xlane.f32.xlu2 %v4105_v2  ;;  %2014 = vmax.xlane.f32.xlu1 %v4108_v4 }
 0x1f5   : > { %v4112_v0 = vpop.permute.xlu1 %789  ;;  %v4142_v33 = vpop.permute.xlu2 %1520 }
 0x1fc   : > { %2016 = vmax.xlane.f32.xlu2 %v4119_v27  ;;  %1278 = vmax.xlane.f32.xlu1 %v4122_v30 }
 0x1fe   : > { %v1151_v46 = vpop.permute.xlu1 %1150 }
 0x1ff   : > { %v1199_v50 = vadd.f32 %v4077_v16, %v1151_v46  ;;  %v1936_v46 = vadd.f32 %v4083_v19, %v1879_v60 }
 0x201   : > { %v1231_v10 = vmul.f32 0.2, %v1199_v50  ;;  %vm1215_vm9 = vcmp.gt.f32.partialorder %v1199_v50, 0.0  ;;  %v1968_v11 = vmul.f32 0.2, %v1936_v46  ;;  %vm1952_vm12 = vcmp.gt.f32.partialorder %v1936_v46, 0.0 }
 0x203   : > { %v1247_v22 = vsel %vm1215_vm9, %v1199_v50, %v1231_v10  ;;  %v1938_v50 = vadd.f32 %v4083_v19, %v1887_v45  ;;  %v4152_v10 = vadd.f32 %v1614_v39, %v4114_v15  ;;  %v1984_v60 = vsel %vm1952_vm12, %v1936_v46, %v1968_v11  ;;  %v1891_v45 = vpop.permute.xlu2 %1890 }
 0x204   : > { %1280 = vmax.xlane.f32.xlu2 %v4134_v14  ;;  %v4140_v29 = vadd.f32 %v1247_v22, %v4136_v9  ;;  %v4156_v22 = vadd.f32 %v1616_v52, %v4148_v3  ;;  %v1939_v23 = vadd.f32 %v4083_v19, %v1891_v45  ;;  %v4165_v28 = vadd.f32 %v1984_v60, %v4114_v15 }
 0x205   : > { %v1970_v20 = vmul.f32 0.2, %v1938_v50  ;;  %vm1954_vm13 = vcmp.gt.f32.partialorder %v1938_v50, 0.0  ;;  %v1969_v39 = vmul.f32 0.2, %v1937_v53 }
 0x206   : > { %1284 = vmax.xlane.f32.xlu1 %v4140_v29  ;;  %5842 = vst [vmem:[#allocation6_spill] sm:$0xff] %v4156_v22  ;;  %v1971_v46 = vmul.f32 0.2, %v1939_v23  ;;  %vm1955_vm15 = vcmp.gt.f32.partialorder %v1939_v23, 0.0 }
 0x207   : > { %v4145_v18 = vpop.permute.xlu1 %1524  ;;  %v1986_v26 = vsel %vm1954_vm13, %v1938_v50, %v1970_v20  ;;  %v1985_v8 = vsel %vm1953_vm14, %v1937_v53, %v1969_v39  ;;  %v1198_v20 = vadd.f32 %v4077_v16, %v1147_v44  ;;  %v1596_v39 = vmul.f32 0.2, %v1564_v32 }
 0x208   : > { %v4169_v52 = vadd.f32 %v1986_v26, %v4148_v3  ;;  %v1987_v11 = vsel %vm1955_vm15, %v1939_v23, %v1971_v46  ;;  %v4175_v45 = vadd.f32 %v1985_v8, %v4127_v49  ;;  %v4180_v26 = vperm.slane %v4074_v13, 0 }
 0x209   : > { %v1230_v21 = vmul.f32 0.2, %v1198_v20  ;;  %v4185_v53 = vadd.f32 %v1987_v11, %v4136_v9  ;;  %vm1214_vm0 = vcmp.gt.f32.partialorder %v1198_v20, 0.0  ;;  %v5846_v23 = vmov 5  }
 0x20a   : > { %5844 = vst [vmem:[#allocation8_spill] sm:$0xff] %v4169_v52  ;;  %v3217_v46 = vadd.f32 -1.0, %v430_v31  ;;  %v849_v13 = vadd.f32 %v4180_v26, %v4061_v7  ;;  %v1612_v11 = vsel %vm1580_vm2, %v1564_v32, %v1596_v39 }
 0x20b   : > { %5845 = vst [vmem:[#allocation9_spill] sm:$0xff] %v4185_v53  ;;  %v1246_v63 = vsel %vm1214_vm0, %v1198_v20, %v1230_v21  ;;  %v4203_v31 = vadd.f32 %v1612_v11, %v4089_v25  ;;  %v1155_v7 = vpop.permute.xlu2 %1154 }
 0x20c   : > { %1648 = vmax.xlane.f32.xlu2 %v4152_v10  ;;  %vm865_vm3 = vcmp.gt.f32.partialorder %v849_v13, 0.0 }
 0x20e   : > { %1652 = vmax.xlane.f32.xlu1 %v4156_v22  ;;  %v1567_v22 = vadd.f32 %v4080_v17, %v4059_v6  ;;  %v1200_v6 = vadd.f32 %v4077_v16, %v1155_v7 }
 0x210   : > { %v4161_v58 = vpop.permute.xlu1 %799  ;;  %v1599_v20 = vmul.f32 0.2, %v1567_v22  ;;  %vm1583_vm4 = vcmp.gt.f32.partialorder %v1567_v22, 0.0  ;;  %vm1216_vm5 = vcmp.gt.f32.partialorder %v1200_v6, 0.0 }
 0x211   : > { %5843 = vst [vmem:[#allocation7_spill] sm:$0xff] %v4161_v58 }
 0x212   : > { %v1615_v39 = vsel %vm1583_vm4, %v1567_v22, %v1599_v20 }
 0x213   : > { %v4216_v11 = vadd.f32 %v1615_v39, %v4127_v49 }
 0x214   : > { %2018 = vmax.xlane.f32.xlu2 %v4165_v28 }
 0x216   : > { %2022 = vmax.xlane.f32.xlu1 %v4169_v52  ;;  %v4194_v52 = vmul.f32 1e+30, %v3217_v46 }
 0x219   : > { %v1159_v50 = vpop.permute.xlu1 %1158 }
 0x21a   : > { %v1201_v60 = vadd.f32 %v4077_v16, %v1159_v50  ;;  %v4192_v50 = vadd.f32 %v1246_v63, %v4148_v3  ;;  %v848_v63 = vadd.f32 %v4180_v26, %v4030_v56  ;;  %v1569_v56 = vadd.f32 %v4080_v17, %v4142_v33 }
 0x21c   : > { %2020 = vmax.xlane.f32.xlu2 %v4175_v45  ;;  %v1233_v44 = vmul.f32 0.2, %v1201_v60  ;;  %vm1217_vm1 = vcmp.gt.f32.partialorder %v1201_v60, 0.0  ;;  %5847 = vst [vmem:[#allocation10_spill] sm:$0xff] %v4192_v50  ;;  %vm864_vm6 = vcmp.gt.f32.partialorder %v848_v63, 0.0  ;;  %vm1585_vm7 = vcmp.gt.f32.partialorder %v1569_v56, 0.0 }
 0x21d   : > { %3366 = vset.pattern.permute.xlu0 %v5846_v23 }
 0x21e   : > { %2024 = vmax.xlane.f32.xlu1 %v4185_v53  ;;  %v1249_v8 = vsel %vm1217_vm1, %v1201_v60, %v1233_v44  ;;  %v881_v53 = vmul.f32 0.2, %v849_v13  ;;  %v429_v60 = vld [vmem:[%s4070_s30 + $0x30] sm:$0xff] }
 0x21f   : > { %v4200_v21 = vadd.f32 %v1249_v8, %v4194_v52  ;;  %v3216_v46 = vadd.f32 -1.0, %v429_v60  ;;  %v1232_v8 = vmul.f32 0.2, %v1200_v6  ;;  %v1529_v60 = vpop.permute.xlu2 %1528 }
 0x220   : > { %v897_v32 = vsel %vm865_vm3, %v849_v13, %v881_v53  ;;  %v880_v13 = vmul.f32 0.2, %v848_v63 }
 0x221   : > { %5848 = vst [vmem:[#allocation11_spill] sm:$0xff] %v4200_v21  ;;  %v4210_v44 = vadd.f32 %v897_v32, %v4087_v24  ;;  %v4218_v53 = vmul.f32 1e+30, %v3216_v46  ;;  %v1248_v7 = vsel %vm1216_vm5, %v1200_v6, %v1232_v8  ;;  %v1601_v32 = vmul.f32 0.2, %v1569_v56 }
 0x222   : > { %v896_v22 = vsel %vm864_vm6, %v848_v63, %v880_v13  ;;  %v4245_v33 = vpop.permute.xlu1 %1532 }
 0x223   : > { %5849 = vst [vmem:[#allocation12_spill] sm:$0xff] %v4210_v44  ;;  %v4222_v24 = vadd.f32 %v1248_v7, %v4218_v53  ;;  %v4228_v20 = vadd.f32 %v896_v22, %v4089_v25  ;;  %v1617_v39 = vsel %vm1585_vm7, %v1569_v56, %v1601_v32  ;;  %v850_v22 = vadd.f32 %v4180_v26, %v4056_v1 }
 0x224   : > { %1282 = vmax.xlane.f32.xlu2 %v4192_v50  ;;  %v4232_v6 = vadd.f32 %v1617_v39, %v4136_v9 }
 0x225   : > { %5850 = vst [vmem:[#allocation13_spill] sm:$0xff] %v4222_v24  ;;  %v882_v56 = vmul.f32 0.2, %v850_v22  ;;  %vm866_vm8 = vcmp.gt.f32.partialorder %v850_v22, 0.0 }
 0x226   : > { %1288 = vmax.xlane.f32.xlu1 %v4200_v21  ;;  %5851 = vst [vmem:[#allocation14_spill] sm:$0xff] %v4228_v20 }
 0x227   : > { %1644 = vmax.xlane.f32.xlu0 %v4203_v31  ;;  %5852 = vst [vmem:[#allocation15_spill] sm:$0xff] %v4232_v6  ;;  %v4236_v46 = vpop.permute.xlu2 %1898 }
 0x22a   : > { %v4255_v63 = vpop.permute.xlu1 %1536 }
 0x22c   : > { %930 = vmax.xlane.f32.xlu2 %v4210_v44 }
 0x22f   : > { %1650 = vmax.xlane.f32.xlu0 %v4216_v11  ;;  %v4241_v25 = vpop.permute.xlu2 %1170 }
 0x230   : > { %5853 = vst [vmem:[#allocation16_spill] sm:$0xff] %v4241_v25  ;;  %v5868_v25 = vmov 6  }
 0x234   : > { %1286 = vmax.xlane.f32.xlu2 %v4222_v24  ;;  %v898_v24 = vsel %vm866_vm8, %v850_v22, %v882_v56 }
 0x237   : > { %928 = vmax.xlane.f32.xlu0 %v4228_v20 }
 0x23f   : > { %1654 = vmax.xlane.f32.xlu0 %v4232_v6  ;;  %1894 = vperm.xlu1 %3365, %v3986_v37   ;;  %v4251_v37 = vpop.permute.xlu2 %1914  ;;  %v4275_v6 = vadd.f32 %v898_v24, %v4114_v15 }
 0x240   : > { %5854 = vst [vmem:[#allocation17_spill] sm:$0xff] %v4251_v37 }
 0x241   : > { %5855 = vst [vmem:[#allocation18_spill] sm:$0xff] %v4275_v6 }
 0x247   : > { %1804 = vrot.lane.b32.xlu1 %v3944_v5, %s3751_s18 }
 0x24c   : > { %784 = vperm.xlu2 %3364, %v3974_v34  }
 0x24f   : > { %2174 = vrot.lane.b32.xlu1 %v3944_v5, %s5824_s23 }
 0x253   : > { %1432 = vrot.lane.b32.xlu0 %v3941_v62, %s3750_s17 }
 0x254   : > { %1430 = vrot.lane.b32.xlu2 %v3938_v55, %s3750_s17 }
 0x25b   : > { %2176 = vrot.lane.b32.xlu0 %v3949_v12, %s5824_s23  ;;  %v1570_v12 = vadd.f32 %v4080_v17, %v4145_v18 }
 0x25d   : > { %v1602_v20 = vmul.f32 0.2, %v1570_v12  ;;  %vm1586_vm9 = vcmp.gt.f32.partialorder %v1570_v12, 0.0 }
 0x25f   : > { %v4257_v34 = vpop.xlane.xlu2 %1276  ;;  %v1275_v8 = vpop.xlane.xlu1 %1274  ;;  %v1618_v37 = vsel %vm1586_vm9, %v1570_v12, %v1602_v20 }
 0x260   : > { %v1306_v32 = vsub.f32 %v4097_v42, %v1275_v8  ;;  %v1571_v42 = vadd.f32 %v4080_v17, %v1529_v60  ;;  %v4284_v18 = vadd.f32 %v1618_v37, %v4218_v53 }
 0x262   : > { %v1322_v44 = vmul.f32 1.442695, %v1306_v32  ;;  %5856 = vst [vmem:[#allocation19_spill] sm:$0xff] %v4284_v18  ;;  %v1603_v56 = vmul.f32 0.2, %v1571_v42  ;;  %vm1587_vm10 = vcmp.gt.f32.partialorder %v1571_v42, 0.0 }
 0x264   : > { %3378 = vpow2.f32 %v1322_v44  ;;  %v1619_v44 = vsel %vm1587_vm10, %v1571_v42, %v1603_v56 }
 0x265   : > { %v4295_v60 = vadd.f32 %v1619_v44, %v4194_v52 }
 0x267   : > { %v4259_v13 = vpop.xlane.xlu2 %1646  ;;  %v4261_v5 = vpop.xlane.xlu1 %2014  ;;  %5858 = vst [vmem:[#allocation21_spill] sm:$0xff] %v4295_v60 }
 0x26a   : > { %v4286_v22 = vpop.eup %3378 }
 0x26f   : > { %v4263_v7 = vpop.xlane.xlu2 %2016  ;;  %v4272_v21 = vpop.xlane.xlu1 %1278 }
 0x277   : > { %v4268_v39 = vpop.xlane.xlu2 %1280 }
 0x279   : > { %v4281_v8 = vpop.xlane.xlu1 %1284 }
 0x27d   : > { %932 = vmax.xlane.f32.xlu2 %v4275_v6 }
 0x27f   : > { %v4278_v1 = vpop.xlane.xlu2 %1648 }
 0x281   : > { %v4292_v24 = vpop.xlane.xlu1 %1652 }
 0x282   : > { %5857 = vst [vmem:[#allocation20_spill] sm:$0xff] %v4292_v24 }
 0x285   : > { %1354 = vadd.xlane.f32.xlu2 %v4286_v22  ;;  %1656 = vmax.xlane.f32.xlu0 %v4284_v18 }
 0x287   : > { %v4290_v15 = vpop.xlane.xlu2 %2018 }
 0x289   : > { %v4300_v37 = vpop.xlane.xlu1 %2022 }
 0x28a   : > { %5859 = vst [vmem:[#allocation22_spill] sm:$0xff] %v4300_v37 }
 0x28d   : > { %1658 = vmax.xlane.f32.xlu0 %v4295_v60 }
 0x28f   : > { %v4298_v20 = vpop.xlane.xlu2 %2020 }
 0x291   : > { %v4305_v12 = vpop.xlane.xlu1 %2024 }
 0x292   : > { %5861 = vst [vmem:[#allocation24_spill] sm:$0xff] %v4305_v12 }
 0x297   : > { %v4302_v32 = vpop.xlane.xlu2 %1282 }
 0x298   : > { %5860 = vst [vmem:[#allocation23_spill] sm:$0xff] %v4302_v32 }
 0x299   : > { %v4314_v56 = vpop.xlane.xlu1 %1288 }
 0x29a   : > { %v1645_v6 = vpop.xlane.xlu0 %1644  ;;  %5864 = vst [vmem:[#allocation27_spill] sm:$0xff] %v4314_v56 }
 0x29d   : > { %794 = vperm.xlu2 %3364, %v3980_v36  }
 0x29f   : > { %v4307_v18 = vpop.xlane.xlu2 %930 }
 0x2a0   : > { %5862 = vst [vmem:[#allocation25_spill] sm:$0xff] %v4307_v18 }
 0x2a1   : > { %1162 = vperm.xlu0 %3366, %v3998_v40  }
 0x2a2   : > { %v4316_v44 = vpop.xlane.xlu0 %1650 }
 0x2a5   : > { %1428 = vrot.lane.b32.xlu2 %v3935_v48, %s3750_s17 }
 0x2a7   : > { %v4312_v42 = vpop.xlane.xlu2 %1286 }
 0x2a8   : > { %5863 = vst [vmem:[#allocation26_spill] sm:$0xff] %v4312_v42 }
 0x2a9   : > { %1802 = vrot.lane.b32.xlu0 %v3941_v62, %s3751_s18 }
 0x2aa   : > { %v4323_v18 = vpop.xlane.xlu0 %928 }
 0x2ad   : > { %809 = vperm.xlu2 %3364, %v3998_v40  }
 0x2af   : > { %v785_v36 = vpop.permute.xlu2 %784 }
 0x2b0   : > { %v851_v60 = vadd.f32 %v4180_v26, %v785_v36 }
 0x2b1   : > { %v1895_v12 = vpop.permute.xlu1 %1894 }
 0x2b2   : > { %v883_v37 = vmul.f32 0.2, %v851_v60  ;;  %v1940_v24 = vadd.f32 %v4083_v19, %v1895_v12  ;;  %vm867_vm11 = vcmp.gt.f32.partialorder %v851_v60, 0.0  ;;  %v4330_v32 = vpop.xlane.xlu0 %1654 }
 0x2b3   : > { %5866 = vst [vmem:[#allocation29_spill] sm:$0xff] %v4330_v32 }
 0x2b4   : > { %v899_v42 = vsel %vm867_vm11, %v851_v60, %v883_v37  ;;  %v1972_v58 = vmul.f32 0.2, %v1940_v24  ;;  %vm1956_vm12 = vcmp.gt.f32.partialorder %v1940_v24, 0.0 }
 0x2b5   : > { %814 = vperm.xlu2 %3364, %v4004_v43   ;;  %v4327_v56 = vadd.f32 %v899_v42, %v4127_v49  ;;  %v1941_v49 = vadd.f32 %v4083_v19, %v4236_v46 }
 0x2b6   : > { %v1988_v36 = vsel %vm1956_vm12, %v1940_v24, %v1972_v58  ;;  %v1307_v58 = vsub.f32 %v4094_v35, %v4257_v34 }
 0x2b7   : > { %5865 = vst [vmem:[#allocation28_spill] sm:$0xff] %v4327_v56  ;;  %934 = vmax.xlane.f32.xlu1 %v4327_v56  ;;  %v4333_v12 = vadd.f32 %v1988_v36, %v4218_v53  ;;  %v1431_v37 = vpop.permute.xlu2 %1430  ;;  %v1973_v42 = vmul.f32 0.2, %v1941_v49  ;;  %vm1957_vm13 = vcmp.gt.f32.partialorder %v1941_v49, 0.0  ;;  %v1677_v36 = vsub.f32 %v4105_v2, %v4259_v13 }
 0x2b8   : > { %v1324_v56 = vmul.f32 1.442695, %v1307_v58 }
 0x2b9   : > { %v1805_v50 = vpop.permute.xlu1 %1804  ;;  %5867 = vst [vmem:[#allocation30_spill] sm:$0xff] %v4333_v12  ;;  %v1989_v24 = vsel %vm1957_vm13, %v1941_v49, %v1973_v42  ;;  %v1694_v46 = vmul.f32 1.442695, %v1677_v36  ;;  %v431_v42 = vld [vmem:[%s4070_s30 + $0x40] sm:$0xff] }
 0x2ba   : > { %1823 = vmatpush.bf16.msrb.mxu0 %v1805_v50  ;;  %v4344_v32 = vadd.f32 %v1989_v24, %v4194_v52  ;;  %3380 = vpow2.f32 %v1324_v56 }
 0x2bb   : > { %3382 = vpow2.f32 %v1694_v46 }
 0x2bd   : > { %3369 = vset.pattern.permute.xlu2 %v5868_v25 }
 0x2bf   : > { %2026 = vmax.xlane.f32.xlu1 %v4333_v12 }
 0x2c0   : > { %v4351_v34 = vpop.eup %3380 }
 0x2c1   : > { %v2175_v12 = vpop.permute.xlu1 %2174  ;;  %v4354_v2 = vpop.eup %3382 }
 0x2c5   : > { %v1433_v60 = vpop.permute.xlu0 %1432 }
 0x2c6   : > { %1454 = vmatpush.bf16.msra.mxu3 %v1433_v60  ;;  %v2046_v60 = vsub.f32 %v4108_v4, %v4261_v5  ;;  %v1676_v4 = vsub.f32 %v4203_v31, %v1645_v6 }
 0x2c8   : > { %v2062_v35 = vmul.f32 1.442695, %v2046_v60 }
 0x2ca   : > { %1455 = vmatpush.bf16.msra.mxu3 %v1431_v37  ;;  %3384 = vpow2.f32 %v2062_v35 }
 0x2cd   : > { %v2177_v50 = vpop.permute.xlu0 %2176 }
 0x2ce   : > { %2192 = vmatpush.bf16.msrb.mxu1 %v2177_v50  ;;  %v3218_v50 = vadd.f32 -1.0, %v431_v42 }
 0x2d0   : > { %v4357_v13 = vpop.eup %3384  ;;  %v4382_v46 = vmul.f32 1e+30, %v3218_v50 }
 0x2d2   : > { %2193 = vmatpush.bf16.msrb.mxu1 %v2175_v12 }
 0x2d3   : > { %2028 = vmax.xlane.f32.xlu0 %v4344_v32 }
 0x2d8   : > { %2172 = vrot.lane.b32.xlu1 %v3941_v62, %s5824_s23  ;;  %v1692_v62 = vmul.f32 1.442695, %v1676_v4 }
 0x2da   : > { %3386 = vpow2.f32 %v1692_v62  ;;  %v2047_v62 = vsub.f32 %v4119_v27, %v4263_v7 }
 0x2db   : > { %1356 = vadd.xlane.f32.xlu0 %v4351_v34 }
 0x2de   : > { %1726 = vadd.xlane.f32.xlu2 %v4354_v2 }
 0x2e0   : > { %v4369_v49 = vpop.eup %3386 }
 0x2e3   : > { %2094 = vadd.xlane.f32.xlu0 %v4357_v13 }
 0x2f0   : > { %v4360_v56 = vpop.xlane.xlu2 %932 }
 0x2f6   : > { %1800 = vrot.lane.b32.xlu2 %v3938_v55, %s3751_s18 }
 0x2f8   : > { %v1355_v5 = vpop.xlane.xlu2 %1354  ;;  %v4371_v37 = vpop.xlane.xlu0 %1656 }
 0x2fe   : > { %1426 = vrot.lane.b32.xlu2 %v3932_v41, %s3750_s17 }
 0x300   : > { %v4367_v12 = vpop.permute.xlu2 %794  ;;  %v4376_v6 = vpop.xlane.xlu0 %1658 }
 0x302   : > { %1724 = vadd.xlane.f32.xlu1 %v4369_v49 }
 0x306   : > { %2170 = vrot.lane.b32.xlu2 %v3938_v55, %s5824_s23 }
 0x308   : > { %v1429_v31 = vpop.permute.xlu2 %1428 }
 0x309   : > { %1456 = vmatpush.bf16.msra.mxu3 %v1429_v31 }
 0x30e   : > { %1798 = vrot.lane.b32.xlu2 %v3935_v48, %s3751_s18 }
 0x310   : > { %v4397_v31 = vpop.permute.xlu2 %809 }
 0x313   : > { %v1163_v58 = vpop.permute.xlu0 %1162 }
 0x314   : > { %v1202_v24 = vadd.f32 %v4077_v16, %v1163_v58 }
 0x316   : > { %v1234_v36 = vmul.f32 0.2, %v1202_v24  ;;  %vm1218_vm14 = vcmp.gt.f32.partialorder %v1202_v24, 0.0 }
 0x318   : > { %v1250_v60 = vsel %vm1218_vm14, %v1202_v24, %v1234_v36  ;;  %v5870_v36 = vmov 7  }
 0x319   : > { %v4385_v35 = vadd.f32 %v1250_v60, %v4382_v46 }
 0x31b   : > { %5869 = vst [vmem:[#allocation31_spill] sm:$0xff] %v4385_v35  ;;  %1902 = vperm.xlu1 %3365, %v3998_v40   ;;  %1290 = vmax.xlane.f32.xlu0 %v4385_v35  ;;  %v1803_v55 = vpop.permute.xlu0 %1802  ;;  %v2064_v40 = vmul.f32 1.442695, %v2047_v62 }
 0x31c   : > { %1824 = vmatpush.bf16.msrb.mxu0 %v1803_v55 }
 0x31d   : > { %3388 = vpow2.f32 %v2064_v40 }
 0x323   : > { %1922 = vperm.xlu1 %3365, %v4037_v57   ;;  %v4408_v24 = vpop.eup %3388 }
 0x32a   : > { %v4393_v4 = vpop.xlane.xlu1 %934 }
 0x32b   : > { %3367 = vset.pattern.permute.xlu1 %v5846_v23  ;;  %v4404_v23 = vpop.permute.xlu2 %814 }
 0x32f   : > { %1174 = vperm.xlu0 %3366, %v4018_v51  }
 0x332   : > { %v4400_v42 = vpop.xlane.xlu1 %2026 }
 0x337   : > { %1178 = vperm.xlu0 %3366, %v4027_v54  }
 0x33f   : > { %1182 = vperm.xlu0 %3366, %v4037_v57  }
 0x346   : > { %v4406_v58 = vpop.xlane.xlu0 %2028 }
 0x347   : > { %2168 = vrot.lane.b32.xlu0 %v3935_v48, %s5824_s23 }
 0x34a   : > { %v2173_v50 = vpop.permute.xlu1 %2172 }
 0x34b   : > { %2194 = vmatpush.bf16.msrb.mxu1 %v2173_v50 }
 0x34d   : > { %2096 = vadd.xlane.f32.xlu1 %v4408_v24 }
 0x34e   : > { %v1357_v7 = vpop.xlane.xlu0 %1356 }
 0x34f   : > { %1190 = vperm.xlu0 %3366, %v4050_v61   ;;  %3390 = vrcp.f32 %v1357_v7 }
 0x350   : > { %3392 = vrcp.f32 %v1355_v5 }
 0x351   : > { %v4412_v27 = vpop.xlane.xlu2 %1726 }
 0x355   : > { %v3391_v60 = vpop.eup %3390 }
 0x356   : > { %v3393_v55 = vpop.eup %3392  ;;  %v1403_v62 = vmul.f32 %v3391_v60, %v4351_v34 }
 0x357   : > { %3368 = vset.pattern.permute.xlu0 %v5870_v36  ;;  %v1402_v50 = vmul.f32 %v3393_v55, %v4286_v22  ;;  %v1308_v36 = vsub.f32 %v4122_v30, %v4272_v21  ;;  %v432_v21 = vld [vmem:[%s4070_s30 + $0x48] sm:$0xff] }
 0x358   : > { %1906 = vperm.xlu0 %3368, %v4004_v43   ;;  %v3219_v55 = vadd.f32 -1.0, %v432_v21 }
 0x359   : > { %v1801_v48 = vpop.permute.xlu2 %1800  ;;  %v1418_v35 = vpack.c.bf16 %v1403_v62, %v1402_v50  ;;  %v1326_v34 = vmul.f32 1.442695, %v1308_v36 }
 0x35a   : > { %1825 = vmatpush.bf16.msrb.mxu0 %v1801_v48  ;;  %v1573_v48 = vadd.f32 %v4080_v17, %v4255_v63  ;;  %v852_v63 = vadd.f32 %v4180_v26, %v4112_v0 }
 0x35b   : > { %3394 = vpow2.f32 %v1326_v34 }
 0x35c   : > { %vm1589_vm0 = vcmp.gt.f32.partialorder %v1573_v48, 0.0  ;;  %vm868_vm1 = vcmp.gt.f32.partialorder %v852_v63, 0.0 }
 0x361   : > { %v1427_v40 = vpop.permute.xlu2 %1426  ;;  %v4427_v22 = vpop.eup %3394 }
 0x362   : > { %1457 = vmatpush.bf16.msra.mxu3 %v1427_v40 }
 0x365   : > { %1458 = vmatmul.bf16.vlgmr.msra.gmra.mxu3 %v1418_v35 }
 0x366   : > { %1166 = vperm.xlu1 %3367, %v4004_v43   ;;  %v1572_v43 = vadd.f32 %v4080_v17, %v4245_v33  ;;  %v4437_v33 = vmul.f32 1e+30, %v3219_v55 }
 0x368   : > { %v1604_v35 = vmul.f32 0.2, %v1572_v43  ;;  %vm1588_vm15 = vcmp.gt.f32.partialorder %v1572_v43, 0.0 }
 0x369   : > { %v2171_v7 = vpop.permute.xlu2 %2170 }
 0x36a   : > { %2195 = vmatpush.bf16.msrb.mxu1 %v2171_v7  ;;  %v1620_v30 = vsel %vm1588_vm15, %v1572_v43, %v1604_v35  ;;  %v4442_v7 = vpop.xlane.xlu0 %2094 }
 0x36b   : > { %v4434_v60 = vadd.f32 %v1620_v30, %v4382_v46 }
 0x36d   : > { %5871 = vst [vmem:[#allocation32_spill] sm:$0xff] %v4434_v60 }
 0x36e   : > { %1186 = vperm.xlu1 %3367, %v4044_v59  }
 0x371   : > { %v1799_v5 = vpop.permute.xlu2 %1798 }
 0x372   : > { %1826 = vmatpush.bf16.msrb.mxu0 %v1799_v5  ;;  %v884_v5 = vmul.f32 0.2, %v852_v63 }
 0x374   : > { %v900_v35 = vsel %vm868_vm1, %v852_v63, %v884_v5 }
 0x375   : > { %v1725_v40 = vpop.xlane.xlu1 %1724 }
 0x376   : > { %1796 = vrot.lane.b32.xlu1 %v3932_v41, %s3751_s18  ;;  %3396 = vrcp.f32 %v1725_v40 }
 0x377   : > { %3370 = vset.pattern.permute.xlu1 %v5868_v25  ;;  %v1605_v25 = vmul.f32 0.2, %v1573_v48  ;;  %3398 = vrcp.f32 %v4412_v27 }
 0x379   : > { %v1621_v62 = vsel %vm1589_vm0, %v1573_v48, %v1605_v25  ;;  %v4451_v48 = vadd.f32 %v900_v35, %v4148_v3 }
 0x37a   : > { %v4440_v50 = vadd.f32 %v1621_v62, %v4437_v33 }
 0x37b   : > { %5874 = vst [vmem:[#allocation35_spill] sm:$0xff] %v4451_v48 }
 0x37c   : > { %5872 = vst [vmem:[#allocation33_spill] sm:$0xff] %v4440_v50 }
 0x382   : > { %1358 = vadd.xlane.f32.xlu0 %v4427_v22 }
 0x38a   : > { %1660 = vmax.xlane.f32.xlu0 %v4434_v60 }
 0x38d   : > { %v1903_v36 = vpop.permute.xlu1 %1902 }
 0x38e   : > { %v4447_v34 = vpop.xlane.xlu0 %1290  ;;  %v1942_v43 = vadd.f32 %v4083_v19, %v1903_v36 }
 0x38f   : > { %5873 = vst [vmem:[#allocation34_spill] sm:$0xff] %v4447_v34 }
 0x390   : > { %v1974_v30 = vmul.f32 0.2, %v1942_v43  ;;  %vm1958_vm2 = vcmp.gt.f32.partialorder %v1942_v43, 0.0 }
 0x392   : > { %1662 = vmax.xlane.f32.xlu0 %v4440_v50  ;;  %v1990_v55 = vsel %vm1958_vm2, %v1942_v43, %v1974_v30  ;;  %v1309_v50 = vsub.f32 %v4134_v14, %v4268_v39  ;;  %v1678_v14 = vsub.f32 %v4152_v10, %v4278_v1  ;;  %v2049_v10 = vsub.f32 %v4175_v45, %v4298_v20 }
 0x393   : > { %v4455_v25 = vadd.f32 %v1990_v55, %v4382_v46  ;;  %v1311_v20 = vsub.f32 %v4140_v29, %v4281_v8  ;;  %v853_v8 = vadd.f32 %v4180_v26, %v4367_v12 }
 0x394   : > { %v2068_v1 = vmul.f32 1.442695, %v2049_v10 }
 0x395   : > { %v4465_v63 = vpop.permute.xlu1 %1922  ;;  %vm869_vm6 = vcmp.gt.f32.partialorder %v853_v8, 0.0 }
 0x3a0   : > { %936 = vmax.xlane.f32.xlu1 %v4451_v48 }
 0x3a1   : > { %v1175_v21 = vpop.permute.xlu0 %1174 }
 0x3a8   : > { %2030 = vmax.xlane.f32.xlu1 %v4455_v25 }
 0x3a9   : > { %v4458_v0 = vpop.permute.xlu0 %1178 }
 0x3b1   : > { %v4460_v62 = vpop.permute.xlu0 %1182 }
 0x3b9   : > { %v2169_v36 = vpop.permute.xlu0 %2168 }
 0x3ba   : > { %2196 = vmatpush.bf16.msrb.mxu1 %v2169_v36  ;;  %v5877_v36 = vmov 4  }
 0x3c0   : > { %v4469_v55 = vpop.xlane.xlu1 %2096 }
 0x3c1   : > { %1548 = vperm.xlu1 %3370, %v4027_v54   ;;  %v4463_v3 = vpop.permute.xlu0 %1190 }
 0x3c2   : > { %5875 = vst [vmem:[#allocation36_spill] sm:$0xff] %v4463_v3 }
 0x3c9   : > { %1560 = vperm.xlu1 %3370, %v4050_v61  }
 0x3ca   : > { %v1907_v5 = vpop.permute.xlu0 %1906 }
 0x3cb   : > { %v1943_v43 = vadd.f32 %v4083_v19, %v1907_v5  ;;  %v1328_v5 = vmul.f32 1.442695, %v1309_v50 }
 0x3cd   : > { %v1975_v35 = vmul.f32 0.2, %v1943_v43  ;;  %vm1959_vm3 = vcmp.gt.f32.partialorder %v1943_v43, 0.0  ;;  %3400 = vpow2.f32 %v1328_v5 }
 0x3cf   : > { %v1991_v30 = vsel %vm1959_vm3, %v1943_v43, %v1975_v35 }
 0x3d0   : > { %v4472_v60 = vadd.f32 %v1991_v30, %v4437_v33 }
 0x3d1   : > { %3372 = vset.pattern.permute.xlu1 %v5877_v36 }
 0x3d2   : > { %5876 = vst [vmem:[#allocation37_spill] sm:$0xff] %v4472_v60  ;;  %2032 = vmax.xlane.f32.xlu0 %v4472_v60  ;;  %v3397_v60 = vpop.eup %3396 }
 0x3d3   : > { %v3399_v39 = vpop.eup %3398  ;;  %v1772_v40 = vmul.f32 %v3397_v60, %v4369_v49  ;;  %v1205_v60 = vadd.f32 %v4077_v16, %v1175_v21 }
 0x3d4   : > { %v4490_v50 = vpop.eup %3400 }
 0x3d5   : > { %vm1221_vm5 = vcmp.gt.f32.partialorder %v1205_v60, 0.0 }
 0x3d8   : > { %v1167_v34 = vpop.permute.xlu1 %1166 }
 0x3d9   : > { %v1203_v3 = vadd.f32 %v4077_v16, %v1167_v34  ;;  %v1696_v34 = vmul.f32 1.442695, %v1678_v14 }
 0x3db   : > { %v1235_v48 = vmul.f32 0.2, %v1203_v3  ;;  %vm1219_vm4 = vcmp.gt.f32.partialorder %v1203_v3, 0.0  ;;  %3402 = vpow2.f32 %v1696_v34  ;;  %v885_v34 = vmul.f32 0.2, %v853_v8 }
 0x3dc   : > { %3404 = vpow2.f32 %v2068_v1 }
 0x3dd   : > { %v1251_v43 = vsel %vm1219_vm4, %v1203_v3, %v1235_v48  ;;  %v1773_v48 = vmul.f32 %v3399_v39, %v4354_v2  ;;  %v434_v2 = vld [vmem:[%s4070_s30 + $0x58] sm:$0xff] }
 0x3de   : > { %v4480_v35 = vadd.f32 %v1251_v43, %v4437_v33  ;;  %v1237_v43 = vmul.f32 0.2, %v1205_v60  ;;  %v3221_v45 = vadd.f32 -1.0, %v434_v2 }
 0x3df   : > { %v1788_v3 = vpack.c.bf16 %v1773_v48, %v1772_v40  ;;  %v1332_v40 = vmul.f32 1.442695, %v1311_v20 }
 0x3e0   : > { %1292 = vmax.xlane.f32.xlu2 %v4480_v35  ;;  %v4484_v30 = vpop.permute.xlu1 %1186  ;;  %v1253_v14 = vsel %vm1221_vm5, %v1205_v60, %v1237_v43  ;;  %v4509_v39 = vmul.f32 1e+30, %v3221_v45  ;;  %v1206_v43 = vadd.f32 %v4077_v16, %v4458_v0 }
 0x3e1   : > { %v4497_v49 = vpop.eup %3402  ;;  %3406 = vpow2.f32 %v1332_v40 }
 0x3e2   : > { %v4503_v5 = vpop.eup %3404  ;;  %v4514_v21 = vadd.f32 %v1253_v14, %v4509_v39  ;;  %v435_v14 = vld [vmem:[%s4070_s30 + $0x60] sm:$0xff]  ;;  %vm1222_vm8 = vcmp.gt.f32.partialorder %v1206_v43, 0.0 }
 0x3e6   : > { %1910 = vperm.xlu0 %3368, %v4011_v47  }
 0x3e7   : > { %v4519_v29 = vpop.eup %3406 }
 0x3e8   : > { %1360 = vadd.xlane.f32.xlu2 %v4490_v50  ;;  %v1797_v27 = vpop.permute.xlu1 %1796 }
 0x3e9   : > { %1827 = vmatpush.bf16.msrb.mxu0 %v1797_v27  ;;  %v901_v27 = vsel %vm869_vm6, %v853_v8, %v885_v34 }
 0x3ec   : > { %1828 = vmatmul.bf16.vlgmr.msrb.gmra.mxu0 %v1788_v3  ;;  %v4527_v3 = vadd.f32 %v901_v27, %v4136_v9  ;;  %v1238_v27 = vmul.f32 0.2, %v1206_v43 }
 0x3ee   : > { %1918 = vperm.xlu0 %3368, %v4027_v54  }
 0x3f3   : > { %1728 = vadd.xlane.f32.xlu1 %v4497_v49 }
 0x3f6   : > { %1926 = vperm.xlu0 %3368, %v4044_v59  }
 0x3fb   : > { %2100 = vadd.xlane.f32.xlu1 %v4503_v5 }
 0x3fe   : > { %1930 = vperm.xlu0 %3368, %v4050_v61  }
 0x400   : > { %2166 = vrot.lane.b32.xlu2 %v3932_v41, %s5824_s23  ;;  %v2048_v41 = vsub.f32 %v4165_v28, %v4290_v15  ;;  %v433_v15 = vld [vmem:[%s4070_s30 + $0x50] sm:$0xff] }
 0x401   : > { %v3220_v60 = vadd.f32 -1.0, %v433_v15 }
 0x402   : > { %v2066_v48 = vmul.f32 1.442695, %v2048_v41 }
 0x403   : > { %1296 = vmax.xlane.f32.xlu1 %v4514_v21  ;;  %v4552_v40 = vmul.f32 1e+30, %v3220_v60 }
 0x404   : > { %3408 = vpow2.f32 %v2066_v48 }
 0x405   : > { %3410 = vrcp.f32 %v4469_v55  ;;  %5880 = vst [vmem:[#allocation40_spill] sm:$0xff] %v4552_v40 }
 0x406   : > { %3371 = vset.pattern.permute.xlu0 %v5877_v36  ;;  %v1359_v36 = vpop.xlane.xlu0 %1358  ;;  %3412 = vrcp.f32 %v4442_v7  ;;  %v3222_v7 = vadd.f32 -1.0, %v435_v14  ;;  %v1254_v14 = vsel %vm1222_vm8, %v1206_v43, %v1238_v27  ;;  %v5883_v27 = vld [vmem:[#allocation16_spill] sm:$0xff] }
 0x407   : > { %804 = vperm.xlu0 %3371, %v3991_v38   ;;  %3414 = vrcp.f32 %v1359_v36 }
 0x40a   : > { %v4530_v38 = vpop.eup %3408 }
 0x40b   : > { %1364 = vadd.xlane.f32.xlu1 %v4519_v29  ;;  %v3411_v8 = vpop.eup %3410 }
 0x40c   : > { %v3413_v41 = vpop.eup %3412  ;;  %v2143_v0 = vmul.f32 %v3411_v8, %v4408_v24 }
 0x40d   : > { %v3415_v48 = vpop.eup %3414 }
 0x40e   : > { %v4533_v12 = vpop.xlane.xlu0 %1660 }
 0x40f   : > { %5878 = vst [vmem:[#allocation38_spill] sm:$0xff] %v4533_v12 }
 0x416   : > { %v4536_v10 = vpop.xlane.xlu0 %1662 }
 0x429   : > { %938 = vmax.xlane.f32.xlu2 %v4527_v3 }
 0x431   : > { %2098 = vadd.xlane.f32.xlu0 %v4530_v38 }
 0x441   : > { %1540 = vperm.xlu2 %3369, %v4011_v47  }
 0x445   : > { %v4539_v28 = vpop.xlane.xlu0 %2032 }
 0x446   : > { %5879 = vst [vmem:[#allocation39_spill] sm:$0xff] %v4539_v28 }
 0x449   : > { %1544 = vperm.xlu2 %3369, %v4018_v51  }
 0x451   : > { %1552 = vperm.xlu2 %3369, %v4037_v57  }
 0x453   : > { %v4542_v9 = vpop.xlane.xlu2 %1292 }
 0x458   : > { %v1911_v1 = vpop.permute.xlu0 %1910 }
 0x459   : > { %v1944_v2 = vadd.f32 %v4083_v19, %v1911_v1  ;;  %1556 = vperm.xlu2 %3369, %v4044_v59   ;;  %v4561_v1 = vmul.f32 1e+30, %v3222_v7 }
 0x45b   : > { %v1976_v45 = vmul.f32 0.2, %v1944_v2  ;;  %v1361_v20 = vpop.xlane.xlu2 %1360  ;;  %vm1960_vm7 = vcmp.gt.f32.partialorder %v1944_v2, 0.0 }
 0x45c   : > { %3416 = vrcp.f32 %v1361_v20  ;;  %v2142_v20 = vmul.f32 %v3413_v41, %v4357_v13  ;;  %v1679_v13 = vsub.f32 %v4216_v11, %v4316_v44  ;;  %v5885_v44 = vld [vmem:[#allocation23_spill] sm:$0xff] }
 0x45d   : > { %v1992_v55 = vsel %vm1960_vm7, %v1944_v2, %v1976_v45  ;;  %v1404_v2 = vmul.f32 %v3415_v48, %v4427_v22  ;;  %v4574_v22 = vpop.xlane.xlu1 %936  ;;  %v1204_v48 = vadd.f32 %v4077_v16, %v5883_v27 }
 0x45e   : > { %v4555_v34 = vadd.f32 %v1992_v55, %v4552_v40  ;;  %v2158_v28 = vpack.c.bf16 %v2143_v0, %v2142_v20 }
 0x45f   : > { %v1236_v11 = vmul.f32 0.2, %v1204_v48  ;;  %vm1220_vm10 = vcmp.gt.f32.partialorder %v1204_v48, 0.0 }
 0x460   : > { %5881 = vst [vmem:[#allocation41_spill] sm:$0xff] %v4555_v34  ;;  %2034 = vmax.xlane.f32.xlu0 %v4555_v34  ;;  %v4558_v36 = vpop.permute.xlu0 %1918  ;;  %v4567_v34 = vadd.f32 %v1254_v14, %v4561_v1 }
 0x462   : > { %v3417_v15 = vpop.eup %3416 }
 0x463   : > { %v2167_v60 = vpop.permute.xlu2 %2166  ;;  %v1405_v45 = vmul.f32 %v3417_v15, %v4490_v50  ;;  %v1698_v50 = vmul.f32 1.442695, %v1679_v13 }
 0x464   : > { %2197 = vmatpush.bf16.msrb.mxu1 %v2167_v60 }
 0x465   : > { %v1419_v55 = vpack.c.bf16 %v1405_v45, %v1404_v2  ;;  %3418 = vpow2.f32 %v1698_v50  ;;  %v4579_v41 = vpop.xlane.xlu1 %2030  ;;  %v5886_v2 = vld [vmem:[#allocation10_spill] sm:$0xff] }
 0x466   : > { %v1310_v45 = vsub.f32 %v5886_v2, %v5885_v44  ;;  %v5889_v2 = vld [vmem:[#allocation17_spill] sm:$0xff] }
 0x467   : > { %1463 = vmatmul.bf16.gmra.mxu3 %v1419_v55  ;;  %2198 = vmatmul.bf16.vlgmr.msrb.gmra.mxu1 %v2158_v28  ;;  %v5888_v55 = vld [vmem:[#allocation7_spill] sm:$0xff] }
 0x468   : > { %1298 = vmax.xlane.f32.xlu0 %v4567_v34  ;;  %v4570_v24 = vpop.permute.xlu0 %1926  ;;  %v1330_v14 = vmul.f32 1.442695, %v1310_v45  ;;  %v854_v13 = vadd.f32 %v4180_v26, %v5888_v55  ;;  %v1945_v45 = vadd.f32 %v4083_v19, %v5889_v2 }
 0x46a   : > { %3420 = vpow2.f32 %v1330_v14  ;;  %vm870_vm11 = vcmp.gt.f32.partialorder %v854_v13, 0.0  ;;  %vm1961_vm13 = vcmp.gt.f32.partialorder %v1945_v45, 0.0 }
 0x46b   : > { %v4587_v60 = vpop.eup %3418 }
 0x46d   : > { %v4593_v20 = vpop.permute.xlu1 %1548 }
 0x470   : > { %v4572_v8 = vpop.permute.xlu0 %1930 }
 0x471   : > { %5882 = vst [vmem:[#allocation42_spill] sm:$0xff] %v4572_v8  ;;  %v5894_v8 = vld [vmem:[#allocation15_spill] sm:$0xff] }
 0x475   : > { %v4603_v50 = vpop.permute.xlu1 %1560 }
 0x479   : > { %v805_v43 = vpop.permute.xlu0 %804 }
 0x47a   : > { %v855_v7 = vadd.f32 %v4180_v26, %v805_v43  ;;  %v4605_v43 = vpop.eup %3420 }
 0x47c   : > { %vm871_vm9 = vcmp.gt.f32.partialorder %v855_v7, 0.0  ;;  %v887_v28 = vmul.f32 0.2, %v855_v7  ;;  %824 = vperm.xlu0 %3371, %v4018_v51   ;;  %v1252_v51 = vsel %vm1220_vm10, %v1204_v48, %v1236_v11 }
 0x47e   : > { %v903_v0 = vsel %vm871_vm9, %v855_v7, %v887_v28  ;;  %v886_v7 = vmul.f32 0.2, %v854_v13  ;;  %v4608_v28 = vpop.xlane.xlu1 %1728 }
 0x47f   : > { %v4585_v15 = vadd.f32 %v903_v0, %v4194_v52  ;;  %v4597_v52 = vadd.f32 %v1252_v51, %v4552_v40  ;;  %v5890_v51 = vld [vmem:[#allocation19_spill] sm:$0xff] }
 0x480   : > { %v1682_v14 = vsub.f32 %v5890_v51, %v4371_v37  ;;  %v5893_v51 = vld [vmem:[#allocation29_spill] sm:$0xff] }
 0x481   : > { %5884 = vst [vmem:[#allocation16_spill] sm:$0xff] %v4585_v15  ;;  %942 = vmax.xlane.f32.xlu1 %v4585_v15 }
 0x482   : > { %1730 = vadd.xlane.f32.xlu2 %v4587_v60  ;;  %5887 = vst [vmem:[#allocation23_spill] sm:$0xff] %v4597_v52  ;;  %v1704_v15 = vmul.f32 1.442695, %v1682_v14  ;;  %v1315_v14 = vsub.f32 %v4480_v35, %v4542_v9  ;;  %v5896_v35 = vld [vmem:[#allocation25_spill] sm:$0xff]  ;;  %v5897_v9 = vld [vmem:[#allocation12_spill] sm:$0xff] }
 0x484   : > { %834 = vperm.xlu0 %3371, %v4037_v57   ;;  %v902_v57 = vsel %vm870_vm11, %v854_v13, %v886_v7  ;;  %v1977_v7 = vmul.f32 0.2, %v1945_v45 }
 0x485   : > { %v4611_v27 = vadd.f32 %v902_v57, %v4218_v53 }
 0x486   : > { %v2101_v48 = vpop.xlane.xlu1 %2100 }
 0x487   : > { %3422 = vrcp.f32 %v2101_v48 }
 0x48a   : > { %1294 = vmax.xlane.f32.xlu2 %v4597_v52 }
 0x48c   : > { %839 = vperm.xlu0 %3371, %v4044_v59  }
 0x48d   : > { %v3423_v55 = vpop.eup %3422 }
 0x48e   : > { %v2145_v37 = vmul.f32 %v3423_v55, %v4503_v5 }
 0x492   : > { %1362 = vadd.xlane.f32.xlu2 %v4605_v43 }
 0x49a   : > { %940 = vmax.xlane.f32.xlu2 %v4611_v27 }
 0x49c   : > { %v4614_v59 = vpop.xlane.xlu2 %938 }
 0x4a4   : > { %v1541_v0 = vpop.permute.xlu2 %1540  ;;  %v2099_v11 = vpop.xlane.xlu0 %2098 }
 0x4a5   : > { %v1574_v44 = vadd.f32 %v4080_v17, %v1541_v0  ;;  %3424 = vrcp.f32 %v2099_v11  ;;  %v5892_v0 = vld [vmem:[#allocation14_spill] sm:$0xff] }
 0x4a6   : > { %v960_v11 = vsub.f32 %v5892_v0, %v4323_v18  ;;  %3426 = vpow2.f32 %v1704_v15  ;;  %v961_v15 = vsub.f32 %v5897_v9, %v5896_v35 }
 0x4a7   : > { %vm1590_vm12 = vcmp.gt.f32.partialorder %v1574_v44, 0.0  ;;  %v1606_v53 = vmul.f32 0.2, %v1574_v44 }
 0x4a8   : > { %v976_v0 = vmul.f32 1.442695, %v960_v11  ;;  %v5900_v11 = vld [vmem:[#allocation6_spill] sm:$0xff] }
 0x4a9   : > { %v1622_v13 = vsel %vm1590_vm12, %v1574_v44, %v1606_v53  ;;  %v1681_v44 = vsub.f32 %v5894_v8, %v5893_v51  ;;  %v1340_v8 = vmul.f32 1.442695, %v1315_v14  ;;  %v5902_v14 = vld [vmem:[#allocation22_spill] sm:$0xff] }
 0x4aa   : > { %v4622_v57 = vadd.f32 %v1622_v13, %v4552_v40  ;;  %v1993_v40 = vsel %vm1961_vm13, %v1945_v45, %v1977_v7  ;;  %3428 = vpow2.f32 %v976_v0 }
 0x4ab   : > { %v3425_v48 = vpop.eup %3424 }
 0x4ac   : > { %5891 = vst [vmem:[#allocation10_spill] sm:$0xff] %v4622_v57  ;;  %1664 = vmax.xlane.f32.xlu2 %v4622_v57  ;;  %v1545_v2 = vpop.permute.xlu2 %1544  ;;  %v2144_v12 = vmul.f32 %v3425_v48, %v4530_v38  ;;  %v1702_v57 = vmul.f32 1.442695, %v1681_v44  ;;  %v4635_v38 = vadd.f32 %v1993_v40, %v4509_v39  ;;  %v856_v40 = vadd.f32 %v4180_v26, %v4397_v31 }
 0x4ad   : > { %v1575_v53 = vadd.f32 %v4080_v17, %v1545_v2  ;;  %v1576_v31 = vadd.f32 %v4080_v17, %v4593_v20  ;;  %v1946_v20 = vadd.f32 %v4083_v19, %v4558_v36 }
 0x4ae   : > { %v2159_v13 = vpack.c.bf16 %v2145_v37, %v2144_v12  ;;  %v4642_v12 = vpop.eup %3426  ;;  %3430 = vpow2.f32 %v1702_v57  ;;  %v888_v7 = vmul.f32 0.2, %v856_v40  ;;  %vm872_vm15 = vcmp.gt.f32.partialorder %v856_v40, 0.0  ;;  %v5899_v57 = vld [vmem:[#allocation20_spill] sm:$0xff] }
 0x4af   : > { %vm1591_vm14 = vcmp.gt.f32.partialorder %v1575_v53, 0.0  ;;  %v1607_v18 = vmul.f32 0.2, %v1575_v53  ;;  %5895 = vst [vmem:[#allocation7_spill] sm:$0xff] %v4642_v12  ;;  %3432 = vpow2.f32 %v1340_v8  ;;  %v1680_v2 = vsub.f32 %v5900_v11, %v5899_v57 }
 0x4b0   : > { %2203 = vmatmul.bf16.gmra.mxu1 %v2159_v13  ;;  %v4649_v45 = vpop.eup %3428  ;;  %v904_v37 = vsel %vm872_vm15, %v856_v40, %v888_v7  ;;  %v1608_v13 = vmul.f32 0.2, %v1576_v31  ;;  %vm1592_vm0 = vcmp.gt.f32.partialorder %v1576_v31, 0.0  ;;  %vm1962_vm1 = vcmp.gt.f32.partialorder %v1946_v20, 0.0  ;;  %v5904_v40 = vld [vmem:[#allocation24_spill] sm:$0xff] }
 0x4b1   : > { %v1623_v52 = vsel %vm1591_vm14, %v1575_v53, %v1607_v18  ;;  %v1700_v51 = vmul.f32 1.442695, %v1680_v2  ;;  %v4663_v44 = vadd.f32 %v904_v37, %v4382_v46  ;;  %v5903_v18 = vld [vmem:[#allocation8_spill] sm:$0xff]  ;;  %v436_v37 = vld [vmem:[%s4070_s30 + $0x68] sm:$0xff] }
 0x4b2   : > { %v4638_v5 = vadd.f32 %v1623_v52, %v4509_v39  ;;  %v978_v52 = vmul.f32 1.442695, %v961_v15  ;;  %v2050_v0 = vsub.f32 %v5903_v18, %v5902_v14  ;;  %v1624_v8 = vsel %vm1592_vm0, %v1576_v31, %v1608_v13 }
 0x4b3   : > { %5901 = vst [vmem:[#allocation19_spill] sm:$0xff] %v4663_v44  ;;  %v4674_v46 = vadd.f32 %v1624_v8, %v4561_v1  ;;  %v1978_v15 = vmul.f32 0.2, %v1946_v20  ;;  %v1207_v31 = vadd.f32 %v4077_v16, %v4460_v62  ;;  %v3223_v18 = vadd.f32 -1.0, %v436_v37 }
 0x4b4   : > { %2036 = vmax.xlane.f32.xlu2 %v4635_v38  ;;  %1666 = vmax.xlane.f32.xlu1 %v4638_v5  ;;  %v4651_v55 = vpop.eup %3430  ;;  %3434 = vpow2.f32 %v978_v52  ;;  %v2070_v35 = vmul.f32 1.442695, %v2050_v0  ;;  %v5905_v52 = vld [vmem:[#allocation9_spill] sm:$0xff]  ;;  %v5906_v0 = vld [vmem:[#allocation26_spill] sm:$0xff]  ;;  %v1553_v62 = vpop.permute.xlu2 %1552 }
 0x4b5   : > { %v4655_v48 = vpop.eup %3432  ;;  %3436 = vpow2.f32 %v1700_v51  ;;  %v2051_v7 = vsub.f32 %v5905_v52, %v5904_v40  ;;  %v1994_v57 = vsel %vm1962_vm1, %v1946_v20, %v1978_v15  ;;  %v1239_v13 = vmul.f32 0.2, %v1207_v31  ;;  %v5907_v20 = vld [vmem:[#allocation13_spill] sm:$0xff] }
 0x4b6   : > { %1736 = vadd.xlane.f32.xlu0 %v4642_v12  ;;  %5898 = vst [vmem:[#allocation17_spill] sm:$0xff] %v4655_v48  ;;  %3438 = vpow2.f32 %v2070_v35  ;;  %v4683_v11 = vadd.f32 %v1994_v57, %v4561_v1  ;;  %vm1223_vm2 = vcmp.gt.f32.partialorder %v1207_v31, 0.0  ;;  %v1312_v8 = vsub.f32 %v5907_v20, %v5906_v0  ;;  %v5910_v57 = vld [vmem:[#allocation11_spill] sm:$0xff] }
 0x4b7   : > { %v2072_v36 = vmul.f32 1.442695, %v2051_v7  ;;  %v1255_v35 = vsel %vm1223_vm2, %v1207_v31, %v1239_v13  ;;  %v4699_v15 = vmul.f32 1e+30, %v3223_v18  ;;  %v5909_v7 = vld [vmem:[#allocation27_spill] sm:$0xff]  ;;  %v857_v18 = vadd.f32 %v4180_v26, %v4404_v23 }
 0x4b8   : > { %v1334_v40 = vmul.f32 1.442695, %v1312_v8  ;;  %v1948_v20 = vadd.f32 %v4083_v19, %v4570_v24  ;;  %vm2431_vm2 = vcmask 261120  }
 0x4b9   : > { %3440 = vpow2.f32 %v2072_v36  ;;  %v4702_v52 = vadd.f32 %v1255_v35, %v4699_v15  ;;  %v1313_v36 = vsub.f32 %v5910_v57, %v5909_v7  ;;  %v437_v57 = vld [vmem:[%s4070_s30 + $0x70] sm:$0xff]  ;;  %vm873_vm4 = vcmp.gt.f32.partialorder %v857_v18, 0.0 }
 0x4ba   : > { %v4665_v53 = vpop.eup %3434  ;;  %3442 = vpow2.f32 %v1334_v40  ;;  %v889_v40 = vmul.f32 0.2, %v857_v18  ;;  %v1980_v23 = vmul.f32 0.2, %v1948_v20  ;;  %v3224_v24 = vadd.f32 -1.0, %v437_v57 }
 0x4bb   : > { %v4676_v9 = vpop.eup %3436  ;;  %5908 = vst [vmem:[#allocation14_spill] sm:$0xff] %v4702_v52  ;;  %v1336_v37 = vmul.f32 1.442695, %v1313_v36  ;;  %vm1964_vm5 = vcmp.gt.f32.partialorder %v1948_v20, 0.0 }
 0x4bc   : > { %1008 = vadd.xlane.f32.xlu2 %v4649_v45  ;;  %1734 = vadd.xlane.f32.xlu1 %v4651_v55  ;;  %v4685_v2 = vpop.eup %3438  ;;  %v4712_v31 = vpop.permute.xlu2 %1556 }
 0x4bd   : > { %3444 = vpow2.f32 %v1336_v37  ;;  %v1297_v37 = vpop.xlane.xlu1 %1296 }
 0x4be   : > { %1372 = vadd.xlane.f32.xlu0 %v4655_v48  ;;  %3446 = vrcp.f32 %v4608_v28  ;;  %v1577_v28 = vadd.f32 %v4080_v17, %v1553_v62  ;;  %v1947_v62 = vadd.f32 %v4083_v19, %v4465_v63 }
 0x4bf   : > { %v4692_v51 = vpop.eup %3440 }
 0x4c0   : > { %vm1593_vm6 = vcmp.gt.f32.partialorder %v1577_v28, 0.0  ;;  %vm1963_vm7 = vcmp.gt.f32.partialorder %v1947_v62, 0.0 }
 0x4c4   : > { %1010 = vadd.xlane.f32.xlu2 %v4665_v53  ;;  %944 = vmax.xlane.f32.xlu1 %v4663_v44  ;;  %v4709_v44 = vpop.eup %3442 }
 0x4c5   : > { %v4720_v35 = vpop.eup %3444 }
 0x4c6   : > { %v3447_v12 = vpop.eup %3446 }
 0x4cc   : > { %1732 = vadd.xlane.f32.xlu2 %v4676_v9  ;;  %1668 = vmax.xlane.f32.xlu1 %v4674_v46 }
 0x4d3   : > { %v4694_v14 = vpop.xlane.xlu0 %2034 }
 0x4d4   : > { %2102 = vadd.xlane.f32.xlu2 %v4685_v2  ;;  %2038 = vmax.xlane.f32.xlu1 %v4683_v11 }
 0x4db   : > { %v4707_v48 = vpop.xlane.xlu0 %1298 }
 0x4dc   : > { %2104 = vadd.xlane.f32.xlu2 %v4692_v51 }
 0x4e4   : > { %1300 = vmax.xlane.f32.xlu2 %v4702_v52 }
 0x4ec   : > { %1366 = vadd.xlane.f32.xlu2 %v4709_v44 }
 0x4ed   : > { %819 = vperm.xlu1 %3372, %v4011_v47  }
 0x4ee   : > { %v825_v13 = vpop.permute.xlu0 %824 }
 0x4ef   : > { %v859_v0 = vadd.f32 %v4180_v26, %v825_v13  ;;  %v965_v13 = vsub.f32 %v4527_v3, %v4614_v59  ;;  %v1774_v59 = vmul.f32 %v3447_v12, %v4497_v49 }
 0x4f1   : > { %v891_v8 = vmul.f32 0.2, %v859_v0  ;;  %vm875_vm3 = vcmp.gt.f32.partialorder %v859_v0, 0.0 }
 0x4f3   : > { %v907_v7 = vsel %vm875_vm3, %v859_v0, %v891_v8  ;;  %v905_v0 = vsel %vm873_vm4, %v857_v18, %v889_v40  ;;  %v1996_v8 = vsel %vm1964_vm5, %v1948_v20, %v1980_v23  ;;  %v2054_v18 = vsub.f32 %v4455_v25, %v4579_v41  ;;  %v1365_v23 = vpop.xlane.xlu1 %1364 }
 0x4f4   : > { %1368 = vadd.xlane.f32.xlu2 %v4720_v35  ;;  %v4726_v47 = vadd.f32 %v907_v7, %v4509_v39  ;;  %v4734_v39 = vadd.f32 %v905_v0, %v4437_v33  ;;  %v4736_v7 = vmul.f32 1e+30, %v3224_v24  ;;  %v1317_v41 = vsub.f32 %v4514_v21, %v1297_v37 }
 0x4f5   : > { %v1731_v36 = vpop.xlane.xlu2 %1730  ;;  %829 = vperm.xlu1 %3372, %v4027_v54   ;;  %v986_v54 = vmul.f32 1.442695, %v965_v13  ;;  %v2078_v49 = vmul.f32 1.442695, %v2054_v18  ;;  %vm2448_vm3 = vcmask 523264   ;;  %vm2465_vm4 = vcmask 785408  }
 0x4f6   : > { %3448 = vrcp.f32 %v1731_v36  ;;  %950 = vmax.xlane.f32.xlu0 %v4726_v47  ;;  %v1609_v36 = vmul.f32 0.2, %v1577_v28  ;;  %v4740_v57 = vadd.f32 %v1996_v8, %v4736_v7  ;;  %v1344_v8 = vmul.f32 1.442695, %v1317_v41 }
 0x4f7   : > { %3450 = vpow2.f32 %v986_v54 }
 0x4f8   : > { %v1625_v40 = vsel %vm1593_vm6, %v1577_v28, %v1609_v36  ;;  %3452 = vrcp.f32 %v1365_v23 }
 0x4f9   : > { %v4753_v24 = vadd.f32 %v1625_v40, %v4699_v15 }
 0x4fb   : > { %v4792_v41 = vpop.xlane.xlu1 %942 }
 0x4fc   : > { %v3449_v52 = vpop.eup %3448  ;;  %946 = vmax.xlane.f32.xlu2 %v4734_v39 }
 0x4fd   : > { %v4742_v3 = vpop.xlane.xlu2 %1294  ;;  %844 = vperm.xlu1 %3372, %v4050_v61   ;;  %v1775_v33 = vmul.f32 %v3449_v52, %v4587_v60  ;;  %v1979_v61 = vmul.f32 0.2, %v1947_v62  ;;  %v4756_v63 = vpop.eup %3450  ;;  %v5911_v60 = vld [vmem:[#allocation18_spill] sm:$0xff] }
 0x4fe   : > { %2042 = vmax.xlane.f32.xlu0 %v4740_v57  ;;  %v962_v12 = vsub.f32 %v5911_v60, %v4360_v56  ;;  %v3453_v28 = vpop.eup %3452  ;;  %v5912_v56 = vld [vmem:[#allocation28_spill] sm:$0xff] }
 0x4ff   : > { %v1789_v20 = vpack.c.bf16 %v1775_v33, %v1774_v59  ;;  %v1995_v52 = vsel %vm1963_vm7, %v1947_v62, %v1979_v61  ;;  %v963_v59 = vsub.f32 %v5912_v56, %v4393_v4  ;;  %v1407_v21 = vmul.f32 %v3453_v28, %v4519_v29  ;;  %v5913_v4 = vld [vmem:[#allocation21_spill] sm:$0xff] }
 0x500   : > { %v980_v13 = vmul.f32 1.442695, %v962_v12  ;;  %v4763_v0 = vadd.f32 %v1995_v52, %v4699_v15  ;;  %v2053_v29 = vsub.f32 %v4344_v32, %v4406_v58  ;;  %v1579_v58 = vadd.f32 %v4080_v17, %v4603_v50  ;;  %v438_v28 = vld [vmem:[%s4070_s30 + $0x78] sm:$0xff]  ;;  %v5915_v50 = vld [vmem:[#allocation35_spill] sm:$0xff] }
 0x501   : > { %1833 = vmatmul.bf16.gmra.mxu0 %v1789_v20  ;;  %v982_v20 = vmul.f32 1.442695, %v963_v59 }
 0x502   : > { %v2076_v60 = vmul.f32 1.442695, %v2053_v29  ;;  %vm1595_vm8 = vcmp.gt.f32.partialorder %v1579_v58, 0.0 }
 0x504   : > { %1670 = vmax.xlane.f32.xlu2 %v4753_v24 }
 0x505   : > { %v1363_v25 = vpop.xlane.xlu2 %1362 }
 0x506   : > { %3454 = vrcp.f32 %v1363_v25  ;;  %1018 = vadd.xlane.f32.xlu0 %v4756_v63  ;;  %v5914_v25 = vld [vmem:[#allocation30_spill] sm:$0xff] }
 0x507   : > { %3456 = vpow2.f32 %v2078_v49 }
 0x508   : > { %3458 = vpow2.f32 %v980_v13 }
 0x509   : > { %3460 = vpow2.f32 %v1344_v8 }
 0x50a   : > { %3462 = vpow2.f32 %v982_v20 }
 0x50c   : > { %v3455_v54 = vpop.eup %3454  ;;  %2040 = vmax.xlane.f32.xlu2 %v4763_v0 }
 0x50d   : > { %v4766_v36 = vpop.eup %3456  ;;  %v941_v33 = vpop.xlane.xlu2 %940  ;;  %v1406_v18 = vmul.f32 %v3455_v54, %v4605_v43  ;;  %v1683_v43 = vsub.f32 %v5913_v4, %v4376_v6  ;;  %v2052_v6 = vsub.f32 %v5914_v25, %v4400_v42  ;;  %v1611_v42 = vmul.f32 0.2, %v1579_v58 }
 0x50e   : > { %2110 = vadd.xlane.f32.xlu0 %v4766_v36  ;;  %v966_v37 = vsub.f32 %v4611_v27, %v941_v33  ;;  %v4774_v40 = vpop.eup %3458  ;;  %v1208_v54 = vadd.f32 %v4077_v16, %v4484_v30  ;;  %v3225_v33 = vadd.f32 -1.0, %v438_v28 }
 0x50f   : > { %v1420_v62 = vpack.c.bf16 %v1407_v21, %v1406_v18  ;;  %v4777_v61 = vpop.eup %3460  ;;  %v1706_v27 = vmul.f32 1.442695, %v1683_v43  ;;  %v2074_v32 = vmul.f32 1.442695, %v2052_v6  ;;  %v964_v18 = vsub.f32 %v5915_v50, %v4574_v22  ;;  %v5916_v22 = vld [vmem:[#allocation36_spill] sm:$0xff] }
 0x510   : > { %v988_v23 = vmul.f32 1.442695, %v966_v37  ;;  %v4784_v49 = vpop.eup %3462  ;;  %v4814_v4 = vmul.f32 1e+30, %v3225_v33  ;;  %vm1224_vm9 = vcmp.gt.f32.partialorder %v1208_v54, 0.0  ;;  %v1318_v43 = vsub.f32 %v4567_v34, %v4707_v48 }
 0x511   : > { %1468 = vmatmul.bf16.gmra.mxu3 %v1420_v62  ;;  %v1627_v62 = vsel %vm1595_vm8, %v1579_v58, %v1611_v42  ;;  %v984_v30 = vmul.f32 1.442695, %v964_v18 }
 0x512   : > { %3464 = vpow2.f32 %v988_v23  ;;  %v1240_v23 = vmul.f32 0.2, %v1208_v54  ;;  %v4820_v29 = vadd.f32 %v1627_v62, %v4814_v4 }
 0x513   : > { %3466 = vpow2.f32 %v1706_v27  ;;  %v5917_v27 = vld [vmem:[#allocation33_spill] sm:$0xff] }
 0x514   : > { %1012 = vadd.xlane.f32.xlu2 %v4774_v40  ;;  %3468 = vpow2.f32 %v2076_v60  ;;  %v1685_v60 = vsub.f32 %v5917_v27, %v4536_v10  ;;  %v1256_v6 = vsel %vm1224_vm9, %v1208_v54, %v1240_v23  ;;  %v5919_v10 = vld [vmem:[#allocation31_spill] sm:$0xff] }
 0x515   : > { %3470 = vpow2.f32 %v2074_v32  ;;  %v1346_v32 = vmul.f32 1.442695, %v1318_v43  ;;  %v4828_v58 = vadd.f32 %v1256_v6, %v4736_v7  ;;  %v5920_v54 = vld [vmem:[#allocation23_spill] sm:$0xff] }
 0x516   : > { %1376 = vadd.xlane.f32.xlu0 %v4777_v61  ;;  %v1710_v28 = vmul.f32 1.442695, %v1685_v60  ;;  %v1316_v33 = vsub.f32 %v5920_v54, %v4742_v3 }
 0x518   : > { %v4787_v12 = vpop.eup %3464 }
 0x519   : > { %v4798_v13 = vpop.eup %3466 }
 0x51a   : > { %v4802_v8 = vpop.eup %3468 }
 0x51b   : > { %v4812_v20 = vpop.eup %3470 }
 0x51c   : > { %1014 = vadd.xlane.f32.xlu2 %v4784_v49 }
 0x51e   : > { %1020 = vadd.xlane.f32.xlu0 %v4787_v12 }
 0x51f   : > { %v4794_v52 = vpop.xlane.xlu2 %1664 }
 0x524   : > { %1738 = vadd.xlane.f32.xlu2 %v4798_v13 }
 0x527   : > { %v4806_v56 = vpop.xlane.xlu2 %2036  ;;  %2108 = vadd.xlane.f32.xlu1 %v4802_v8  ;;  %v1667_v59 = vpop.xlane.xlu1 %1666 }
 0x528   : > { %v1687_v21 = vsub.f32 %v4638_v5, %v1667_v59  ;;  %v1209_v5 = vadd.f32 %v4077_v16, %v5916_v22  ;;  %v5918_v16 = vld [vmem:[#allocation34_spill] sm:$0xff] }
 0x529   : > { %v1314_v42 = vsub.f32 %v5919_v10, %v5918_v16 }
 0x52a   : > { %v1714_v37 = vmul.f32 1.442695, %v1687_v21  ;;  %v1241_v48 = vmul.f32 0.2, %v1209_v5  ;;  %vm1225_vm10 = vcmp.gt.f32.partialorder %v1209_v5, 0.0 }
 0x52b   : > { %v1338_v21 = vmul.f32 1.442695, %v1314_v42 }
 0x52c   : > { %2106 = vadd.xlane.f32.xlu2 %v4812_v20  ;;  %3472 = vpow2.f32 %v1714_v37  ;;  %v1257_v18 = vsel %vm1225_vm10, %v1209_v5, %v1241_v48  ;;  %v835_v5 = vpop.permute.xlu0 %834 }
 0x52d   : > { %3474 = vpow2.f32 %v984_v30  ;;  %v4842_v62 = vadd.f32 %v1257_v18, %v4814_v4  ;;  %v1342_v30 = vmul.f32 1.442695, %v1316_v33 }
 0x52e   : > { %3476 = vpow2.f32 %v1346_v32  ;;  %v861_v32 = vadd.f32 %v4180_v26, %v835_v5 }
 0x52f   : > { %v1009_v25 = vpop.xlane.xlu2 %1008  ;;  %1674 = vmax.xlane.f32.xlu1 %v4820_v29  ;;  %v1735_v37 = vpop.xlane.xlu1 %1734 }
 0x530   : > { %3478 = vrcp.f32 %v1009_v25  ;;  %v893_v54 = vmul.f32 0.2, %v861_v32  ;;  %vm877_vm11 = vcmp.gt.f32.partialorder %v861_v32, 0.0 }
 0x531   : > { %3480 = vpow2.f32 %v1710_v28 }
 0x532   : > { %v4830_v34 = vpop.eup %3472 }
 0x533   : > { %1746 = vadd.xlane.f32.xlu0 %v4830_v34  ;;  %v4836_v59 = vpop.eup %3474 }
 0x534   : > { %1302 = vmax.xlane.f32.xlu2 %v4828_v58  ;;  %v4844_v23 = vpop.eup %3476 }
 0x536   : > { %v3479_v43 = vpop.eup %3478 }
 0x537   : > { %v1011_v50 = vpop.xlane.xlu2 %1010  ;;  %1016 = vadd.xlane.f32.xlu1 %v4836_v59  ;;  %v4848_v22 = vpop.eup %3480  ;;  %v1056_v60 = vmul.f32 %v3479_v43, %v4649_v45  ;;  %v5921_v45 = vld [vmem:[#allocation10_spill] sm:$0xff] }
 0x538   : > { %3482 = vrcp.f32 %v1011_v50  ;;  %v4856_v28 = vpop.xlane.xlu1 %944 }
 0x539   : > { %3484 = vpow2.f32 %v1338_v21 }
 0x53a   : > { %3486 = vrcp.f32 %v1735_v37  ;;  %v909_v37 = vsel %vm877_vm11, %v861_v32, %v893_v54 }
 0x53b   : > { %1378 = vadd.xlane.f32.xlu0 %v4844_v23  ;;  %3488 = vpow2.f32 %v1342_v30 }
 0x53c   : > { %1304 = vmax.xlane.f32.xlu2 %v4842_v62 }
 0x53e   : > { %v3483_v3 = vpop.eup %3482 }
 0x53f   : > { %v1733_v27 = vpop.xlane.xlu2 %1732  ;;  %1742 = vadd.xlane.f32.xlu1 %v4848_v22  ;;  %v1057_v25 = vmul.f32 %v3483_v3, %v4665_v53  ;;  %v4854_v48 = vpop.eup %3484  ;;  %v1686_v53 = vsub.f32 %v5921_v45, %v4794_v52  ;;  %v4869_v3 = vadd.f32 %v909_v37, %v4699_v15  ;;  %v2057_v52 = vsub.f32 %v4635_v38, %v4806_v56 }
 0x540   : > { %3490 = vrcp.f32 %v1733_v27  ;;  %v3487_v16 = vpop.eup %3486  ;;  %v4866_v43 = vpop.xlane.xlu1 %1668 }
 0x541   : > { %v1072_v6 = vpack.c.bf16 %v1057_v25, %v1056_v60  ;;  %v4859_v10 = vpop.eup %3488  ;;  %v1777_v18 = vmul.f32 %v3487_v16, %v4651_v55  ;;  %v1712_v30 = vmul.f32 1.442695, %v1686_v53  ;;  %v2084_v55 = vmul.f32 1.442695, %v2057_v52  ;;  %v840_v25 = vpop.permute.xlu0 %839 }
 0x542   : > { %v862_v38 = vadd.f32 %v4180_v26, %v840_v25 }
 0x543   : > { %1088 = vmatmul.bf16.vlgmr.msra.gmra.mxu2 %v1072_v6 }
 0x544   : > { %1370 = vadd.xlane.f32.xlu2 %v4854_v48  ;;  %v894_v54 = vmul.f32 0.2, %v862_v38  ;;  %vm878_vm12 = vcmp.gt.f32.partialorder %v862_v38, 0.0 }
 0x546   : > { %v3491_v42 = vpop.eup %3490 }
 0x547   : > { %v2103_v33 = vpop.xlane.xlu2 %2102  ;;  %1374 = vadd.xlane.f32.xlu1 %v4859_v10  ;;  %v1776_v50 = vmul.f32 %v3491_v42, %v4676_v9 }
 0x548   : > { %3492 = vrcp.f32 %v2103_v33  ;;  %v4876_v6 = vpop.xlane.xlu1 %2038 }
 0x549   : > { %v1790_v21 = vpack.c.bf16 %v1777_v18, %v1776_v50  ;;  %3494 = vpow2.f32 %v1712_v30  ;;  %v910_v50 = vsel %vm878_vm12, %v862_v38, %v894_v54  ;;  %v5925_v38 = vld [vmem:[#allocation32_spill] sm:$0xff] }
 0x54a   : > { %v4894_v30 = vadd.f32 %v910_v50, %v4736_v7 }
 0x54b   : > { %1838 = vmatmul.bf16.gmra.mxu0 %v1790_v21  ;;  %v5922_v21 = vld [vmem:[#allocation40_spill] sm:$0xff] }
 0x54e   : > { %v3493_v9 = vpop.eup %3492 }
 0x54f   : > { %v2105_v5 = vpop.xlane.xlu2 %2104  ;;  %954 = vmax.xlane.f32.xlu1 %v4869_v3  ;;  %v4874_v27 = vpop.eup %3494  ;;  %v2146_v15 = vmul.f32 %v3493_v9, %v4685_v2  ;;  %v1578_v2 = vadd.f32 %v4080_v17, %v4712_v31  ;;  %v5923_v17 = vld [vmem:[#allocation42_spill] sm:$0xff] }
 0x550   : > { %3496 = vrcp.f32 %v2105_v5  ;;  %v1949_v31 = vadd.f32 %v4083_v19, %v5923_v17  ;;  %v1688_v19 = vsub.f32 %v4674_v46, %v4866_v43  ;;  %v5926_v43 = vld [vmem:[#allocation39_spill] sm:$0xff] }
 0x551   : > { %3498 = vpow2.f32 %v2084_v55  ;;  %v1610_v5 = vmul.f32 0.2, %v1578_v2  ;;  %vm1594_vm14 = vcmp.gt.f32.partialorder %v1578_v2, 0.0 }
 0x552   : > { %vm1965_vm15 = vcmp.gt.f32.partialorder %v1949_v31, 0.0  ;;  %v1716_v17 = vmul.f32 1.442695, %v1688_v19 }
 0x553   : > { %v1626_v55 = vsel %vm1594_vm14, %v1578_v2, %v1610_v5 }
 0x554   : > { %v4901_v25 = vadd.f32 %v1626_v55, %v4736_v7 }
 0x556   : > { %v3497_v60 = vpop.eup %3496 }
 0x557   : > { %v4878_v32 = vpop.xlane.xlu2 %1300  ;;  %1744 = vadd.xlane.f32.xlu1 %v4874_v27  ;;  %v2147_v16 = vmul.f32 %v3497_v60, %v4692_v51  ;;  %v4884_v56 = vpop.eup %3498 }
 0x559   : > { %v2160_v42 = vpack.c.bf16 %v2147_v16, %v2146_v15  ;;  %v1981_v16 = vmul.f32 0.2, %v1949_v31 }
 0x55b   : > { %2208 = vmatmul.bf16.gmra.mxu1 %v2160_v42  ;;  %v5924_v42 = vld [vmem:[#allocation38_spill] sm:$0xff]  ;;  %v1997_v5 = vsel %vm1965_vm15, %v1949_v31, %v1981_v16  ;;  %v5927_v31 = vld [vmem:[#allocation37_spill] sm:$0xff] }
 0x55c   : > { %v1684_v54 = vsub.f32 %v5925_v38, %v5924_v42  ;;  %v4915_v55 = vadd.f32 %v1997_v5, %v4814_v4  ;;  %v1737_v38 = vpop.xlane.xlu0 %1736  ;;  %v5929_v5 = vld [vmem:[#allocation41_spill] sm:$0xff] }
 0x55f   : > { %v1367_v45 = vpop.xlane.xlu2 %1366  ;;  %v820_v53 = vpop.permute.xlu1 %819  ;;  %2116 = vadd.xlane.f32.xlu1 %v4884_v56 }
 0x560   : > { %v858_v33 = vadd.f32 %v4180_v26, %v820_v53  ;;  %3500 = vrcp.f32 %v1367_v45 }
 0x562   : > { %vm874_vm13 = vcmp.gt.f32.partialorder %v858_v33, 0.0  ;;  %v890_v51 = vmul.f32 0.2, %v858_v33 }
 0x564   : > { %v906_v18 = vsel %vm874_vm13, %v858_v33, %v890_v51 }
 0x565   : > { %v4891_v37 = vadd.f32 %v906_v18, %v5922_v21 }
 0x566   : > { %v3501_v60 = vpop.eup %3500 }
 0x567   : > { %v1369_v52 = vpop.xlane.xlu2 %1368  ;;  %948 = vmax.xlane.f32.xlu2 %v4891_v37  ;;  %v830_v9 = vpop.permute.xlu1 %829  ;;  %956 = vmax.xlane.f32.xlu1 %v4894_v30  ;;  %v1408_v33 = vmul.f32 %v3501_v60, %v4709_v44  ;;  %v2058_v44 = vsub.f32 %v4683_v11, %v4876_v6  ;;  %v2055_v60 = vsub.f32 %v5927_v31, %v5926_v43 }
 0x568   : > { %3502 = vrcp.f32 %v1369_v52  ;;  %v1708_v52 = vmul.f32 1.442695, %v1684_v54 }
 0x569   : > { %v2086_v11 = vmul.f32 1.442695, %v2058_v44 }
 0x56e   : > { %v3503_v15 = vpop.eup %3502 }
 0x56f   : > { %v947_v45 = vpop.xlane.xlu2 %946  ;;  %1672 = vmax.xlane.f32.xlu2 %v4901_v25  ;;  %v845_v53 = vpop.permute.xlu1 %844  ;;  %v1409_v51 = vmul.f32 %v3503_v15, %v4720_v35  ;;  %v2080_v15 = vmul.f32 1.442695, %v2055_v60 }
 0x570   : > { %v969_v7 = vsub.f32 %v4734_v39, %v947_v45  ;;  %v863_v2 = vadd.f32 %v4180_v26, %v845_v53  ;;  %v860_v53 = vadd.f32 %v4180_v26, %v830_v9 }
 0x571   : > { %v1421_v50 = vpack.c.bf16 %v1409_v51, %v1408_v33 }
 0x572   : > { %v994_v18 = vmul.f32 1.442695, %v969_v7  ;;  %vm879_vm0 = vcmp.gt.f32.partialorder %v863_v2, 0.0  ;;  %v895_v21 = vmul.f32 0.2, %v863_v2  ;;  %v5928_v7 = vld [vmem:[#allocation16_spill] sm:$0xff] }
 0x573   : > { %1473 = vmatmul.bf16.gmra.mxu3 %v1421_v50  ;;  %v892_v19 = vmul.f32 0.2, %v860_v53  ;;  %vm876_vm1 = vcmp.gt.f32.partialorder %v860_v53, 0.0 }
 0x574   : > { %3504 = vpow2.f32 %v994_v18  ;;  %v911_v35 = vsel %vm879_vm0, %v863_v2, %v895_v21  ;;  %v967_v2 = vsub.f32 %v5928_v7, %v4792_v41 }
 0x575   : > { %v4918_v46 = vadd.f32 %v911_v35, %v4814_v4  ;;  %3506 = vpow2.f32 %v1708_v52  ;;  %v908_v21 = vsel %vm876_vm1, %v860_v53, %v892_v19  ;;  %v2056_v52 = vsub.f32 %v5929_v5, %v4694_v14 }
 0x576   : > { %3508 = vpow2.f32 %v1716_v17  ;;  %v990_v26 = vmul.f32 1.442695, %v967_v2  ;;  %v4951_v9 = vadd.f32 %v908_v21, %v4561_v1  ;;  %v5930_v1 = vld [vmem:[#allocation14_spill] sm:$0xff]  ;;  %v5931_v2 = vld [vmem:[#allocation7_spill] sm:$0xff] }
 0x577   : > { %v4920_v39 = vpop.xlane.xlu2 %1670  ;;  %2044 = vmax.xlane.f32.xlu2 %v4915_v55  ;;  %958 = vmax.xlane.f32.xlu0 %v4918_v46  ;;  %3510 = vpow2.f32 %v2086_v11  ;;  %v2082_v44 = vmul.f32 1.442695, %v2056_v52  ;;  %v1319_v60 = vsub.f32 %v5930_v1, %v4878_v32 }
 0x578   : > { %3512 = vpow2.f32 %v2080_v15 }
 0x579   : > { %v1348_v53 = vmul.f32 1.442695, %v1319_v60 }
 0x57a   : > { %v4926_v6 = vpop.eup %3504 }
 0x57b   : > { %1026 = vadd.xlane.f32.xlu1 %v4926_v6  ;;  %v4929_v4 = vpop.eup %3506 }
 0x57c   : > { %v4931_v16 = vpop.eup %3508 }
 0x57d   : > { %v4936_v45 = vpop.eup %3510 }
 0x57e   : > { %v4940_v51 = vpop.eup %3512 }
 0x57f   : > { %v2041_v42 = vpop.xlane.xlu2 %2040  ;;  %1740 = vadd.xlane.f32.xlu2 %v4929_v4  ;;  %1748 = vadd.xlane.f32.xlu0 %v4931_v16 }
 0x580   : > { %v2059_v54 = vsub.f32 %v4763_v0, %v2041_v42  ;;  %v4947_v0 = vpop.xlane.xlu0 %1372 }
 0x582   : > { %v2088_v33 = vmul.f32 1.442695, %v2059_v54 }
 0x583   : > { %2118 = vadd.xlane.f32.xlu1 %v4936_v45 }
 0x584   : > { %3514 = vpow2.f32 %v2088_v33 }
 0x587   : > { %v1013_v50 = vpop.xlane.xlu2 %1012  ;;  %2112 = vadd.xlane.f32.xlu2 %v4940_v51 }
 0x588   : > { %3516 = vrcp.f32 %v1013_v50  ;;  %v4956_v17 = vpop.xlane.xlu0 %950  ;;  %v5932_v50 = vld [vmem:[#allocation19_spill] sm:$0xff] }
 0x589   : > { %3518 = vpow2.f32 %v990_v26  ;;  %v968_v21 = vsub.f32 %v5932_v50, %v4856_v28  ;;  %v1689_v28 = vsub.f32 %v4753_v24, %v4920_v39 }
 0x58a   : > { %v4945_v18 = vpop.eup %3514 }
 0x58b   : > { %2120 = vadd.xlane.f32.xlu0 %v4945_v18 }
 0x58e   : > { %v3517_v35 = vpop.eup %3516 }
 0x58f   : > { %v1015_v41 = vpop.xlane.xlu2 %1014  ;;  %952 = vmax.xlane.f32.xlu2 %v4951_v9  ;;  %v4958_v43 = vpop.eup %3518  ;;  %v1058_v14 = vmul.f32 %v3517_v35, %v4774_v40 }
 0x590   : > { %3520 = vrcp.f32 %v1015_v41  ;;  %v4965_v19 = vpop.xlane.xlu0 %2042  ;;  %v992_v41 = vmul.f32 1.442695, %v968_v21 }
 0x591   : > { %3522 = vrcp.f32 %v1737_v38 }
 0x592   : > { %3524 = vpow2.f32 %v2082_v44 }
 0x596   : > { %v3521_v31 = vpop.eup %3520 }
 0x597   : > { %v1739_v11 = vpop.xlane.xlu2 %1738  ;;  %1022 = vadd.xlane.f32.xlu2 %v4958_v43  ;;  %v1059_v15 = vmul.f32 %v3521_v31, %v4784_v49  ;;  %v3523_v33 = vpop.eup %3522 }
 0x598   : > { %3526 = vrcp.f32 %v1739_v11  ;;  %v4967_v38 = vpop.eup %3524  ;;  %v1778_v40 = vmul.f32 %v3523_v33, %v5931_v2  ;;  %v1019_v31 = vpop.xlane.xlu0 %1018 }
 0x599   : > { %v1073_v42 = vpack.c.bf16 %v1059_v15, %v1058_v14  ;;  %v1718_v15 = vmul.f32 1.442695, %v1689_v28 }
 0x59a   : > { %v2109_v54 = vpop.xlane.xlu1 %2108 }
 0x59b   : > { %1093 = vmatmul.bf16.gmra.mxu2 %v1073_v42  ;;  %3528 = vrcp.f32 %v2109_v54 }
 0x59c   : > { %3530 = vpow2.f32 %v1348_v53 }
 0x59e   : > { %v3527_v7 = vpop.eup %3526 }
 0x59f   : > { %v2107_v32 = vpop.xlane.xlu2 %2106  ;;  %2114 = vadd.xlane.f32.xlu2 %v4967_v38  ;;  %v1779_v49 = vmul.f32 %v3527_v7, %v4798_v13 }
 0x5a0   : > { %3532 = vrcp.f32 %v2107_v32  ;;  %v4998_v50 = vpop.xlane.xlu0 %2110 }
 0x5a1   : > { %v1791_v26 = vpack.c.bf16 %v1779_v49, %v1778_v40  ;;  %v3529_v52 = vpop.eup %3528  ;;  %3534 = vpow2.f32 %v992_v41 }
 0x5a2   : > { %v4974_v5 = vpop.xlane.xlu1 %1674  ;;  %v4976_v44 = vpop.eup %3530  ;;  %v2149_v13 = vmul.f32 %v3529_v52, %v4802_v8  ;;  %3536 = vrcp.f32 %v1019_v31 }
 0x5a3   : > { %1843 = vmatmul.bf16.gmra.mxu0 %v1791_v26 }
 0x5a6   : > { %v3533_v35 = vpop.eup %3532 }
 0x5a7   : > { %v1303_v1 = vpop.xlane.xlu2 %1302  ;;  %1380 = vadd.xlane.f32.xlu2 %v4976_v44  ;;  %v2148_v60 = vmul.f32 %v3533_v35, %v4812_v20  ;;  %v4983_v42 = vpop.eup %3534  ;;  %v5933_v35 = vld [vmem:[#allocation17_spill] sm:$0xff] }
 0x5a8   : > { %v3537_v54 = vpop.eup %3536  ;;  %v1320_v53 = vsub.f32 %v4828_v58, %v1303_v1  ;;  %v1377_v1 = vpop.xlane.xlu0 %1376 }
 0x5a9   : > { %v2161_v11 = vpack.c.bf16 %v2149_v13, %v2148_v60  ;;  %v1061_v32 = vmul.f32 %v3537_v54, %v4756_v63 }
 0x5aa   : > { %v1017_v14 = vpop.xlane.xlu1 %1016  ;;  %v1350_v2 = vmul.f32 1.442695, %v1320_v53 }
 0x5ab   : > { %3538 = vrcp.f32 %v1017_v14  ;;  %2213 = vmatmul.bf16.gmra.mxu1 %v2161_v11 }
 0x5ac   : > { %3540 = vpow2.f32 %v1718_v15 }
 0x5af   : > { %v1305_v33 = vpop.xlane.xlu2 %1304  ;;  %1024 = vadd.xlane.f32.xlu2 %v4983_v42 }
 0x5b0   : > { %v1321_v8 = vsub.f32 %v4842_v62, %v1305_v33  ;;  %v971_v62 = vsub.f32 %v4726_v47, %v4956_v17  ;;  %v2060_v47 = vsub.f32 %v4740_v57, %v4965_v19 }
 0x5b1   : > { %v3539_v20 = vpop.eup %3538 }
 0x5b2   : > { %v1352_v7 = vmul.f32 1.442695, %v1321_v8  ;;  %v4988_v24 = vpop.xlane.xlu1 %1742  ;;  %v1060_v39 = vmul.f32 %v3539_v20, %v4836_v59  ;;  %v4992_v49 = vpop.eup %3540  ;;  %v998_v26 = vmul.f32 1.442695, %v971_v62  ;;  %v2090_v60 = vmul.f32 1.442695, %v2060_v47 }
 0x5b3   : > { %v1459_v62 = vpop.f32.mrf.mxu3 }
 0x5b4   : > { %3542 = vpow2.f32 %v1352_v7  ;;  %v1074_v40 = vpack.c.bf16 %v1061_v32, %v1060_v39 }
 0x5b5   : > { %3544 = vrcp.f32 %v4947_v0 }
 0x5b6   : > { %1098 = vmatmul.bf16.gmra.mxu2 %v1074_v40  ;;  %3546 = vpow2.f32 %v1350_v2 }
 0x5b7   : > { %v1371_v58 = vpop.xlane.xlu2 %1370  ;;  %1750 = vadd.xlane.f32.xlu2 %v4992_v49 }
 0x5b8   : > { %3548 = vrcp.f32 %v1371_v58 }
 0x5b9   : > { %3550 = vpow2.f32 %v998_v26 }
 0x5ba   : > { %v5000_v59 = vpop.eup %3542  ;;  %v1375_v63 = vpop.xlane.xlu1 %1374 }
 0x5bb   : > { %1384 = vadd.xlane.f32.xlu1 %v5000_v59  ;;  %v3545_v21 = vpop.eup %3544  ;;  %3552 = vrcp.f32 %v1375_v63  ;;  %v5031_v63 = vpop.f32.mrf.mxu0 }
 0x5bc   : > { %v5003_v52 = vpop.eup %3546  ;;  %v1411_v31 = vmul.f32 %v3545_v21, %v5933_v35  ;;  %3554 = vrcp.f32 %v1377_v1  ;;  %v5042_v35 = vpop.f32.mrf.mxu3 }
 0x5bd   : > { %3556 = vpow2.f32 %v2090_v60 }
 0x5be   : > { %v3549_v0 = vpop.eup %3548 }
 0x5bf   : > { %1382 = vadd.xlane.f32.xlu2 %v5003_v52  ;;  %v1410_v41 = vmul.f32 %v3549_v0, %v4854_v48  ;;  %v5010_v28 = vpop.eup %3550 }
 0x5c1   : > { %v1422_v17 = vpack.c.bf16 %v1411_v31, %v1410_v41  ;;  %v3553_v11 = vpop.eup %3552 }
 0x5c2   : > { %v955_v13 = vpop.xlane.xlu1 %954  ;;  %v3555_v14 = vpop.eup %3554  ;;  %v1412_v54 = vmul.f32 %v3553_v11, %v4859_v10  ;;  %v1691_v10 = vsub.f32 %v4820_v29, %v4974_v5 }
 0x5c3   : > { %1478 = vmatmul.bf16.gmra.mxu3 %v1422_v17  ;;  %v973_v48 = vsub.f32 %v4869_v3, %v955_v13  ;;  %v5015_v57 = vpop.eup %3556  ;;  %v1413_v19 = vmul.f32 %v3555_v14, %v4777_v61  ;;  %v1831_v31 = vpop.f32.mrf.mxu0 }
 0x5c4   : > { %v1722_v39 = vmul.f32 1.442695, %v1691_v10  ;;  %v1464_v13 = vpop.f32.mrf.mxu3 }
 0x5c5   : > { %v1002_v15 = vmul.f32 1.442695, %v973_v48  ;;  %v1423_v53 = vpack.c.bf16 %v1413_v19, %v1412_v54 }
 0x5c7   : > { %1030 = vadd.xlane.f32.xlu2 %v5010_v28  ;;  %3558 = vpow2.f32 %v1002_v15 }
 0x5ca   : > { %v1745_v8 = vpop.xlane.xlu1 %1744 }
 0x5cb   : > { %v5050_v48 = vpop.f32.mrf.mxu0 }
 0x5cd   : > { %v5019_v33 = vpop.eup %3558 }
 0x5cf   : > { %2122 = vadd.xlane.f32.xlu2 %v5015_v57 }
 0x5d2   : > { %v5025_v32 = vpop.xlane.xlu1 %2116 }
 0x5d3   : > { %1483 = vmatmul.bf16.gmra.mxu3 %v1423_v53  ;;  %v1836_v10 = vpop.f32.mrf.mxu0 }
 0x5d7   : > { %1034 = vadd.xlane.f32.xlu2 %v5019_v33 }
 0x5da   : > { %v949_v3 = vpop.xlane.xlu2 %948  ;;  %v957_v26 = vpop.xlane.xlu1 %956 }
 0x5db   : > { %v970_v20 = vsub.f32 %v4891_v37, %v949_v3  ;;  %v1021_v37 = vpop.xlane.xlu0 %1020  ;;  %v974_v41 = vsub.f32 %v4894_v30, %v957_v26  ;;  %v5067_v26 = vpop.f32.mrf.mxu0 }
 0x5dd   : > { %v996_v7 = vmul.f32 1.442695, %v970_v20  ;;  %v1004_v17 = vmul.f32 1.442695, %v974_v41 }
 0x5df   : > { %3560 = vpow2.f32 %v996_v7 }
 0x5e0   : > { %3562 = vpow2.f32 %v1722_v39 }
 0x5e2   : > { %v1673_v61 = vpop.xlane.xlu2 %1672 }
 0x5e3   : > { %v1690_v2 = vsub.f32 %v4901_v25, %v1673_v61 }
 0x5e5   : > { %v5028_v40 = vpop.eup %3560  ;;  %v1720_v58 = vmul.f32 1.442695, %v1690_v2 }
 0x5e6   : > { %1028 = vadd.xlane.f32.xlu0 %v5028_v40  ;;  %v5034_v5 = vpop.eup %3562 }
 0x5e7   : > { %3564 = vpow2.f32 %v1720_v58 }
 0x5ea   : > { %v2045_v21 = vpop.xlane.xlu2 %2044 }
 0x5eb   : > { %v2061_v29 = vsub.f32 %v4915_v55, %v2045_v21  ;;  %v1747_v55 = vpop.xlane.xlu0 %1746 }
 0x5ed   : > { %v5036_v0 = vpop.eup %3564  ;;  %v2092_v25 = vmul.f32 1.442695, %v2061_v29 }
 0x5ee   : > { %1754 = vadd.xlane.f32.xlu0 %v5034_v5  ;;  %1752 = vadd.xlane.f32.xlu1 %v5036_v0 }
 0x5ef   : > { %3566 = vpow2.f32 %v2092_v25  ;;  %2255 = vrot.lane.b32.xlu2 %v1459_v62, %s5824_s23 }
 0x5f0   : > { %3568 = vrcp.f32 %v4988_v24 }
 0x5f2   : > { %v1741_v47 = vpop.xlane.xlu2 %1740 }
 0x5f3   : > { %3570 = vrcp.f32 %v1741_v47  ;;  %v1379_v15 = vpop.xlane.xlu0 %1378  ;;  %v1027_v47 = vpop.xlane.xlu1 %1026 }
 0x5f4   : > { %3572 = vpow2.f32 %v1004_v17 }
 0x5f5   : > { %v5045_v1 = vpop.eup %3566  ;;  %3574 = vrcp.f32 %v4998_v50 }
 0x5f6   : > { %2124 = vadd.xlane.f32.xlu1 %v5045_v1  ;;  %v3569_v60 = vpop.eup %3568 }
 0x5f7   : > { %2321 = vrot.lane.b32.xlu2 %v1831_v31, %s3751_s18  ;;  %v1781_v14 = vmul.f32 %v3569_v60, %v4848_v22  ;;  %v5060_v22 = vpop.f32.mrf.mxu3  ;;  %v5071_v31 = vpop.f32.mrf.mxu1 }
 0x5f9   : > { %v3571_v30 = vpop.eup %3570 }
 0x5fa   : > { %v2113_v11 = vpop.xlane.xlu2 %2112  ;;  %v1780_v24 = vmul.f32 %v3571_v30, %v4929_v4  ;;  %v5054_v19 = vpop.eup %3572 }
 0x5fb   : > { %3576 = vrcp.f32 %v2113_v11  ;;  %v3575_v53 = vpop.eup %3574  ;;  %v959_v39 = vpop.xlane.xlu0 %958 }
 0x5fc   : > { %v1792_v54 = vpack.c.bf16 %v1781_v14, %v1780_v24  ;;  %3578 = vrcp.f32 %v1745_v8  ;;  %v2150_v20 = vmul.f32 %v3575_v53, %v4766_v36  ;;  %v975_v62 = vsub.f32 %v4918_v46, %v959_v39  ;;  %v1841_v11 = vpop.f32.mrf.mxu0 }
 0x5fd   : > { %3580 = vrcp.f32 %v1747_v55 }
 0x5fe   : > { %1036 = vadd.xlane.f32.xlu1 %v5054_v19  ;;  %1848 = vmatmul.bf16.gmra.mxu0 %v1792_v54  ;;  %v1006_v29 = vmul.f32 1.442695, %v975_v62 }
 0x5ff   : > { %2259 = vrot.lane.b32.xlu2 %v1464_v13, %s5824_s23 }
 0x601   : > { %v3577_v50 = vpop.eup %3576 }
 0x602   : > { %v953_v3 = vpop.xlane.xlu2 %952  ;;  %v2151_v4 = vmul.f32 %v3577_v50, %v4940_v51  ;;  %v3579_v2 = vpop.eup %3578 }
 0x603   : > { %v972_v7 = vsub.f32 %v4951_v9, %v953_v3  ;;  %v3581_v8 = vpop.eup %3580  ;;  %v1782_v36 = vmul.f32 %v3579_v2, %v4874_v27  ;;  %v1469_v9 = vpop.f32.mrf.mxu3 }
 0x604   : > { %v2162_v61 = vpack.c.bf16 %v2151_v4, %v2150_v20  ;;  %v1783_v21 = vmul.f32 %v3581_v8, %v4830_v34  ;;  %v1749_v17 = vpop.xlane.xlu0 %1748  ;;  %v2119_v20 = vpop.xlane.xlu1 %2118 }
 0x605   : > { %v1000_v58 = vmul.f32 1.442695, %v972_v7 }
 0x606   : > { %2218 = vmatmul.bf16.gmra.mxu1 %v2162_v61  ;;  %v1793_v25 = vpack.c.bf16 %v1783_v21, %v1782_v36 }
 0x607   : > { %3582 = vpow2.f32 %v1000_v58  ;;  %2325 = vrot.lane.b32.xlu2 %v1836_v10, %s3751_s18 }
 0x608   : > { %3584 = vrcp.f32 %v1021_v37 }
 0x60a   : > { %v1023_v51 = vpop.xlane.xlu2 %1022 }
 0x60b   : > { %3586 = vrcp.f32 %v1023_v51  ;;  %v5080_v13 = vpop.f32.mrf.mxu3 }
 0x60c   : > { %3588 = vpow2.f32 %v1006_v29  ;;  %v2121_v53 = vpop.xlane.xlu0 %2120 }
 0x60d   : > { %v5069_v41 = vpop.eup %3582  ;;  %3590 = vrcp.f32 %v5025_v32 }
 0x60e   : > { %1032 = vadd.xlane.f32.xlu0 %v5069_v41  ;;  %1853 = vmatmul.bf16.gmra.mxu0 %v1793_v25  ;;  %v3585_v46 = vpop.eup %3584 }
 0x60f   : > { %2263 = vrot.lane.b32.xlu2 %v1469_v9, %s5824_s23  ;;  %v1062_v37 = vmul.f32 %v3585_v46, %v4787_v12  ;;  %v2201_v12 = vpop.f32.mrf.mxu1 }
 0x611   : > { %v3587_v27 = vpop.eup %3586 }
 0x612   : > { %v2115_v34 = vpop.xlane.xlu2 %2114  ;;  %v1063_v55 = vmul.f32 %v3587_v27, %v4958_v43  ;;  %v5078_v30 = vpop.eup %3588 }
 0x613   : > { %3592 = vrcp.f32 %v2115_v34  ;;  %v3591_v24 = vpop.eup %3590  ;;  %v1474_v3 = vpop.f32.mrf.mxu3 }
 0x614   : > { %v1075_v60 = vpack.c.bf16 %v1063_v55, %v1062_v37  ;;  %3594 = vrcp.f32 %v1379_v15  ;;  %v2153_v54 = vmul.f32 %v3591_v24, %v4884_v56 }
 0x616   : > { %1103 = vmatmul.bf16.gmra.mxu2 %v1075_v60  ;;  %1038 = vadd.xlane.f32.xlu0 %v5078_v30 }
 0x617   : > { %2257 = vrot.lane.b32.xlu1 %v5042_v35, %s5824_s23  ;;  %2329 = vrot.lane.b32.xlu2 %v1841_v11, %s3751_s18  ;;  %v2204_v35 = vpop.f32.mrf.mxu1 }
 0x619   : > { %v3593_v43 = vpop.eup %3592 }
 0x61a   : > { %v1381_v32 = vpop.xlane.xlu2 %1380  ;;  %v2152_v14 = vmul.f32 %v3593_v43, %v4967_v38  ;;  %v3595_v4 = vpop.eup %3594 }
 0x61b   : > { %3596 = vrcp.f32 %v1381_v32  ;;  %v1414_v56 = vmul.f32 %v3595_v4, %v4844_v23  ;;  %v3284_v4 = vld [vmem:[%s5782_s5 + $0x38] sm:$0xff] }
 0x61c   : > { %v2163_v50 = vpack.c.bf16 %v2153_v54, %v2152_v14  ;;  %3598 = vrcp.f32 %v2121_v53  ;;  %2782 = vmatpush.bf16.msrb.mxu2 %v3284_v4 }
 0x61d   : > { %3600 = vrcp.f32 %v1027_v47 }
 0x61e   : > { %2223 = vmatmul.bf16.gmra.mxu1 %v2163_v50  ;;  %3602 = vrcp.f32 %v2119_v20 }
 0x61f   : > { %2385 = vrot.lane.b32.xlu1 %v2201_v12, %s3750_s17  ;;  %2267 = vrot.lane.b32.xlu2 %v1474_v3, %s5824_s23  ;;  %v2206_v51 = vpop.f32.mrf.mxu1 }
 0x620   : > { %v1844_v15 = vpop.f32.mrf.mxu0 }
 0x621   : > { %v3597_v7 = vpop.eup %3596 }
 0x622   : > { %v1025_v38 = vpop.xlane.xlu2 %1024  ;;  %v1415_v10 = vmul.f32 %v3597_v7, %v4976_v44  ;;  %v3599_v61 = vpop.eup %3598 }
 0x623   : > { %3604 = vrcp.f32 %v1025_v38  ;;  %v3601_v2 = vpop.eup %3600  ;;  %v2155_v62 = vmul.f32 %v3599_v61, %v4945_v18 }
 0x624   : > { %v1424_v39 = vpack.c.bf16 %v1415_v10, %v1414_v56  ;;  %v3603_v58 = vpop.eup %3602  ;;  %3606 = vrcp.f32 %v1749_v17  ;;  %v1065_v21 = vmul.f32 %v3601_v2, %v4926_v6 }
 0x625   : > { %v2154_v29 = vmul.f32 %v3603_v58, %v4936_v45 }
 0x626   : > { %1488 = vmatmul.bf16.gmra.mxu3 %v1424_v39  ;;  %v3281_v39 = vld [vmem:[%s5782_s5 + $0x20] sm:$0xff] }
 0x627   : > { %2323 = vrot.lane.b32.xlu1 %v5050_v48, %s3751_s18  ;;  %v2164_v9 = vpack.c.bf16 %v2155_v62, %v2154_v29  ;;  %v2209_v27 = vpop.f32.mrf.mxu1 }
 0x628   : > { %v1846_v8 = vpop.f32.mrf.mxu0 }
 0x629   : > { %v3605_v36 = vpop.eup %3604  ;;  %2333 = vrot.lane.b32.xlu2 %v1846_v8, %s3751_s18 }
 0x62a   : > { %v1751_v23 = vpop.xlane.xlu2 %1750  ;;  %2319 = vrot.lane.b32.xlu0 %v5031_v63, %s3751_s18  ;;  %v1064_v44 = vmul.f32 %v3605_v36, %v4983_v42  ;;  %v3607_v18 = vpop.eup %3606  ;;  %v3279_v36 = vld [vmem:[%s5782_s5 + $0x10] sm:$0xff] }
 0x62b   : > { %3608 = vrcp.f32 %v1751_v23  ;;  %v1784_v6 = vmul.f32 %v3607_v18, %v4931_v16  ;;  %v1476_v16 = vpop.f32.mrf.mxu3 }
 0x62c   : > { %v1076_v48 = vpack.c.bf16 %v1065_v21, %v1064_v44  ;;  %v3278_v21 = vld [vmem:[%s5782_s5 + $0x8] sm:$0xff] }
 0x62e   : > { %v1385_v25 = vpop.xlane.xlu1 %1384  ;;  %1108 = vmatmul.bf16.gmra.mxu2 %v1076_v48  ;;  %2228 = vmatmul.bf16.gmra.mxu1 %v2164_v9 }
 0x62f   : > { %2389 = vrot.lane.b32.xlu1 %v2206_v51, %s3750_s17  ;;  %3610 = vrcp.f32 %v1385_v25 }
 0x631   : > { %v3609_v46 = vpop.eup %3608 }
 0x632   : > { %v1383_v34 = vpop.xlane.xlu2 %1382  ;;  %2383 = vrot.lane.b32.xlu0 %v5071_v31, %s3750_s17  ;;  %v1785_v45 = vmul.f32 %v3609_v46, %v4992_v49  ;;  %v2211_v31 = vpop.f32.mrf.mxu1 }
 0x633   : > { %3612 = vrcp.f32 %v1383_v34  ;;  %v3277_v34 = vld [vmem:[%s5782_s5] sm:$0xff] }
 0x634   : > { %v1794_v42 = vpack.c.bf16 %v1785_v45, %v1784_v6  ;;  %v1089_v6 = vpop.f32.mrf.mxu2 }
 0x635   : > { %v3611_v63 = vpop.eup %3610 }
 0x636   : > { %1858 = vmatmul.bf16.gmra.mxu0 %v1794_v42  ;;  %v1417_v47 = vmul.f32 %v3611_v63, %v5000_v59 }
 0x637   : > { %2327 = vrot.lane.b32.xlu1 %v5067_v26, %s3751_s18 }
 0x639   : > { %v3613_v37 = vpop.eup %3612 }
 0x63a   : > { %2261 = vrot.lane.b32.xlu0 %v5060_v22, %s5824_s23  ;;  %v1416_v55 = vmul.f32 %v3613_v37, %v5003_v52  ;;  %v2214_v49 = vpop.f32.mrf.mxu1  ;;  %v1031_v59 = vpop.xlane.xlu2 %1030 }
 0x63b   : > { %3614 = vrcp.f32 %v1031_v59 }
 0x63c   : > { %v1425_v17 = vpack.c.bf16 %v1417_v47, %v1416_v55  ;;  %v1091_v55 = vpop.f32.mrf.mxu2 }
 0x63e   : > { %1493 = vmatmul.bf16.gmra.mxu3 %v1425_v17 }
 0x63f   : > { %2393 = vrot.lane.b32.xlu1 %v2211_v31, %s3750_s17 }
 0x641   : > { %v3615_v26 = vpop.eup %3614 }
 0x642   : > { %2387 = vrot.lane.b32.xlu0 %v2204_v35, %s3750_s17  ;;  %v2216_v52 = vpop.f32.mrf.mxu1  ;;  %v1067_v32 = vmul.f32 %v3615_v26, %v5010_v28  ;;  %v2123_v14 = vpop.xlane.xlu2 %2122 }
 0x644   : > { %v1094_v59 = vpop.f32.mrf.mxu2 }
 0x646   : > { %v1479_v60 = vpop.f32.mrf.mxu3 }
 0x647   : > { %2331 = vrot.lane.b32.xlu1 %v1844_v15, %s3751_s18  ;;  %2271 = vrot.lane.b32.xlu2 %v1479_v60, %s5824_s23 }
 0x64a   : > { %2265 = vrot.lane.b32.xlu0 %v5080_v13, %s5824_s23 }
 0x64e   : > { %v1481_v50 = vpop.f32.mrf.mxu3 }
 0x64f   : > { %2397 = vrot.lane.b32.xlu1 %v2216_v52, %s3750_s17 }
 0x652   : > { %2391 = vrot.lane.b32.xlu0 %v2209_v27, %s3750_s17 }
 0x656   : > { %v1484_v2 = vpop.f32.mrf.mxu3 }
 0x659   : > { %v1029_v22 = vpop.xlane.xlu0 %1028 }
 0x65a   : > { %3616 = vrcp.f32 %v1029_v22  ;;  %2269 = vrot.lane.b32.xlu0 %v1476_v16, %s5824_s23 }
 0x65e   : > { %v1486_v45 = vpop.f32.mrf.mxu3 }
 0x660   : > { %v3617_v11 = vpop.eup %3616 }
 0x661   : > { %v1753_v24 = vpop.xlane.xlu1 %1752  ;;  %v1755_v12 = vpop.xlane.xlu0 %1754  ;;  %v1066_v43 = vmul.f32 %v3617_v11, %v5028_v40 }
 0x662   : > { %3618 = vrcp.f32 %v1753_v24  ;;  %2395 = vrot.lane.b32.xlu0 %v2214_v49, %s3750_s17 }
 0x663   : > { %3620 = vrcp.f32 %v1755_v12  ;;  %v1077_v13 = vpack.c.bf16 %v1067_v32, %v1066_v43 }
 0x664   : > { %3622 = vrcp.f32 %v2123_v14 }
 0x665   : > { %1113 = vmatmul.bf16.gmra.mxu2 %v1077_v13 }
 0x668   : > { %v3619_v54 = vpop.eup %3618 }
 0x669   : > { %v3621_v53 = vpop.eup %3620  ;;  %v2125_v3 = vpop.xlane.xlu1 %2124  ;;  %v1786_v20 = vmul.f32 %v3619_v54, %v5036_v0  ;;  %v3283_v0 = vld [vmem:[%s5782_s5 + $0x30] sm:$0xff] }
 0x66a   : > { %3624 = vrcp.f32 %v2125_v3  ;;  %2273 = vrot.lane.b32.xlu0 %v1481_v50, %s5824_s23  ;;  %v1787_v40 = vmul.f32 %v3621_v53, %v5034_v5  ;;  %v3623_v35 = vpop.eup %3622  ;;  %2783 = vmatpush.bf16.msrb.mxu2 %v3283_v0  ;;  %v3282_v5 = vld [vmem:[%s5782_s5 + $0x28] sm:$0xff]  ;;  %v1096_v53 = vpop.f32.mrf.mxu2  ;;  %s3093_s23 = sshll.u32 %s395_s15, 4  ;;  %s3094_s23 = int_to_ptr.vmem [resolvable:$true] %s3093_s23 }
 0x66b   : > { %v2156_v7 = vmul.f32 %v3623_v35, %v5015_v57  ;;  %v1035_v57 = vpop.xlane.xlu2 %1034 }
 0x66c   : > { %v1795_v28 = vpack.c.bf16 %v1787_v40, %v1786_v20  ;;  %3626 = vrcp.f32 %v1035_v57 }
 0x66e   : > { %1863 = vmatmul.bf16.gmra.mxu0 %v1795_v28  ;;  %2784 = vmatpush.bf16.msrb.mxu2 %v3282_v5 }
 0x670   : > { %v3625_v15 = vpop.eup %3624 }
 0x671   : > { %v2157_v38 = vmul.f32 %v3625_v15, %v5045_v1  ;;  %v3280_v1 = vld [vmem:[%s5782_s5 + $0x18] sm:$0xff]  ;;  %v1037_v58 = vpop.xlane.xlu1 %1036 }
 0x672   : > { %2785 = vmatpush.bf16.msrb.mxu2 %v3281_v39  ;;  %v3627_v51 = vpop.eup %3626 }
 0x673   : > { %v2165_v56 = vpack.c.bf16 %v2157_v38, %v2156_v7  ;;  %v2256_v23 = vpop.permute.xlu2 %2255  ;;  %v1069_v48 = vmul.f32 %v3627_v51, %v5019_v33  ;;  %v1099_v38 = vpop.f32.mrf.mxu2 }
 0x674   : > { %v2432_v11 = vsel %vm2431_vm2, %v1089_v6, %v2256_v23 }
 0x675   : > { %2233 = vmatmul.bf16.gmra.mxu1 %v2165_v56 }
 0x676   : > { %2786 = vmatpush.bf16.msrb.mxu2 %v3280_v1 }
 0x67a   : > { %2787 = vmatpush.bf16.msrb.mxu2 %v3279_v36 }
 0x67b   : > { %v1849_v10 = vpop.f32.mrf.mxu0  ;;  %v2322_v33 = vpop.permute.xlu2 %2321 }
 0x67c   : > { %2335 = vrot.lane.b32.xlu1 %v1849_v10, %s3751_s18  ;;  %v1101_v23 = vpop.f32.mrf.mxu2 }
 0x67e   : > { %2788 = vmatpush.bf16.msrb.mxu2 %v3278_v21 }
 0x681   : > { %v1033_v61 = vpop.xlane.xlu0 %1032 }
 0x682   : > { %3628 = vrcp.f32 %v1033_v61  ;;  %2789 = vmatpush.bf16.msrb.mxu2 %v3277_v34 }
 0x683   : > { %v1851_v8 = vpop.f32.mrf.mxu0  ;;  %v2219_v62 = vpop.f32.mrf.mxu1 }
 0x684   : > { %2337 = vrot.lane.b32.xlu2 %v1851_v8, %s3751_s18  ;;  %2399 = vrot.lane.b32.xlu0 %v2219_v62, %s3750_s17  ;;  %v2260_v17 = vpop.permute.xlu2 %2259 }
 0x685   : > { %v2434_v39 = vsel %vm2431_vm2, %v1094_v59, %v2260_v17 }
 0x688   : > { %v3629_v44 = vpop.eup %3628 }
 0x689   : > { %v1068_v29 = vmul.f32 %v3629_v44, %v5069_v41  ;;  %v2258_v9 = vpop.permute.xlu1 %2257  ;;  %v1039_v25 = vpop.xlane.xlu0 %1038 }
 0x68a   : > { %3630 = vrcp.f32 %v1039_v25  ;;  %v2433_v52 = vsel %vm2431_vm2, %v1091_v55, %v2258_v9 }
 0x68b   : > { %v1854_v18 = vpop.f32.mrf.mxu0  ;;  %v2221_v46 = vpop.f32.mrf.mxu1  ;;  %v1078_v27 = vpack.c.bf16 %v1069_v48, %v1068_v29  ;;  %3632 = vrcp.f32 %v1037_v58 }
 0x68c   : > { %2401 = vrot.lane.b32.xlu1 %v2221_v46, %s3750_s17  ;;  %2275 = vrot.lane.b32.xlu2 %v1484_v2, %s5934_s13  ;;  %v2326_v13 = vpop.permute.xlu2 %2325 }
 0x68d   : > { %2277 = vrot.lane.b32.xlu0 %v1486_v45, %s5934_s13  ;;  %1118 = vmatmul.bf16.gmra.mxu2 %v1078_v27 }
 0x690   : > { %v3631_v42 = vpop.eup %3630 }
 0x691   : > { %v2386_v63 = vpop.permute.xlu1 %2385  ;;  %v3633_v37 = vpop.eup %3632  ;;  %v1071_v47 = vmul.f32 %v3631_v42, %v5078_v30  ;;  %v5170_v30 = vld [vmem:[%s5781_s4] ss:$0 sm:$0xff] }
 0x692   : > { %v1070_v31 = vmul.f32 %v3633_v37, %v5054_v19  ;;  %v2450_v19 = vsel %vm2448_vm3, %v2433_v52, %v2322_v33 }
 0x693   : > { %v1856_v41 = vpop.f32.mrf.mxu0  ;;  %v2467_v26 = vsel %vm2465_vm4, %v2450_v19, %v2386_v63 }
 0x694   : > { %2339 = vrot.lane.b32.xlu1 %v1854_v18, %s3751_s18  ;;  %2341 = vrot.lane.b32.xlu2 %v1856_v41, %s3751_s18  ;;  %v1079_v49 = vpack.c.bf16 %v1071_v47, %v1070_v31  ;;  %v2487_v12 = vadd.f32 %v5170_v30, %v2467_v26  ;;  %v2264_v7 = vpop.permute.xlu2 %2263 }
 0x695   : > { %v2436_v6 = vsel %vm2431_vm2, %v1099_v38, %v2264_v7 }
 0x696   : > { %v2503_v50 = vmax.f32 %v2487_v12, 0.0 }
 0x699   : > { %v2324_v22 = vpop.permute.xlu1 %2323  ;;  %v1104_v34 = vpop.f32.mrf.mxu2 }
 0x69a   : > { %v2451_v1 = vsel %vm2448_vm3, %v2434_v39, %v2324_v22 }
 0x69b   : > { %v2224_v16 = vpop.f32.mrf.mxu1 }
 0x69c   : > { %2403 = vrot.lane.b32.xlu0 %v2224_v16, %s3750_s17  ;;  %v2320_v60 = vpop.permute.xlu0 %2319  ;;  %v2330_v51 = vpop.permute.xlu2 %2329 }
 0x69d   : > { %1123 = vmatmul.bf16.gmra.mxu2 %v1079_v49  ;;  %v2449_v43 = vsel %vm2448_vm3, %v2432_v11, %v2320_v60 }
 0x6a1   : > { %v2390_v3 = vpop.permute.xlu1 %2389  ;;  %v1106_v49 = vpop.f32.mrf.mxu2 }
 0x6a3   : > { %v2226_v24 = vpop.f32.mrf.mxu1 }
 0x6a4   : > { %2405 = vrot.lane.b32.xlu1 %v2226_v24, %s3750_s17  ;;  %v2384_v32 = vpop.permute.xlu0 %2383  ;;  %v2268_v45 = vpop.permute.xlu2 %2267 }
 0x6a5   : > { %v2466_v14 = vsel %vm2465_vm4, %v2449_v43, %v2384_v32  ;;  %v2438_v11 = vsel %vm2431_vm2, %v1104_v34, %v2268_v45 }
 0x6a6   : > { %v2486_v54 = vadd.f32 %v5170_v30, %v2466_v14 }
 0x6a8   : > { %v2502_v20 = vmax.f32 %v2486_v54, 0.0 }
 0x6a9   : > { %v1489_v40 = vpop.f32.mrf.mxu3  ;;  %v2328_v5 = vpop.permute.xlu1 %2327 }
 0x6aa   : > { %2279 = vrot.lane.b32.xlu2 %v1489_v40, %s5934_s13  ;;  %v2710_v28 = vpack.c.bf16 %v2503_v50, %v2502_v20  ;;  %v2453_v33 = vsel %vm2448_vm3, %v2436_v6, %v2328_v5 }
 0x6ab   : > { %v2229_v56 = vpop.f32.mrf.mxu1 }
 0x6ac   : > { %v2262_v4 = vpop.permute.xlu0 %2261  ;;  %v2334_v52 = vpop.permute.xlu2 %2333 }
 0x6ad   : > { %v2435_v35 = vsel %vm2431_vm2, %v1096_v53, %v2262_v4  ;;  %2790 = vmatmul.bf16.vlgmr.msrb.gmra.mxu2 %v2710_v28 }
 0x6ae   : > { %v2452_v15 = vsel %vm2448_vm3, %v2435_v35, %v2326_v13 }
 0x6af   : > { %v2469_v0 = vsel %vm2465_vm4, %v2452_v15, %v2390_v3 }
 0x6b0   : > { %v2489_v2 = vadd.f32 %v5170_v30, %v2469_v0 }
 0x6b1   : > { %v1491_v10 = vpop.f32.mrf.mxu3  ;;  %v2394_v48 = vpop.permute.xlu1 %2393 }
 0x6b2   : > { %2281 = vrot.lane.b32.xlu0 %v1491_v10, %s5934_s13  ;;  %v2505_v36 = vmax.f32 %v2489_v2, 0.0  ;;  %v1109_v3 = vpop.f32.mrf.mxu2 }
 0x6b3   : > { %v1859_v57 = vpop.f32.mrf.mxu0  ;;  %v2231_v21 = vpop.f32.mrf.mxu1 }
 0x6b4   : > { %2343 = vrot.lane.b32.xlu1 %v1859_v57, %s3751_s18  ;;  %v2388_v61 = vpop.permute.xlu0 %2387  ;;  %v2272_v28 = vpop.permute.xlu2 %2271 }
 0x6b5   : > { %v2468_v58 = vsel %vm2465_vm4, %v2451_v1, %v2388_v61  ;;  %v2440_v7 = vsel %vm2431_vm2, %v1109_v3, %v2272_v28 }
 0x6b6   : > { %v2488_v8 = vadd.f32 %v5170_v30, %v2468_v58 }
 0x6b8   : > { %v2504_v62 = vmax.f32 %v2488_v8, 0.0 }
 0x6b9   : > { %v2332_v37 = vpop.permute.xlu1 %2331 }
 0x6ba   : > { %v2711_v44 = vpack.c.bf16 %v2505_v36, %v2504_v62  ;;  %2407 = vrot.lane.b32.xlu0 %v2229_v56, %s3750_s17  ;;  %v2455_v24 = vsel %vm2448_vm3, %v2438_v11, %v2332_v37  ;;  %v1111_v38 = vpop.f32.mrf.mxu2 }
 0x6bb   : > { %v1861_v29 = vpop.f32.mrf.mxu0 }
 0x6bc   : > { %2345 = vrot.lane.b32.xlu2 %v1861_v29, %s3751_s18  ;;  %2409 = vrot.lane.b32.xlu1 %v2231_v21, %s3750_s17  ;;  %v2266_v9 = vpop.permute.xlu0 %2265 }
 0x6bd   : > { %v2437_v25 = vsel %vm2431_vm2, %v1101_v23, %v2266_v9  ;;  %2795 = vmatmul.bf16.gmra.mxu2 %v2711_v44 }
 0x6be   : > { %v2454_v18 = vsel %vm2448_vm3, %v2437_v25, %v2330_v51 }
 0x6bf   : > { %v2471_v27 = vsel %vm2465_vm4, %v2454_v18, %v2394_v48 }
 0x6c0   : > { %v2491_v42 = vadd.f32 %v5170_v30, %v2471_v27 }
 0x6c1   : > { %v1494_v46 = vpop.f32.mrf.mxu3  ;;  %v2398_v19 = vpop.permute.xlu1 %2397 }
 0x6c2   : > { %v2507_v31 = vmax.f32 %v2491_v42, 0.0 }
 0x6c4   : > { %2283 = vrot.lane.b32.xlu2 %v1494_v46, %s5934_s13  ;;  %v2392_v41 = vpop.permute.xlu0 %2391 }
 0x6c5   : > { %v2470_v63 = vsel %vm2465_vm4, %v2453_v33, %v2392_v41 }
 0x6c6   : > { %v2490_v55 = vadd.f32 %v5170_v30, %v2470_v63 }
 0x6c8   : > { %v2506_v47 = vmax.f32 %v2490_v55, 0.0  ;;  %v5233_v55 = vld [vmem:[%s4070_s30 + $0x70] sm:$0xff] }
 0x6c9   : > { %v1496_v17 = vpop.f32.mrf.mxu3  ;;  %5935 = vst [vmem:[#allocation29_spill] sm:$0xff] %v5233_v55 }
 0x6ca   : > { %2285 = vrot.lane.b32.xlu0 %v1496_v17, %s5934_s13  ;;  %v2712_v16 = vpack.c.bf16 %v2507_v31, %v2506_v47  ;;  %v5237_v47 = vld [vmem:[%s4070_s30 + $0x78] sm:$0xff] }
 0x6cb   : > { %5936 = vst [vmem:[#allocation15_spill] sm:$0xff] %v5237_v47 }
 0x6cc   : > { %v2270_v60 = vpop.permute.xlu0 %2269 }
 0x6cd   : > { %v2439_v59 = vsel %vm2431_vm2, %v1106_v49, %v2270_v60  ;;  %2800 = vmatmul.bf16.gmra.mxu2 %v2712_v16  ;;  %v5241_v16 = vld [vmem:[%s4070_s30 + $0x68] sm:$0xff]  ;;  %v5245_v60 = vld [vmem:[%s4070_s30 + $0x50] sm:$0xff] }
 0x6ce   : > { %v2456_v22 = vsel %vm2448_vm3, %v2439_v59, %v2334_v52  ;;  %5937 = vst [vmem:[#allocation25_spill] sm:$0xff] %v5241_v16  ;;  %v5249_v52 = vld [vmem:[%s4070_s30 + $0x60] sm:$0xff] }
 0x6cf   : > { %v2473_v26 = vsel %vm2465_vm4, %v2456_v22, %v2398_v19  ;;  %5938 = vst [vmem:[#allocation12_spill] sm:$0xff] %v5245_v60 }
 0x6d0   : > { %v2493_v43 = vadd.f32 %v5170_v30, %v2473_v26  ;;  %5939 = vst [vmem:[#allocation20_spill] sm:$0xff] %v5249_v52 }
 0x6d2   : > { %v2509_v54 = vmax.f32 %v2493_v43, 0.0 }
 0x6d4   : > { %v2396_v12 = vpop.permute.xlu0 %2395 }
 0x6d5   : > { %v2472_v32 = vsel %vm2465_vm4, %v2455_v24, %v2396_v12  ;;  %v5256_v12 = vld [vmem:[%s4070_s30 + $0x40] sm:$0xff] }
 0x6d6   : > { %v2492_v13 = vadd.f32 %v5170_v30, %v2472_v32  ;;  %5940 = vst [vmem:[#allocation6_spill] sm:$0xff] %v5256_v12  ;;  %v5260_v32 = vld [vmem:[%s4070_s30 + $0x48] sm:$0xff] }
 0x6d7   : > { %5941 = vst [vmem:[#allocation22_spill] sm:$0xff] %v5260_v32 }
 0x6d8   : > { %v2508_v14 = vmax.f32 %v2492_v13, 0.0 }
 0x6da   : > { %v2713_v53 = vpack.c.bf16 %v2509_v54, %v2508_v14  ;;  %v5265_v14 = vld [vmem:[%s4070_s30 + $0x58] sm:$0xff] }
 0x6db   : > { %5942 = vst [vmem:[#allocation8_spill] sm:$0xff] %v5265_v14 }
 0x6dc   : > { %v2274_v20 = vpop.permute.xlu0 %2273 }
 0x6dd   : > { %2805 = vmatmul.bf16.gmra.mxu2 %v2713_v53  ;;  %v2441_v5 = vsel %vm2431_vm2, %v1111_v38, %v2274_v20  ;;  %v5285_v38 = vld [vmem:[%s4070_s30 + $0x10] sm:$0xff] }
 0x6de   : > { %v2338_v10 = vpop.permute.xlu2 %2337  ;;  %5946 = vst [vmem:[#allocation13_spill] sm:$0xff] %v5285_v38 }
 0x6df   : > { %v2458_v57 = vsel %vm2448_vm3, %v2441_v5, %v2338_v10  ;;  %v5297_v5 = vld [vmem:[%s4070_s30 + $0x8] sm:$0xff]  ;;  %v5301_v10 = vld [vmem:[%s4070_s30] sm:$0xff] }
 0x6e6   : > { %v2276_v44 = vpop.permute.xlu2 %2275 }
 0x6e8   : > { %v1114_v51 = vpop.f32.mrf.mxu2 }
 0x6e9   : > { %v2442_v48 = vsel %vm2431_vm2, %v1114_v51, %v2276_v44 }
 0x6eb   : > { %v1864_v50 = vpop.f32.mrf.mxu0 }
 0x6ec   : > { %2347 = vrot.lane.b32.xlu1 %v1864_v50, %s3751_s18 }
 0x6ee   : > { %v2336_v35 = vpop.permute.xlu1 %2335  ;;  %v2342_v27 = vpop.permute.xlu2 %2341 }
 0x6ef   : > { %v2457_v56 = vsel %vm2448_vm3, %v2440_v7, %v2336_v35  ;;  %v5273_v35 = vld [vmem:[%s4070_s30 + $0x38] sm:$0xff]  ;;  %v5281_v7 = vld [vmem:[%s4070_s30 + $0x30] sm:$0xff] }
 0x6f0   : > { %v1116_v9 = vpop.f32.mrf.mxu2  ;;  %5943 = vst [vmem:[#allocation24_spill] sm:$0xff] %v5273_v35 }
 0x6f1   : > { %5945 = vst [vmem:[#allocation26_spill] sm:$0xff] %v5281_v7 }
 0x6f2   : > { %v2234_v40 = vpop.f32.mrf.mxu1 }
 0x6f3   : > { %v1866_v4 = vpop.f32.mrf.mxu0  ;;  %2411 = vrot.lane.b32.xlu0 %v2234_v40, %s3750_s17 }
 0x6f4   : > { %2349 = vrot.lane.b32.xlu2 %v1866_v4, %s3751_s18 }
 0x6f6   : > { %v2400_v15 = vpop.permute.xlu0 %2399 }
 0x6f7   : > { %v2474_v39 = vsel %vm2465_vm4, %v2457_v56, %v2400_v15  ;;  %v5277_v15 = vld [vmem:[%s4070_s30 + $0x20] sm:$0xff]  ;;  %v5289_v56 = vld [vmem:[%s4070_s30 + $0x18] sm:$0xff] }
 0x6f8   : > { %v2494_v1 = vadd.f32 %v5170_v30, %v2474_v39  ;;  %5944 = vst [vmem:[#allocation9_spill] sm:$0xff] %v5277_v15 }
 0x6f9   : > { %5947 = vst [vmem:[#allocation27_spill] sm:$0xff] %v5289_v56 }
 0x6fa   : > { %v2236_v0 = vpop.f32.mrf.mxu1  ;;  %v2510_v8 = vmax.f32 %v2494_v1, 0.0 }
 0x6fb   : > { %2413 = vrot.lane.b32.xlu1 %v2236_v0, %s3750_s17  ;;  %v5293_v0 = vld [vmem:[%s4070_s30 + $0x28] sm:$0xff]  ;;  %s3091_s30 = scalar_lea.hbm %s5788_s11, %s3842_s10  ;;  %s3706_s17 = scalar_lea.hbm %s5788_s11, 2 }
 0x6fc   : > { %5948 = vst [vmem:[#allocation11_spill] sm:$0xff] %v5293_v0  ;;  %s3095_s16 = sshll.u32 %s3091_s30, 4  ;;  %s3096_s16 = int_to_ptr.hbm [resolvable:$true] %s3095_s16 }
 0x6fd   : > { %s3700_s10 = sshra.s32 %s3096_s16, 4  ;;  %s3701_s10 = int_to_ptr.hbm [resolvable:$true] %s3700_s10 }
 0x6fe   : > { %v2402_v61 = vpop.permute.xlu1 %2401  ;;  %s3702_s26 = scalar_lea.hbm %s3701_s10, 1  ;;  %p3707_p0 = scmp.lt.s32.totalorder %s3701_s10, %s5788_s11 }
 0x6ff   : > { %v2475_v2 = vsel %vm2465_vm4, %v2458_v57, %v2402_v61  ;;  %v2278_v23 = vpop.permute.xlu0 %2277  ;;  %p3703_p11 = scmp.ne.s32.totalorder %s3701_s10, %s3702_s26  ;;  %p3708_p1 = scmp.lt.s32.totalorder %s3706_s17, %s3702_s26 }
 0x700   : > { %v2495_v58 = vadd.f32 %v5170_v30, %v2475_v2  ;;  %v2443_v18 = vsel %vm2431_vm2, %v1116_v9, %v2278_v23 }
 0x701   : > { %v2460_v45 = vsel %vm2448_vm3, %v2443_v18, %v2342_v27  ;;  %p3704_p12 = pnand %p3703_p11, %p3859_p5  ;;  %p3709_p2 = por %p3708_p1, %p3707_p0 }
 0x702   : > { %v2511_v62 = vmax.f32 %v2495_v58, 0.0 }
 0x703   : > { %p3705_p13 = pneg %p3704_p12 }
 0x704   : > { %v2714_v36 = vpack.c.bf16 %v2511_v62, %v2510_v8  ;;  %v2280_v17 = vpop.permute.xlu2 %2279 }
 0x705   : > { %p3710_p3 = pnand %p3709_p2, %p3705_p13 }
 0x706   : > { %2810 = vmatmul.bf16.gmra.mxu2 %v2714_v36  ;;  %v2340_v21 = vpop.permute.xlu1 %2339 }
 0x707   : > { %v2459_v25 = vsel %vm2448_vm3, %v2442_v48, %v2340_v21 }
 0x70e   : > { %v2404_v29 = vpop.permute.xlu0 %2403 }
 0x70f   : > { %v2476_v46 = vsel %vm2465_vm4, %v2459_v25, %v2404_v29 }
 0x710   : > { %v2496_v34 = vadd.f32 %v5170_v30, %v2476_v46  ;;  %v1119_v31 = vpop.f32.mrf.mxu2 }
 0x711   : > { %v2444_v26 = vsel %vm2431_vm2, %v1119_v31, %v2280_v17 }
 0x712   : > { %v2512_v42 = vmax.f32 %v2496_v34, 0.0 }
 0x716   : > { %v2406_v6 = vpop.permute.xlu1 %2405  ;;  %v2346_v11 = vpop.permute.xlu2 %2345 }
 0x717   : > { %v2477_v33 = vsel %vm2465_vm4, %v2460_v45, %v2406_v6 }
 0x718   : > { %v2497_v41 = vadd.f32 %v5170_v30, %v2477_v33  ;;  %v1121_v22 = vpop.f32.mrf.mxu2 }
 0x71a   : > { %v2513_v63 = vmax.f32 %v2497_v41, 0.0 }
 0x71c   : > { %v2715_v37 = vpack.c.bf16 %v2513_v63, %v2512_v42 }
 0x71d   : > { %2546 = vadd.xlane.f32.xlu2 %v5233_v55  ;;  %2548 = vadd.xlane.f32.xlu0 %v5237_v47 }
 0x71e   : > { %2815 = vmatmul.bf16.gmra.mxu2 %v2715_v37  ;;  %v2284_v1 = vpop.permute.xlu2 %2283 }
 0x720   : > { %v1124_v57 = vpop.f32.mrf.mxu2 }
 0x721   : > { %v2446_v58 = vsel %vm2431_vm2, %v1124_v57, %v2284_v1 }
 0x724   : > { %v2282_v49 = vpop.permute.xlu0 %2281 }
 0x725   : > { %2544 = vadd.xlane.f32.xlu2 %v5241_v16  ;;  %2538 = vadd.xlane.f32.xlu0 %v5245_v60  ;;  %v2445_v19 = vsel %vm2431_vm2, %v1121_v22, %v2282_v49 }
 0x726   : > { %2542 = vadd.xlane.f32.xlu1 %v5249_v52  ;;  %v2344_v59 = vpop.permute.xlu1 %2343  ;;  %v2462_v53 = vsel %vm2448_vm3, %v2445_v19, %v2346_v11 }
 0x727   : > { %v2461_v24 = vsel %vm2448_vm3, %v2444_v26, %v2344_v59 }
 0x728   : > { %v1126_v62 = vpop.f32.mrf.mxu2 }
 0x72c   : > { %v2408_v43 = vpop.permute.xlu0 %2407 }
 0x72d   : > { %2534 = vadd.xlane.f32.xlu2 %v5256_v12  ;;  %2536 = vadd.xlane.f32.xlu0 %v5260_v32  ;;  %v2478_v13 = vsel %vm2465_vm4, %v2461_v24, %v2408_v43 }
 0x72e   : > { %2540 = vadd.xlane.f32.xlu1 %v5265_v14  ;;  %v2410_v54 = vpop.permute.xlu1 %2409  ;;  %v2498_v50 = vadd.f32 %v5170_v30, %v2478_v13 }
 0x72f   : > { %v2479_v3 = vsel %vm2465_vm4, %v2462_v53, %v2410_v54 }
 0x730   : > { %v2499_v20 = vadd.f32 %v5170_v30, %v2479_v3  ;;  %v2514_v40 = vmax.f32 %v2498_v50, 0.0  ;;  %v5312_v27 = vpop.f32.mrf.mxu2 }
 0x732   : > { %v2515_v28 = vmax.f32 %v2499_v20, 0.0 }
 0x734   : > { %v2716_v4 = vpack.c.bf16 %v2515_v28, %v2514_v40 }
 0x735   : > { %2532 = vadd.xlane.f32.xlu2 %v5273_v35  ;;  %2526 = vadd.xlane.f32.xlu0 %v5277_v15 }
 0x736   : > { %2530 = vadd.xlane.f32.xlu1 %v5281_v7  ;;  %2820 = vmatmul.bf16.gmra.mxu2 %v2716_v4 }
 0x738   : > { %v5314_v34 = vpop.f32.mrf.mxu2 }
 0x73c   : > { %v2286_v39 = vpop.permute.xlu0 %2285 }
 0x73d   : > { %2522 = vadd.xlane.f32.xlu2 %v5285_v38  ;;  %2524 = vadd.xlane.f32.xlu0 %v5289_v56  ;;  %v2447_v23 = vsel %vm2431_vm2, %v1126_v62, %v2286_v39 }
 0x73e   : > { %2528 = vadd.xlane.f32.xlu1 %v5293_v0 }
 0x740   : > { %v5316_v6 = vpop.f32.mrf.mxu2 }
 0x745   : > { %2520 = vadd.xlane.f32.xlu2 %v5297_v5 }
 0x746   : > { %2518 = vadd.xlane.f32.xlu1 %v5301_v10 }
 0x748   : > { %v5318_v45 = vpop.f32.mrf.mxu2 }
 0x74e   : > { %v2350_v36 = vpop.permute.xlu2 %2349 }
 0x74f   : > { %v2464_v44 = vsel %vm2448_vm3, %v2447_v23, %v2350_v36 }
 0x750   : > { %v5320_v33 = vpop.f32.mrf.mxu2 }
 0x758   : > { %v5322_v41 = vpop.f32.mrf.mxu2 }
 0x75e   : > { %v2348_v61 = vpop.permute.xlu1 %2347 }
 0x75f   : > { %v2463_v8 = vsel %vm2448_vm3, %v2446_v58, %v2348_v61 }
 0x760   : > { %v5324_v42 = vpop.f32.mrf.mxu2 }
 0x765   : > { %v2412_v2 = vpop.permute.xlu0 %2411 }
 0x766   : > { %v2480_v51 = vsel %vm2465_vm4, %v2463_v8, %v2412_v2 }
 0x767   : > { %v2500_v21 = vadd.f32 %v5170_v30, %v2480_v51 }
 0x768   : > { %v5326_v63 = vpop.f32.mrf.mxu2 }
 0x769   : > { %v2516_v25 = vmax.f32 %v2500_v21, 0.0 }
 0x76d   : > { %v2414_v29 = vpop.permute.xlu1 %2413 }
 0x76e   : > { %v2481_v48 = vsel %vm2465_vm4, %v2464_v44, %v2414_v29 }
 0x76f   : > { %v2501_v9 = vadd.f32 %v5170_v30, %v2481_v48 }
 0x771   : > { %v2517_v18 = vmax.f32 %v2501_v9, 0.0 }
 0x773   : > { %v2717_v46 = vpack.c.bf16 %v2517_v18, %v2516_v25 }
 0x775   : > { %2825 = vmatmul.bf16.gmra.mxu2 %v2717_v46 }
 0x789   : > { %v5328_v30 = vpop.f32.mrf.mxu2 }
 0x790   : > { %v5330_v37 = vpop.xlane.xlu2 %2546  ;;  %v5332_v31 = vpop.xlane.xlu0 %2548 }
 0x791   : > { %v5334_v17 = vpop.f32.mrf.mxu2  ;;  %3634 = vrsqrt.f32 %v5330_v37  ;;  %vm2696_vm5 = vweird.f32 %v5330_v37  ;;  %vm2706_vm6 = vweird.f32 %v5332_v31 }
 0x792   : > { %3636 = vrsqrt.f32 %v5332_v31 }
 0x797   : > { %v5359_v54 = vpop.eup %3634 }
 0x798   : > { %v5336_v49 = vpop.xlane.xlu2 %2544  ;;  %v5342_v19 = vpop.xlane.xlu0 %2538  ;;  %v2691_v4 = vmul.f32 %v5359_v54, %v5330_v37  ;;  %vm2697_vm3 = vweird.f32 %v5359_v54 }
 0x799   : > { %v5338_v59 = vpop.xlane.xlu1 %2542  ;;  %3638 = vrsqrt.f32 %v5342_v19  ;;  %v5363_v50 = vpop.eup %3636  ;;  %vm2686_vm7 = vweird.f32 %v5336_v49  ;;  %vm2656_vm8 = vweird.f32 %v5342_v19 }
 0x79a   : > { %3640 = vrsqrt.f32 %v5336_v49  ;;  %v2701_v39 = vmul.f32 %v5363_v50, %v5332_v31  ;;  %v2692_v8 = vmul.f32 %v5359_v54, %v2691_v4  ;;  %vm2676_vm9 = vweird.f32 %v5338_v59 }
 0x79b   : > { %3642 = vrsqrt.f32 %v5338_v59 }
 0x79c   : > { %v2702_v62 = vmul.f32 %v5363_v50, %v2701_v39  ;;  %v2693_v25 = vmul.f32 0.5, %v2692_v8 }
 0x79e   : > { %v5407_v18 = vmul.f32 0.5, %v2702_v62 }
 0x79f   : > { %v5366_v3 = vpop.eup %3638 }
 0x7a0   : > { %v5344_v26 = vpop.xlane.xlu2 %2534  ;;  %v5353_v43 = vpop.xlane.xlu0 %2536  ;;  %v2651_v57 = vmul.f32 %v5366_v3, %v5342_v19  ;;  %v2704_v55 = vsub.f32 1.5, %v5407_v18  ;;  %vm2657_vm10 = vweird.f32 %v5366_v3 }
 0x7a1   : > { %v5340_v22 = vpop.f32.mrf.mxu2  ;;  %v5346_v11 = vpop.xlane.xlu1 %2540  ;;  %vm2636_vm11 = vweird.f32 %v5344_v26  ;;  %vm2646_vm15 = vweird.f32 %v5353_v43  ;;  %vm5456_vm1 = vmor %vm2656_vm8, %vm2657_vm10  ;;  %vm2707_vm8 = vweird.f32 %v5363_v50 }
 0x7a2   : > { %3644 = vrsqrt.f32 %v5346_v11  ;;  %v5370_v40 = vpop.eup %3640  ;;  %v2652_v51 = vmul.f32 %v5366_v3, %v2651_v57  ;;  %vm2666_vm14 = vweird.f32 %v5346_v11 }
 0x7a3   : > { %3646 = vrsqrt.f32 %v5344_v26  ;;  %v5373_v28 = vpop.eup %3642  ;;  %v2681_v1 = vmul.f32 %v5370_v40, %v5336_v49  ;;  %vm2687_vm0 = vweird.f32 %v5370_v40  ;;  %v2705_v49 = vmul.f32 %v5363_v50, %v2704_v55 }
 0x7a4   : > { %3648 = vrsqrt.f32 %v5353_v43  ;;  %v2671_v58 = vmul.f32 %v5373_v28, %v5338_v59  ;;  %v2653_v4 = vmul.f32 0.5, %v2652_v51  ;;  %v2694_v51 = vsub.f32 1.5, %v2693_v25 }
 0x7a5   : > { %v2682_v21 = vmul.f32 %v5370_v40, %v2681_v1  ;;  %vm2677_vm12 = vweird.f32 %v5373_v28 }
 0x7a6   : > { %v2672_v9 = vmul.f32 %v5373_v28, %v2671_v58  ;;  %vm5467_vm4 = vmor %vm2676_vm9, %vm2677_vm12  ;;  %v2695_v0 = vmul.f32 %v5359_v54, %v2694_v51 }
 0x7a7   : > { %v2683_v1 = vmul.f32 0.5, %v2682_v21  ;;  %vm5482_vm9 = vmor %vm2686_vm7, %vm2687_vm0 }
 0x7a8   : > { %v5357_v13 = vpop.xlane.xlu2 %2532  ;;  %v5384_v61 = vpop.xlane.xlu0 %2526  ;;  %v2673_v8 = vmul.f32 0.5, %v2672_v9  ;;  %vm5496_vm12 = vmor %vm2696_vm5, %vm2697_vm3 }
 0x7a9   : > { %v5349_v24 = vpop.f32.mrf.mxu2  ;;  %v5361_v53 = vpop.xlane.xlu1 %2530  ;;  %3650 = vrsqrt.f32 %v5357_v13  ;;  %v2684_v52 = vsub.f32 1.5, %v2683_v1  ;;  %vm2626_vm0 = vweird.f32 %v5357_v13  ;;  %vm2708_vm5 = vmor %vm2706_vm6, %vm2707_vm8  ;;  %vm2596_vm8 = vweird.f32 %v5384_v61 }
 0x7aa   : > { %v5386_v2 = vpop.eup %3644  ;;  %3652 = vrsqrt.f32 %v5361_v53  ;;  %v2674_v18 = vsub.f32 1.5, %v2673_v8 }
 0x7ab   : > { %v5392_v36 = vpop.eup %3646  ;;  %v2661_v29 = vmul.f32 %v5386_v2, %v5346_v11  ;;  %vm2667_vm10 = vweird.f32 %v5386_v2 }
 0x7ac   : > { %v5398_v44 = vpop.eup %3648  ;;  %v2631_v39 = vmul.f32 %v5392_v36, %v5344_v26  ;;  %vm2637_vm13 = vweird.f32 %v5392_v36 }
 0x7ad   : > { %v2641_v57 = vmul.f32 %v5398_v44, %v5353_v43  ;;  %v2662_v47 = vmul.f32 %v5386_v2, %v2661_v29  ;;  %v2654_v29 = vsub.f32 1.5, %v2653_v4  ;;  %vm2647_vm7 = vweird.f32 %v5398_v44 }
 0x7ae   : > { %v2632_v16 = vmul.f32 %v5392_v36, %v2631_v39  ;;  %vm5575_vm3 = vmor %vm2646_vm15, %vm2647_vm7 }
 0x7af   : > { %v5418_v58 = vpop.eup %3650  ;;  %v2642_v9 = vmul.f32 %v5398_v44, %v2641_v57  ;;  %v2663_v14 = vmul.f32 0.5, %v2662_v47  ;;  %v2655_v32 = vmul.f32 %v5366_v3, %v2654_v29 }
 0x7b0   : > { %v5396_v23 = vpop.xlane.xlu2 %2522  ;;  %v5423_v62 = vpop.eup %3652  ;;  %v2621_v25 = vmul.f32 %v5418_v58, %v5357_v13  ;;  %v2633_v1 = vmul.f32 0.5, %v2632_v16  ;;  %vm2627_vm6 = vweird.f32 %v5418_v58 }
 0x7b1   : > { %v5404_v48 = vpop.xlane.xlu1 %2528  ;;  %v5428_v21 = vpop.xlane.xlu0 %2524  ;;  %v2611_v60 = vmul.f32 %v5423_v62, %v5361_v53  ;;  %v2643_v8 = vmul.f32 0.5, %v2642_v9  ;;  %v2664_v35 = vsub.f32 1.5, %v2663_v14  ;;  %v2675_v14 = vmul.f32 %v5373_v28, %v2674_v18  ;;  %vm5610_vm15 = vmor %vm2626_vm0, %vm2627_vm6 }
 0x7b2   : > { %3654 = vrsqrt.f32 %v5404_v48  ;;  %v2622_v7 = vmul.f32 %v5418_v58, %v2621_v25  ;;  %v2685_v9 = vmul.f32 %v5370_v40, %v2684_v52  ;;  %v2634_v15 = vsub.f32 1.5, %v2633_v1 }
 0x7b3   : > { %3656 = vrsqrt.f32 %v5384_v61  ;;  %v2612_v29 = vmul.f32 %v5423_v62, %v2611_v60  ;;  %v5507_v56 = vsel %vm5456_vm1, %v5366_v3, %v2655_v32  ;;  %v2644_v37 = vsub.f32 1.5, %v2643_v8  ;;  %vm5521_vm1 = vmor %vm2666_vm14, %vm2667_vm10 }
 0x7b4   : > { %3658 = vrsqrt.f32 %v5396_v23  ;;  %v2623_v51 = vmul.f32 0.5, %v2622_v7  ;;  %v2665_v1 = vmul.f32 %v5386_v2, %v2664_v35  ;;  %v5530_v7 = vsel %vm5467_vm4, %v5373_v28, %v2675_v14  ;;  %vm5560_vm14 = vmor %vm2636_vm11, %vm2637_vm13 }
 0x7b5   : > { %3660 = vrsqrt.f32 %v5428_v21  ;;  %v2613_v38 = vmul.f32 0.5, %v2612_v29  ;;  %v5535_v35 = vsel %vm5482_vm9, %v5370_v40, %v2685_v9  ;;  %v5545_v8 = vsel %vm5496_vm12, %v5359_v54, %v2695_v0 }
 0x7b6   : > { %v5548_v28 = vsel %vm2708_vm5, %v5363_v50, %v2705_v49  ;;  %v2635_v40 = vmul.f32 %v5392_v36, %v2634_v15  ;;  %v2645_v54 = vmul.f32 %v5398_v44, %v2644_v37  ;;  %v2624_v50 = vsub.f32 1.5, %v2623_v51 }
 0x7b7   : > { %v5569_v15 = vsel %vm5521_vm1, %v5386_v2, %v2665_v1  ;;  %vm2616_vm11 = vweird.f32 %v5361_v53  ;;  %vm2617_vm13 = vweird.f32 %v5423_v62  ;;  %vm2606_vm10 = vweird.f32 %v5404_v48 }
 0x7b8   : > { %v5440_v4 = vpop.xlane.xlu2 %2520  ;;  %v5449_v57 = vpop.eup %3654  ;;  %v2850_v1 = vmul.f32 %v5349_v24, %v5569_v15  ;;  %v5598_v12 = vsel %vm5560_vm14, %v5392_v36, %v2635_v40  ;;  %v2625_v53 = vmul.f32 %v5418_v58, %v2624_v50  ;;  %vm2618_vm4 = vmor %vm2616_vm11, %vm2617_vm13  ;;  %vm2576_vm7 = vweird.f32 %v5396_v23 }
 0x7b9   : > { %v5368_v20 = vpop.f32.mrf.mxu2  ;;  %v5446_v47 = vpop.xlane.xlu1 %2518  ;;  %3662 = vrsqrt.f32 %v5440_v4  ;;  %v2601_v60 = vmul.f32 %v5449_v57, %v5404_v48  ;;  %vm2607_vm12 = vweird.f32 %v5449_v57  ;;  %vm2586_vm1 = vweird.f32 %v5428_v21 }
 0x7ba   : > { %v5472_v19 = vpop.eup %3656  ;;  %3664 = vrsqrt.f32 %v5446_v47  ;;  %v5631_v50 = vsel %vm5610_vm15, %v5418_v58, %v2625_v53  ;;  %vm2608_vm5 = vmor %vm2606_vm10, %vm2607_vm12  ;;  %vm2566_vm13 = vweird.f32 %v5440_v4  ;;  %vm3045_vm12 = vcmask 130048  }
 0x7bb   : > { %v5486_v25 = vpop.eup %3658  ;;  %v2591_v55 = vmul.f32 %v5472_v19, %v5384_v61  ;;  %v2602_v11 = vmul.f32 %v5449_v57, %v2601_v60  ;;  %vm2597_vm9 = vweird.f32 %v5472_v19 }
 0x7bc   : > { %v5501_v18 = vpop.eup %3660  ;;  %v2571_v32 = vmul.f32 %v5486_v25, %v5396_v23  ;;  %vm2577_vm0 = vweird.f32 %v5486_v25  ;;  %vm5645_vm14 = vmor %vm2596_vm8, %vm2597_vm9 }
 0x7bd   : > { %v2581_v3 = vmul.f32 %v5501_v18, %v5428_v21  ;;  %v2592_v59 = vmul.f32 %v5472_v19, %v2591_v55  ;;  %v2603_v37 = vmul.f32 0.5, %v2602_v11  ;;  %v2849_v55 = vmul.f32 %v5340_v22, %v5507_v56 }
 0x7be   : > { %v2572_v60 = vmul.f32 %v5486_v25, %v2571_v32  ;;  %v5603_v22 = vsel %vm5575_vm3, %v5398_v44, %v2645_v54  ;;  %vm2587_vm6 = vweird.f32 %v5501_v18  ;;  %vm5654_vm3 = vmor %vm2576_vm7, %vm2577_vm0 }
 0x7bf   : > { %v5537_v31 = vpop.eup %3662  ;;  %v2582_v51 = vmul.f32 %v5501_v18, %v2581_v3  ;;  %v2604_v11 = vsub.f32 1.5, %v2603_v37  ;;  %v2860_v40 = vpack.c.bf16 %v2850_v1, %v2849_v55  ;;  %v2848_v0 = vmul.f32 %v5334_v17, %v5603_v22  ;;  %vm2588_vm11 = vmor %vm2586_vm1, %vm2587_vm6 }
 0x7c0   : > { %v5550_v29 = vpop.eup %3664  ;;  %v2561_v2 = vmul.f32 %v5537_v31, %v5440_v4  ;;  %v2573_v32 = vmul.f32 0.5, %v2572_v60  ;;  %vm2567_vm15 = vweird.f32 %v5537_v31 }
 0x7c1   : > { %v5409_v46 = vpop.f32.mrf.mxu2  ;;  %v2551_v43 = vmul.f32 %v5550_v29, %v5446_v47  ;;  %v2583_v3 = vmul.f32 0.5, %v2582_v51  ;;  %vm2557_vm8 = vweird.f32 %v5550_v29  ;;  %vm2568_vm9 = vmor %vm2566_vm13, %vm2567_vm15 }
 0x7c2   : > { %v2852_v52 = vmul.f32 %v5409_v46, %v5535_v35  ;;  %v2593_v46 = vmul.f32 0.5, %v2592_v59  ;;  %v2562_v44 = vmul.f32 %v5537_v31, %v2561_v2  ;;  %v2605_v59 = vmul.f32 %v5449_v57, %v2604_v11  ;;  %v5976_v11 = vld [vmem:[#allocation22_spill] sm:$0xff] }
 0x7c3   : > { %v2584_v26 = vsub.f32 1.5, %v2583_v3 }
 0x7c4   : > { %v2594_v13 = vsub.f32 1.5, %v2593_v46  ;;  %v5660_v37 = vsel %vm2608_vm5, %v5449_v57, %v2605_v59  ;;  %v5703_v59 = vld [vmem:[%s5783_s6] ss:$0 sm:$0xff] }
 0x7c5   : > { %v2844_v51 = vmul.f32 %v5322_v41, %v5660_v37 }
 0x7f8   : > { %v2826_v39 = vpop.f32.mrf.mxu2 }
 0x7f9   : > { %v2853_v14 = vmul.f32 %v2826_v39, %v5545_v8  ;;  %v2614_v39 = vsub.f32 1.5, %v2613_v38  ;;  %v2851_v38 = vmul.f32 %v5368_v20, %v5530_v7  ;;  %v5970_v20 = vld [vmem:[#allocation27_spill] sm:$0xff] }
 0x7fb   : > { %v2615_v24 = vmul.f32 %v5423_v62, %v2614_v39  ;;  %v2861_v36 = vpack.c.bf16 %v2852_v52, %v2851_v38  ;;  %v2563_v39 = vmul.f32 0.5, %v2562_v44  ;;  %v2585_v52 = vmul.f32 %v5501_v18, %v2584_v26  ;;  %v5977_v44 = vld [vmem:[#allocation12_spill] sm:$0xff] }
 0x7fd   : > { %v5626_v54 = vsel %vm2618_vm4, %v5423_v62, %v2615_v24  ;;  %v2846_v62 = vmul.f32 %v5326_v63, %v5631_v50  ;;  %v2564_v61 = vsub.f32 1.5, %v2563_v39  ;;  %vm2556_vm4 = vweird.f32 %v5446_v47  ;;  %v5972_v24 = vld [vmem:[#allocation11_spill] sm:$0xff] }
 0x7fe   : > { %v2845_v48 = vmul.f32 %v5324_v42, %v5626_v54  ;;  %v2589_v47 = vsel %vm2588_vm11, %v5501_v18, %v2585_v52  ;;  %vm2558_vm10 = vmor %vm2556_vm4, %vm2557_vm8 }
 0x7ff   : > { %v2565_v57 = vmul.f32 %v5537_v31, %v2564_v61  ;;  %v2842_v41 = vmul.f32 %v5318_v45, %v2589_v47 }
 0x800   : > { %v2828_v16 = vpop.f32.mrf.mxu2  ;;  %v2858_v63 = vpack.c.bf16 %v2846_v62, %v2845_v48 }
 0x801   : > { %v2854_v9 = vmul.f32 %v2828_v16, %v5548_v28  ;;  %v2552_v16 = vmul.f32 %v5550_v29, %v2551_v43  ;;  %v2569_v46 = vsel %vm2568_vm9, %v5537_v31, %v2565_v57 }
 0x803   : > { %v2862_v49 = vpack.c.bf16 %v2854_v9, %v2853_v14  ;;  %v2847_v14 = vmul.f32 %v5328_v30, %v5598_v12  ;;  %v2574_v9 = vsub.f32 1.5, %v2573_v32  ;;  %v2553_v60 = vmul.f32 0.5, %v2552_v16  ;;  %v5973_v32 = vld [vmem:[#allocation26_spill] sm:$0xff]  ;;  %v5979_v16 = vld [vmem:[#allocation20_spill] sm:$0xff] }
 0x804   : > { %v2595_v30 = vmul.f32 %v5472_v19, %v2594_v13  ;;  %v5980_v13 = vld [vmem:[#allocation25_spill] sm:$0xff] }
 0x805   : > { %2863 = vmatpush.bf16.msrb.mxu3 %v2862_v49  ;;  %v2575_v23 = vmul.f32 %v5486_v25, %v2574_v9  ;;  %v2859_v58 = vpack.c.bf16 %v2848_v0, %v2847_v14  ;;  %v2554_v49 = vsub.f32 1.5, %v2553_v60  ;;  %v5981_v14 = vld [vmem:[#allocation29_spill] sm:$0xff]  ;;  %v5982_v9 = vld [vmem:[#allocation15_spill] sm:$0xff] }
 0x806   : > { %v2599_v42 = vsel %vm5645_vm14, %v5472_v19, %v2595_v30  ;;  %v2838_v0 = vpack.c.bf16 %v5982_v9, %v5981_v14 }
 0x807   : > { %v2555_v4 = vmul.f32 %v5550_v29, %v2554_v49  ;;  %v2579_v2 = vsel %vm5654_vm3, %v5486_v25, %v2575_v23  ;;  %v2843_v43 = vmul.f32 %v5320_v33, %v2599_v42  ;;  %v2840_v25 = vmul.f32 %v5314_v34, %v2569_v46  ;;  %v5975_v34 = vld [vmem:[#allocation6_spill] sm:$0xff] }
 0x808   : > { %v2841_v55 = vmul.f32 %v5316_v6, %v2579_v2  ;;  %v2831_v33 = vpack.c.bf16 %v5297_v5, %v5301_v10  ;;  %v5969_v6 = vld [vmem:[#allocation13_spill] sm:$0xff]  ;;  %v2835_v3 = vpack.c.bf16 %v5976_v11, %v5975_v34  ;;  %v5978_v5 = vld [vmem:[#allocation8_spill] sm:$0xff] }
 0x809   : > { %2864 = vmatpush.bf16.msrb.mxu3 %v2861_v36  ;;  %v2857_v19 = vpack.c.bf16 %v2844_v51, %v2843_v43  ;;  %v2559_v38 = vsel %vm2558_vm10, %v5550_v29, %v2555_v4  ;;  %v2832_v45 = vpack.c.bf16 %v5970_v20, %v5969_v6  ;;  %v5971_v29 = vld [vmem:[#allocation9_spill] sm:$0xff]  ;;  %v5974_v36 = vld [vmem:[#allocation24_spill] sm:$0xff]  ;;  %v2836_v10 = vpack.c.bf16 %v5978_v5, %v5977_v44 }
 0x80a   : > { %v2856_v1 = vpack.c.bf16 %v2842_v41, %v2841_v55  ;;  %v2839_v53 = vmul.f32 %v5312_v27, %v2559_v38  ;;  %v2833_v31 = vpack.c.bf16 %v5972_v24, %v5971_v29  ;;  %v2834_v27 = vpack.c.bf16 %v5974_v36, %v5973_v32 }
 0x80c   : > { %v2855_v18 = vpack.c.bf16 %v2840_v25, %v2839_v53 }
 0x80d   : > { %2865 = vmatpush.bf16.msrb.mxu3 %v2860_v40  ;;  %v2837_v40 = vpack.c.bf16 %v5980_v13, %v5979_v16 }
 0x811   : > { %2866 = vmatpush.bf16.msrb.mxu3 %v2859_v58 }
 0x815   : > { %2867 = vmatpush.bf16.msrb.mxu3 %v2858_v63 }
 0x819   : > { %2868 = vmatpush.bf16.msrb.mxu3 %v2857_v19 }
 0x81d   : > { %2869 = vmatpush.bf16.msrb.mxu3 %v2856_v1 }
 0x821   : > { %2870 = vmatpush.bf16.msrb.mxu3 %v2855_v18 }
 0x824   : > { %2871 = vmatmul.bf16.vlgmr.msrb.gmra.mxu3 %v2831_v33 }
 0x834   : > { %2876 = vmatmul.bf16.gmra.mxu3 %v2832_v45 }
 0x844   : > { %2881 = vmatmul.bf16.gmra.mxu3 %v2833_v31 }
 0x854   : > { %2886 = vmatmul.bf16.gmra.mxu3 %v2834_v27 }
 0x864   : > { %2891 = vmatmul.bf16.gmra.mxu3 %v2835_v3 }
 0x874   : > { %2896 = vmatmul.bf16.gmra.mxu3 %v2836_v10 }
 0x884   : > { %2901 = vmatmul.bf16.gmra.mxu3 %v2837_v40 }
 0x894   : > { %2906 = vmatmul.bf16.gmra.mxu3 %v2838_v0 }
 0x8a7   : > { %v2872_v26 = vpop.f32.mrf.mxu3 }
 0x8a8   : > { %v2912_v39 = vmul.f32 %v2872_v26, %v2559_v38 }
 0x8aa   : > { %v2932_v60 = vadd.f32 %v5703_v59, %v2912_v39 }
 0x8ac   : > { %v2948_v30 = vmax.f32 %v2932_v60, 0.0 }
 0x8ae   : > { %2964 = vxpose.xlu0.b32.start [1/16] (narrow) %v2948_v30, 32 }
 0x8af   : > { %v2874_v17 = vpop.f32.mrf.mxu3 }
 0x8b0   : > { %v2913_v23 = vmul.f32 %v2874_v17, %v2569_v46 }
 0x8b2   : > { %v2933_v58 = vadd.f32 %v5703_v59, %v2913_v23  ;;  %v3757_v23 = vmov 0  }
 0x8b3   : > { %3373 = vset.pattern.permute.xlu1 %v3757_v23  ;;  %3374 = vset.pattern.permute.xlu2 %v3757_v23 }
 0x8b4   : > { %v2949_v48 = vmax.f32 %v2933_v58, 0.0 }
 0x8b6   : > { %2965 = vxpose.xlu0.b32.cont [2/16] (narrow) %v2949_v48, 32 }
 0x8b7   : > { %v2877_v62 = vpop.f32.mrf.mxu3 }
 0x8b8   : > { %v2914_v21 = vmul.f32 %v2877_v62, %v2579_v2 }
 0x8ba   : > { %v2934_v52 = vadd.f32 %v5703_v59, %v2914_v21  ;;  %v3285_v21 = vld [vmem:[%s5784_s7] sm:$0xff] }
 0x8bc   : > { %v2950_v61 = vmax.f32 %v2934_v52, 0.0  ;;  %v3038_v52 = vld [vmem:[#allocation2] sm:$0x1] }
 0x8be   : > { %2966 = vxpose.xlu0.b32.cont [3/16] (narrow) %v2950_v61, 32 }
 0x8bf   : > { %v2879_v49 = vpop.f32.mrf.mxu3 }
 0x8c0   : > { %v2915_v63 = vmul.f32 %v2879_v49, %v2589_v47 }
 0x8c2   : > { %v2935_v51 = vadd.f32 %v5703_v59, %v2915_v63 }
 0x8c4   : > { %v2951_v57 = vmax.f32 %v2935_v51, 0.0 }
 0x8c6   : > { %2967 = vxpose.xlu0.b32.cont [4/16] (narrow) %v2951_v57, 32 }
 0x8c7   : > { %v2882_v4 = vpop.f32.mrf.mxu3 }
 0x8c8   : > { %v2916_v43 = vmul.f32 %v2882_v4, %v2599_v42 }
 0x8ca   : > { %v2936_v19 = vadd.f32 %v5703_v59, %v2916_v43 }
 0x8cc   : > { %v2952_v55 = vmax.f32 %v2936_v19, 0.0 }
 0x8ce   : > { %2968 = vxpose.xlu0.b32.cont [5/16] (narrow) %v2952_v55, 32 }
 0x8cf   : > { %v2884_v41 = vpop.f32.mrf.mxu3 }
 0x8d0   : > { %v2917_v38 = vmul.f32 %v2884_v41, %v5660_v37  ;;  %v3036_v41 = vld [vmem:[%s5786_s9] sm:$0x1] }
 0x8d2   : > { %v2937_v2 = vadd.f32 %v5703_v59, %v2917_v38 }
 0x8d4   : > { %v2953_v46 = vmax.f32 %v2937_v2, 0.0 }
 0x8d6   : > { %2969 = vxpose.xlu0.b32.cont [6/16] (narrow) %v2953_v46, 32 }
 0x8d7   : > { %v2887_v1 = vpop.f32.mrf.mxu3 }
 0x8d8   : > { %v2918_v47 = vmul.f32 %v2887_v1, %v5626_v54 }
 0x8da   : > { %v2938_v53 = vadd.f32 %v5703_v59, %v2918_v47 }
 0x8dc   : > { %v2954_v25 = vmax.f32 %v2938_v53, 0.0 }
 0x8de   : > { %2970 = vxpose.xlu0.b32.cont [7/16] (narrow) %v2954_v25, 32 }
 0x8df   : > { %v2889_v18 = vpop.f32.mrf.mxu3 }
 0x8e0   : > { %v2919_v42 = vmul.f32 %v2889_v18, %v5631_v50 }
 0x8e2   : > { %v2939_v33 = vadd.f32 %v5703_v59, %v2919_v42 }
 0x8e4   : > { %v2955_v6 = vmax.f32 %v2939_v33, 0.0 }
 0x8e6   : > { %2971 = vxpose.xlu0.b32.cont [8/16] (narrow) %v2955_v6, 32 }
 0x8e7   : > { %v2892_v20 = vpop.f32.mrf.mxu3 }
 0x8e8   : > { %v2920_v37 = vmul.f32 %v2892_v20, %v5598_v12 }
 0x8ea   : > { %v2940_v45 = vadd.f32 %v5703_v59, %v2920_v37 }
 0x8ec   : > { %v2956_v29 = vmax.f32 %v2940_v45, 0.0 }
 0x8ee   : > { %2972 = vxpose.xlu0.b32.cont [9/16] (narrow) %v2956_v29, 32 }
 0x8ef   : > { %v2894_v24 = vpop.f32.mrf.mxu3 }
 0x8f0   : > { %v2921_v54 = vmul.f32 %v2894_v24, %v5603_v22 }
 0x8f2   : > { %v2941_v31 = vadd.f32 %v5703_v59, %v2921_v54 }
 0x8f4   : > { %v2957_v32 = vmax.f32 %v2941_v31, 0.0 }
 0x8f6   : > { %2973 = vxpose.xlu0.b32.cont [10/16] (narrow) %v2957_v32, 32 }
 0x8f7   : > { %v2897_v36 = vpop.f32.mrf.mxu3 }
 0x8f8   : > { %v2922_v50 = vmul.f32 %v2897_v36, %v5507_v56 }
 0x8fa   : > { %v2942_v27 = vadd.f32 %v5703_v59, %v2922_v50 }
 0x8fc   : > { %v2958_v34 = vmax.f32 %v2942_v27, 0.0 }
 0x8fe   : > { %2974 = vxpose.xlu0.b32.cont [11/16] (narrow) %v2958_v34, 32 }
 0x8ff   : > { %v2899_v11 = vpop.f32.mrf.mxu3 }
 0x900   : > { %v2923_v12 = vmul.f32 %v2899_v11, %v5569_v15 }
 0x902   : > { %v2943_v3 = vadd.f32 %v5703_v59, %v2923_v12 }
 0x904   : > { %v2959_v44 = vmax.f32 %v2943_v3, 0.0 }
 0x906   : > { %2975 = vxpose.xlu0.b32.cont [12/16] (narrow) %v2959_v44, 32 }
 0x907   : > { %v2902_v5 = vpop.f32.mrf.mxu3 }
 0x908   : > { %v2924_v22 = vmul.f32 %v2902_v5, %v5530_v7 }
 0x90a   : > { %v2944_v10 = vadd.f32 %v5703_v59, %v2924_v22 }
 0x90c   : > { %v2960_v16 = vmax.f32 %v2944_v10, 0.0 }
 0x90e   : > { %2976 = vxpose.xlu0.b32.cont [13/16] (narrow) %v2960_v16, 32 }
 0x90f   : > { %v2904_v13 = vpop.f32.mrf.mxu3 }
 0x910   : > { %v2925_v56 = vmul.f32 %v2904_v13, %v5535_v35  ;;  %v3000_v35 = vld [vmem:[%s5785_s8] sm:$0xff] }
 0x911   : > { %3004 = vperm.xlu1 %3373, %v3000_v35  }
 0x912   : > { %v2945_v40 = vadd.f32 %v5703_v59, %v2925_v56 }
 0x914   : > { %v2961_v14 = vmax.f32 %v2945_v40, 0.0 }
 0x916   : > { %2977 = vxpose.xlu0.b32.cont [14/16] (narrow) %v2961_v14, 32 }
 0x917   : > { %v2907_v9 = vpop.f32.mrf.mxu3 }
 0x918   : > { %v2926_v15 = vmul.f32 %v2907_v9, %v5545_v8  ;;  %v3001_v8 = vld [vmem:[%s5785_s8 + $0x8] sm:$0xff] }
 0x919   : > { %3009 = vperm.xlu2 %3374, %v3001_v8   ;;  %3041 = vperm.xlu1 %3373, %v3038_v52  }
 0x91a   : > { %v2946_v0 = vadd.f32 %v5703_v59, %v2926_v15 }
 0x91c   : > { %v2962_v26 = vmax.f32 %v2946_v0, 0.0 }
 0x91e   : > { %2978 = vxpose.xlu0.b32.cont [15/16] (narrow) %v2962_v26, 32 }
 0x91f   : > { %v2909_v39 = vpop.f32.mrf.mxu3 }
 0x920   : > { %v2927_v7 = vmul.f32 %v2909_v39, %v5548_v28 }
 0x922   : > { %v2947_v60 = vadd.f32 %v5703_v59, %v2927_v7 }
 0x924   : > { %v2963_v30 = vmax.f32 %v2947_v60, 0.0 }
 0x926   : > { %2979 = vxpose.xlu0.b32.end [16/16] (narrow) %v2963_v30, 32 }
 0x952   : > { %v2980_v17 = vpop.trf.xlu0 }
 0x95a   : > { %v2981_v58 = vpop.trf.xlu0 }
 0x95b   : > { %v2998_v62 = vpack.c.bf16 %v2981_v58, %v2980_v17 }
 0x962   : > { %v2982_v28 = vpop.trf.xlu0 }
 0x96a   : > { %v2983_v48 = vpop.trf.xlu0 }
 0x96b   : > { %v2999_v59 = vpack.c.bf16 %v2983_v48, %v2982_v28 }
 0x96d   : > { %3026 = vmatpush.bf16.msra.mxu0 %v2999_v59 }
 0x971   : > { %3027 = vmatpush.bf16.msra.mxu0 %v2998_v62 }
 0x973   : > { %v3010_v63 = vpop.permute.xlu2 %3009 }
 0x974   : > { %3262 = vmatmul.msk.bf16.vlgmr.msra.gmra.mxu0 %vm2431_vm2, %v3285_v21 }
 0x983   : > { %v3005_v49 = vpop.permute.xlu1 %3004 }
 0x98b   : > { %v3042_v38 = vpop.permute.xlu1 %3041 }
 0x98c   : > { %v3044_v2 = vperm.slane %v3042_v38, 0 }
 0x98d   : > { %3375 = vset.pattern.permute.xlu0 %v3757_v23 }
 0x9f1   : > { %v3029_v61 = vpop.f32.mrf.mxu0 }
 0x9f2   : > { %v3030_v51 = vadd.f32 %v3029_v61, %v3005_v49 }
 0x9f4   : > { %v3034_v43 = vmax.f32 %v3030_v51, 0.0 }
 0x9f9   : > { %v3031_v57 = vpop.f32.mrf.mxu0 }
 0x9fa   : > { %v3032_v4 = vadd.f32 %v3031_v57, %v3010_v63 }
 0x9fc   : > { %v3035_v19 = vmax.f32 %v3032_v4, 0.0 }
 0x9fe   : > { %v3037_v55 = vpack.c.bf16 %v3035_v19, %v3034_v43 }
 0xa00   : > { %3056 = vmatpush.bf16.msrb.mxu0 %v3037_v55 }
 0xa03   : > { %3263 = vmatmul.msk.bf16.vlgmr.msrb.gmra.mxu0 %vm3045_vm12, %v3036_v41 }
 0xa80   : > { %v3058_v46 = vpop.f32.mrf.mxu0 }
 0xa81   : > { %v3059_v1 = vadd.f32 %v3058_v46, %v3044_v2 }
 0xa83   : > { %v3264_v47 = vmul.f32 -1.442695, %v3059_v1 }
 0xa85   : > { %3666 = vpow2.f32 %v3264_v47 }
 0xa88   : > { %v3060_v53 = vpop.f32.mrf.mxu0 }
 0xa8b   : > { %v3667_v25 = vpop.eup %3666 }
 0xa8c   : > { %v3065_v18 = vadd.f32 1.0, %v3667_v25 }
 0xa8e   : > { %3668 = vrcp.f32 %v3065_v18  ;;  %v3077_v20 = vand.u32 2147483648, %v3065_v18  ;;  %v3075_v45 = vand.u32 2147483647, %v3065_v18  ;;  %vm3071_vm7 = vweird.f32 %v3065_v18 }
 0xa90   : > { %v3078_v24 = vor.u32 1.1754944e-38, %v3077_v20  ;;  %vm3076_vm5 = vcmp.eq.f32.partialorder %v3075_v45, 8.507059e+37 }
 0xa94   : > { %v3669_v42 = vpop.eup %3668 }
 0xa95   : > { %v3067_v33 = vmul.f32 %v3669_v42, %v3065_v18  ;;  %vm3072_vm2 = vweird.f32 %v3669_v42 }
 0xa96   : > { %vm3073_vm0 = vmor %vm3071_vm7, %vm3072_vm2 }
 0xa97   : > { %v3068_v6 = vsub.f32 1.0, %v3067_v33 }
 0xa99   : > { %v3069_v37 = vmul.f32 %v3669_v42, %v3068_v6 }
 0xa9b   : > { %v3070_v29 = vadd.f32 %v3669_v42, %v3069_v37 }
 0xa9d   : > { %v3074_v54 = vsel %vm3073_vm0, %v3669_v42, %v3070_v29 }
 0xa9e   : > { %v3079_v31 = vsel %vm3076_vm5, %v3078_v24, %v3074_v54 }
 0xa9f   : > { %3081 = vst [vmem:[%s395_s15] sm:$0x1] %v3079_v31 }
 0xaa0   : > { %3713 = shalt.err (!%p3710_p3)
}
 0xaa1   : > { %3286 = dma.vmem_to_hbm [thread:$0]  (%p3859_p5), %s3094_s23, 16, %s3096_s16, %s3083_s25  }
 0xaa2 PF: > { %p3292_p4 = scmp.ge.s32.totalorder %s3748_s22, 2  ;;  %s3107_s12 = sand.u32 1, %s3736_s19  }
 0xaa3   : > { %s3108_s15 = scalar_lea.sflag [#allocation4], %s3107_s12 }
 0xaa4   : > { %p3289_p7 = pnand %p3292_p4, %p3863_p6 }
 0xaa6   : > { %p3290_p8 = pneg %p3289_p7 }
 0xaa8   : > { %3731 = dma.done.wait (%p3290_p8), %s3108_s15, 16  }
 0xaa9   : > { %3733 = vsyncadd (%p3290_p8), %s3108_s15, 4294967280  ;;  %p23_p9 = scmp.ge.s32.totalorder %s3846_s24, 4   ;;  %s5983_s19 = smov %s3740_s20 }
 0xaaa   : > { %s5984_s20 = smov %s3744_s21  ;;  %s5985_s21 = smov %s3857_s27 }
 0xaab   : > { %s5986_s22 = smov %s3846_s24  ;;  %25 = sbr.rel (!%p23_p9) target bundleno = 6 (0x6), region = 102 }
 0xab0   :  { %3113 = vsyncpa [#allocation4], 1 }
 0xab1   :  { %3115 = vsyncpa [#allocation4 + $0x1], 1 }

</bundles_post_ra>
